<compile_context>
chip_gen: v7x
topology: tpu7x:2x2x1
jax: 0.10.0
libtpu: 0.0.40
codegen_flags: <defaults>
</compile_context>

<pallas_src>
import functools
import math

import jax
import jax.numpy as jnp
from jax import lax
from jax.experimental import pallas as pl
from jax.experimental.pallas import tpu as pltpu

_EPS = 1e-5          # nn.BatchNorm2d default eps
_LANE = 128          # lane width; channels padded to this only when >= 128


def _round_up(x, m):
    return (x + m - 1) // m * m


def _maybe_pad_c(c):
    # Keep true channel width in HBM when small (avoids inflating DMA traffic);
    # lane-pad only once the channel count is at least one full lane group.
    return c if c < _LANE else _round_up(c, _LANE)


# ----------------------------- in-kernel helpers -----------------------------

def _conv3x3_taps(padded, w_ref, b_ref):
    """3x3 stride-1 conv of an already spatially padded NHWC tile.

    Nine accumulating MXU dots over shifted windows: identical MACs to im2col
    but with no (M, 9*Cin) scratch materialization / vector-store traffic.

    padded: (BN, H+2, W+2, Cin) Ref or array (halo already zero)
    w_ref : (9, Cin, Cout) Ref, rows ordered (kh*3 + kw)
    b_ref : (1, Cout) Ref (f32)
    returns (BN*H*W, Cout) float32 accumulator
    """
    BN, Hp, Wp, Cin = padded.shape
    H, W = Hp - 2, Wp - 2
    M = BN * H * W
    Cout = w_ref.shape[-1]
    acc = jnp.zeros((M, Cout), jnp.float32)
    for kh in range(3):
        for kw in range(3):
            win = padded[:, kh:kh + H, kw:kw + W, :]
            acc = acc + jnp.dot(win.reshape(M, Cin), w_ref[kh * 3 + kw],
                                preferred_element_type=jnp.float32)
    return acc + b_ref[...]


def _store_stats(st_ref, y):
    """Per-tile per-channel sum / sum-of-squares from the f32 accumulator."""
    C = y.shape[-1]
    st_ref[:, 0:1, :] = jnp.sum(y, axis=0).reshape(1, 1, C)
    st_ref[:, 1:2, :] = jnp.sum(y * y, axis=0).reshape(1, 1, C)


def _write_padded(out_ref, y_interior):
    """Write conv output into a spatially padded block with a zeroed halo."""
    BN, Hp, Wp, C = out_ref.shape
    H, W = Hp - 2, Wp - 2
    z_row = jnp.zeros((BN, 1, Wp, C), out_ref.dtype)
    z_col = jnp.zeros((BN, Hp, 1, C), out_ref.dtype)
    out_ref[:, 0:1, :, :] = z_row
    out_ref[:, Hp - 1:Hp, :, :] = z_row
    out_ref[:, :, 0:1, :] = z_col
    out_ref[:, :, Wp - 1:Wp, :] = z_col
    out_ref[:, 1:H + 1, 1:W + 1, :] = y_interior.astype(out_ref.dtype)


# --------------------------------- kernels ------------------------------------

def _conv1_kernel(xp_ref, w1_ref, b1_ref, y1p_ref, st_ref):
    BN, Hp, Wp, _ = xp_ref.shape
    H, W = Hp - 2, Wp - 2
    C = y1p_ref.shape[-1]
    y = _conv3x3_taps(xp_ref, w1_ref, b1_ref)           # (M, C) f32
    _store_stats(st_ref, y)                              # stats before any cast
    _write_padded(y1p_ref, y.reshape(BN, H, W, C))       # padded handoff to pass 2


def _bn1_conv2_kernel(y1p_ref, sc1_ref, sh1_ref, w2_ref, b2_ref, y2_ref, st_ref):
    BN, Hp, Wp, C = y1p_ref.shape
    H, W = Hp - 2, Wp - 2
    # BN1 (affine form) + ReLU on the whole padded tile, then re-zero the halo
    # (required to preserve zero-padding semantics before conv2).
    # TODO(synk): for large block_n, apply this chunkwise (fori_loop over rows)
    # to bound the f32 temporary's live range.
    a = jnp.maximum(y1p_ref[...].astype(jnp.float32) * sc1_ref[...].reshape(1, 1, 1, C)
                    + sh1_ref[...].reshape(1, 1, 1, C), 0.0)
    hi = lax.broadcasted_iota(jnp.int32, (1, Hp, Wp, 1), 1)
    wi = lax.broadcasted_iota(jnp.int32, (1, Hp, Wp, 1), 2)
    interior = (hi > 0) & (hi < Hp - 1) & (wi > 0) & (wi < Wp - 1)
    a = jnp.where(interior, a, 0.0).astype(w2_ref.dtype)
    y = _conv3x3_taps(a, w2_ref, b2_ref)                  # (M, C) f32
    _store_stats(st_ref, y)
    y2_ref[...] = y.reshape(BN, H, W, C).astype(y2_ref.dtype)


def _bn2_add_kernel(y2_ref, sc2_ref, sh2_ref, x_ref, o_ref):
    C = y2_ref.shape[-1]
    y = (y2_ref[...].astype(jnp.float32) * sc2_ref[...].reshape(1, 1, 1, C)
         + sh2_ref[...].reshape(1, 1, 1, C))
    o_ref[...] = jnp.maximum(y + x_ref[...].astype(jnp.float32), 0.0).astype(o_ref.dtype)


def _bn2_add_1x1_kernel(y2_ref, sc2_ref, sh2_ref, x_ref, w3_ref, b3_ref, o_ref):
    BN, H, W, Cin = x_ref.shape
    C = y2_ref.shape[-1]
    y = (y2_ref[...].astype(jnp.float32) * sc2_ref[...].reshape(1, 1, 1, C)
         + sh2_ref[...].reshape(1, 1, 1, C))
    skip = jnp.dot(x_ref[...].reshape(BN * H * W, Cin), w3_ref[...],
                   preferred_element_type=jnp.float32)
    skip = skip.reshape(BN, H, W, C) + b3_ref[...].reshape(1, 1, 1, C)
    o_ref[...] = jnp.maximum(y + skip, 0.0).astype(o_ref.dtype)


# --------------------------------- wrapper -------------------------------------

def _vmem_limit_bytes():
    """Generation-aware VMEM budget: ~3/4 of physical, capped below 100 MiB."""
    cap = 128 * 1024 * 1024
    try:
        cap = int(pltpu.get_tpu_info().vmem_capacity_bytes)
    except Exception:
        pass
    return int(min(100 * 1024 * 1024, max(32 * 1024 * 1024, (cap * 3) // 4)))


def _auto_block_n(N, Hp, Wp, Cin_p, C_p, vmem_limit):
    """Largest batch tile that fits the budget while keeping >= 2 grid steps."""
    per_img = Hp * Wp * C_p * 8 + (Hp - 2) * (Wp - 2) * C_p * 8
    per_img = max(per_img, Hp * Wp * Cin_p * 4)
    best = 1
    for bn in range(1, N + 1):
        if N % bn:
            continue
        if N >= 2 and N // bn < 2:
            continue                      # >= 2 steps for megacore / pipelining
        if bn * per_img * 3 <= vmem_limit:
            best = bn
    return best


def _bn_scale_shift(partial_stats, count, gamma_p, beta_p):
    """Reduce per-tile (sum, sumsq) to BN scale/shift vectors (training stats)."""
    s = jnp.sum(partial_stats[:, 0, :], axis=0)
    ss = jnp.sum(partial_stats[:, 1, :], axis=0)
    mean = s / count
    var = jnp.maximum(ss / count - mean * mean, 0.0)      # biased var, clamped >= 0
    rstd = lax.rsqrt(var + _EPS)
    scale = gamma_p.reshape(-1) * rstd
    shift = beta_p.reshape(-1) - mean * scale
    return scale.reshape(1, -1).astype(jnp.float32), shift.reshape(1, -1).astype(jnp.float32)


@functools.partial(jax.jit,
                   static_argnames=("use_1x1conv", "strides", "block_n", "mxu_dtype"))
def residual_forward(x_nchw, params, *, use_1x1conv=False, strides=1,
                     block_n=None, mxu_dtype=jnp.bfloat16):
    if strides != 1:
        # TODO(synk): stride>1 (strided 3x3 patch gather + strided skip) not implemented.
        raise NotImplementedError("stride > 1 not supported by this Pallas kernel")

    x = jnp.transpose(x_nchw, (0, 2, 3, 1)).astype(jnp.float32)   # NCHW -> NHWC
    N, H, W, Cin = x.shape
    C = params['w1'].shape[-1]
    if not use_1x1conv and Cin != C:
        raise ValueError("identity skip requires input_channels == num_channels")

    Cin_p, C_p = _maybe_pad_c(Cin), _maybe_pad_c(C)
    Hp, Wp = H + 2, W + 2
    io_dtype = mxu_dtype                  # intermediates stored at operand dtype

    vmem_limit = _vmem_limit_bytes()
    if block_n is None:
        block_n = _auto_block_n(N, Hp, Wp, Cin_p, C_p, vmem_limit)
    if N % block_n != 0:
        raise ValueError("batch must be divisible by block_n")
    BN, Nt = block_n, N // block_n
    # TODO(synk): for very large H*W additionally tile over H row-blocks with
    # 1-row halos; batch-only tiling covers typical ResNet stages.
    cp = pltpu.CompilerParams(dimension_semantics=("parallel",),
                              vmem_limit_bytes=vmem_limit)
    count = float(N * H * W)

    # ---- wrapper glue: cast + spatial pre-pad + matmul-shaped weights ----
    x_io = jnp.pad(x, ((0, 0), (0, 0), (0, 0), (0, Cin_p - Cin))).astype(io_dtype)
    xp = jnp.pad(x_io, ((0, 0), (1, 1), (1, 1), (0, 0)))          # spatial halo

    def pad_w3x3(w):                       # (3,3,cin,C) -> (9, cin_p, C_p)
        cin = w.shape[2]
        cin_p = _maybe_pad_c(cin)
        w = jnp.pad(w, ((0, 0), (0, 0), (0, cin_p - cin), (0, C_p - w.shape[3])))
        return w.reshape(9, cin_p, C_p).astype(mxu_dtype)

    def pad_vec(v):
        v = jnp.asarray(v, jnp.float32).reshape(1, -1)
        return jnp.pad(v, ((0, 0), (0, C_p - v.shape[1])))

    w1f, w2f = pad_w3x3(params['w1']), pad_w3x3(params['w2'])
    b1, b2 = pad_vec(params['b1']), pad_vec(params['b2'])
    g1, be1 = pad_vec(params['gamma1']), pad_vec(params['beta1'])
    g2, be2 = pad_vec(params['gamma2']), pad_vec(params['beta2'])

    vec_spec = pl.BlockSpec((1, C_p), lambda i: (0, 0))
    stats_spec = pl.BlockSpec((1, 2, C_p), lambda i: (i, 0, 0))
    pad_in_spec = pl.BlockSpec((BN, Hp, Wp, Cin_p), lambda i: (i, 0, 0, 0))
    pad_c_spec = pl.BlockSpec((BN, Hp, Wp, C_p), lambda i: (i, 0, 0, 0))
    tile_c_spec = pl.BlockSpec((BN, H, W, C_p), lambda i: (i, 0, 0, 0))
    tile_in_spec = pl.BlockSpec((BN, H, W, Cin_p), lambda i: (i, 0, 0, 0))

    # ------------------------- pass 1: conv1 + stats --------------------------
    y1p, st1 = pl.pallas_call(
        _conv1_kernel,
        out_shape=(jax.ShapeDtypeStruct((N, Hp, Wp, C_p), io_dtype),
                   jax.ShapeDtypeStruct((Nt, 2, C_p), jnp.float32)),
        grid=(Nt,),
        in_specs=[pad_in_spec,
                  pl.BlockSpec((9, Cin_p, C_p), lambda i: (0, 0, 0)),
                  vec_spec],
        out_specs=(pad_c_spec, stats_spec),
        compiler_params=cp,
    )(xp, w1f, b1)
    sc1, sh1 = _bn_scale_shift(st1, count, g1, be1)

    # -------------------- pass 2: BN1 + relu + conv2 + stats ------------------
    y2, st2 = pl.pallas_call(
        _bn1_conv2_kernel,
        out_shape=(jax.ShapeDtypeStruct((N, H, W, C_p), io_dtype),
                   jax.ShapeDtypeStruct((Nt, 2, C_p), jnp.float32)),
        grid=(Nt,),
        in_specs=[pad_c_spec, vec_spec, vec_spec,
                  pl.BlockSpec((9, C_p, C_p), lambda i: (0, 0, 0)),
                  vec_spec],
        out_specs=(tile_c_spec, stats_spec),
        compiler_params=cp,
    )(y1p, sc1, sh1, w2f, b2)
    sc2, sh2 = _bn_scale_shift(st2, count, g2, be2)

    # ----------------------- pass 3: BN2 + skip + relu ------------------------
    if use_1x1conv:
        w3f = jnp.pad(params['w3'],
                      ((0, Cin_p - Cin), (0, C_p - C))).astype(mxu_dtype)
        b3 = pad_vec(params['b3'])
        out_p = pl.pallas_call(
            _bn2_add_1x1_kernel,
            out_shape=jax.ShapeDtypeStruct((N, H, W, C_p), jnp.float32),
            grid=(Nt,),
            in_specs=[tile_c_spec, vec_spec, vec_spec, tile_in_spec,
                      pl.BlockSpec((Cin_p, C_p), lambda i: (0, 0)),
                      vec_spec],
            out_specs=tile_c_spec,
            compiler_params=cp,
        )(y2, sc2, sh2, x_io, w3f, b3)
    else:
        out_p = pl.pallas_call(
            _bn2_add_kernel,
            out_shape=jax.ShapeDtypeStruct((N, H, W, C_p), jnp.float32),
            grid=(Nt,),
            in_specs=[tile_c_spec, vec_spec, vec_spec, tile_in_spec],
            out_specs=tile_c_spec,
            compiler_params=cp,
        )(y2, sc2, sh2, x_io)

    return jnp.transpose(out_p[..., :C], (0, 3, 1, 2))   # NHWC -> NCHW, drop pad


# ----------------------------- params / reference -----------------------------

def init_residual_params(key, input_channels, num_channels, use_1x1conv=False):
    """Deterministic parameter init mirroring nn.Conv2d / nn.BatchNorm2d shapes."""
    ks = jax.random.split(key, 3)

    def conv_init(k, kh, kw, cin, cout):
        fan_in = cin * kh * kw
        bound = 1.0 / math.sqrt(fan_in)
        kw_, kb_ = jax.random.split(k)
        w = jax.random.uniform(kw_, (kh, kw, cin, cout), jnp.float32, -bound, bound)
        b = jax.random.uniform(kb_, (1, cout), jnp.float32, -bound, bound)
        return w, b

    w1, b1 = conv_init(ks[0], 3, 3, input_channels, num_channels)
    w2, b2 = conv_init(ks[1], 3, 3, num_channels, num_channels)
    params = dict(
        w1=w1, b1=b1, w2=w2, b2=b2,
        gamma1=jnp.ones((1, num_channels), jnp.float32),
        beta1=jnp.zeros((1, num_channels), jnp.float32),
        gamma2=jnp.ones((1, num_channels), jnp.float32),
        beta2=jnp.zeros((1, num_channels), jnp.float32),
    )
    if use_1x1conv:
        w3, b3 = conv_init(ks[2], 1, 1, input_channels, num_channels)
        params['w3'] = w3.reshape(input_channels, num_channels)
        params['b3'] = b3
    return params


def residual_reference(x_nchw, params, *, use_1x1conv=False):
    x = jnp.transpose(x_nchw, (0, 2, 3, 1)).astype(jnp.float32)
    dn = ('NHWC', 'HWIO', 'NHWC')

    def conv(inp, w, b, pad):
        y = lax.conv_general_dilated(inp, w, (1, 1), pad, dimension_numbers=dn)
        return y + b.reshape(1, 1, 1, -1)

    def bn(y, g, be):
        m = jnp.mean(y, axis=(0, 1, 2), keepdims=True)
        v = jnp.mean((y - m) ** 2, axis=(0, 1, 2), keepdims=True)
        return (y - m) * lax.rsqrt(v + _EPS) * g.reshape(1, 1, 1, -1) + be.reshape(1, 1, 1, -1)

    y = jax.nn.relu(bn(conv(x, params['w1'], params['b1'], ((1, 1), (1, 1))),
                       params['gamma1'], params['beta1']))
    y = bn(conv(y, params['w2'], params['b2'], ((1, 1), (1, 1))),
           params['gamma2'], params['beta2'])
    skip = x
    if use_1x1conv:
        w3 = params['w3'].reshape(1, 1, *params['w3'].shape)
        skip = conv(x, w3, params['b3'], ((0, 0), (0, 0)))
    return jnp.transpose(jax.nn.relu(y + skip), (0, 3, 1, 2))


# ------------------------------------ main -------------------------------------

if __name__ == "__main__":
    key = jax.random.PRNGKey(0)
    kx, kp, kp2 = jax.random.split(key, 3)

    N, Cin, H, W = 2, 4, 16, 16          # NCHW, like the PyTorch module's input
    C = 4                                 # num_channels (identity-skip config)

    x = jax.random.normal(kx, (N, Cin, H, W), jnp.float32)

    # --- identity-skip config, exact float32 operand path ---
    params = init_residual_params(kp, Cin, C, use_1x1conv=False)
    ref = residual_reference(x, params, use_1x1conv=False)
    out = jax.block_until_ready(
        residual_forward(x, params, use_1x1conv=False, mxu_dtype=jnp.float32))
    assert out.shape == (N, C, H, W)
    err = float(jnp.max(jnp.abs(out - ref)))
    assert err < 1e-3, err

    # --- default bf16 MXU-operand / bf16 intermediates path (f32 accumulation) ---
    out_bf16 = jax.block_until_ready(residual_forward(x, params, use_1x1conv=False))
    err_bf16 = float(jnp.max(jnp.abs(out_bf16 - ref)))
    assert err_bf16 < 0.1, err_bf16

    # --- projection-skip config (1x1 conv, channel change), exact path ---
    C2 = 8
    params2 = init_residual_params(kp2, Cin, C2, use_1x1conv=True)
    ref2 = residual_reference(x, params2, use_1x1conv=True)
    out2 = jax.block_until_ready(
        residual_forward(x, params2, use_1x1conv=True, mxu_dtype=jnp.float32))
    assert out2.shape == (N, C2, H, W)
    err2 = float(jnp.max(jnp.abs(out2 - ref2)))
    assert err2 < 1e-3, err2

    print("KERNEL_OK")
</pallas_src>

<mosaic_0001>
module attributes {stable_mosaic.version = 11 : i64} {
  func.func @_conv1_kernel(%arg0: i32, %arg1: memref<1x18x18x4xf32, #tpu.memory_space<vmem>>, %arg2: memref<9x4x4xf32, #tpu.memory_space<vmem>>, %arg3: memref<1x4xf32, #tpu.memory_space<vmem>>, %arg4: memref<1x18x18x4xf32, #tpu.memory_space<vmem>>, %arg5: memref<1x2x4xf32, #tpu.memory_space<vmem>>) attributes {dimension_semantics = [#tpu.dimension_semantics<parallel>], iteration_bounds = array<i64: 2>, scalar_prefetch = 0 : i64, scratch_operands = 0 : i64, tpu.core_type = #tpu.core_type<tc>, window_params = [{transform_indices = @transform_0, window_bounds = array<i64: 1, 18, 18, 4>}, {pipeline_mode = #tpu.pipeline_mode<synchronous>, transform_indices = @transform_1, window_bounds = array<i64: 9, 4, 4>}, {pipeline_mode = #tpu.pipeline_mode<synchronous>, transform_indices = @transform_2, window_bounds = array<i64: 1, 4>}, {transform_indices = @transform_3, window_bounds = array<i64: 1, 18, 18, 4>}, {transform_indices = @transform_4, window_bounds = array<i64: 1, 2, 4>}]} {
    %cst = arith.constant 0.000000e+00 : f32
    %0 = vector.broadcast %cst : f32 to vector<256x4xf32>
    %c0 = arith.constant 0 : index
    %c0_0 = arith.constant 0 : index
    %c0_1 = arith.constant 0 : index
    %c0_2 = arith.constant 0 : index
    %1 = vector.load %arg1[%c0, %c0_0, %c0_1, %c0_2] : memref<1x18x18x4xf32, #tpu.memory_space<vmem>>, vector<1x16x16x4xf32>
    %2 = vector.shape_cast %1 : vector<1x16x16x4xf32> to vector<256x4xf32>
    %c0_3 = arith.constant 0 : index
    %c0_4 = arith.constant 0 : index
    %c0_5 = arith.constant 0 : index
    %3 = vector.load %arg2[%c0_3, %c0_4, %c0_5] : memref<9x4x4xf32, #tpu.memory_space<vmem>>, vector<1x4x4xf32>
    %4 = vector.shape_cast %3 : vector<1x4x4xf32> to vector<4x4xf32>
    %cst_6 = arith.constant dense<0.000000e+00> : vector<256x4xf32>
    %5 = tpu.matmul %2, %4, %cst_6 {dimension_numbers = #tpu.dot_dimension_numbers<[1], [0], [0], [1], [0, 0, 1, 1], [], []>} : vector<256x4xf32>, vector<4x4xf32>, vector<256x4xf32> -> vector<256x4xf32>
    %6 = arith.addf %0, %5 : vector<256x4xf32>
    %c0_7 = arith.constant 0 : index
    %c0_8 = arith.constant 0 : index
    %c1 = arith.constant 1 : index
    %c0_9 = arith.constant 0 : index
    %7 = vector.load %arg1[%c0_7, %c0_8, %c1, %c0_9] : memref<1x18x18x4xf32, #tpu.memory_space<vmem>>, vector<1x16x16x4xf32>
    %8 = vector.shape_cast %7 : vector<1x16x16x4xf32> to vector<256x4xf32>
    %c1_10 = arith.constant 1 : index
    %c0_11 = arith.constant 0 : index
    %c0_12 = arith.constant 0 : index
    %9 = vector.load %arg2[%c1_10, %c0_11, %c0_12] : memref<9x4x4xf32, #tpu.memory_space<vmem>>, vector<1x4x4xf32>
    %10 = vector.shape_cast %9 : vector<1x4x4xf32> to vector<4x4xf32>
    %cst_13 = arith.constant dense<0.000000e+00> : vector<256x4xf32>
    %11 = tpu.matmul %8, %10, %cst_13 {dimension_numbers = #tpu.dot_dimension_numbers<[1], [0], [0], [1], [0, 0, 1, 1], [], []>} : vector<256x4xf32>, vector<4x4xf32>, vector<256x4xf32> -> vector<256x4xf32>
    %12 = arith.addf %6, %11 : vector<256x4xf32>
    %c0_14 = arith.constant 0 : index
    %c0_15 = arith.constant 0 : index
    %c2 = arith.constant 2 : index
    %c0_16 = arith.constant 0 : index
    %13 = vector.load %arg1[%c0_14, %c0_15, %c2, %c0_16] : memref<1x18x18x4xf32, #tpu.memory_space<vmem>>, vector<1x16x16x4xf32>
    %14 = vector.shape_cast %13 : vector<1x16x16x4xf32> to vector<256x4xf32>
    %c2_17 = arith.constant 2 : index
    %c0_18 = arith.constant 0 : index
    %c0_19 = arith.constant 0 : index
    %15 = vector.load %arg2[%c2_17, %c0_18, %c0_19] : memref<9x4x4xf32, #tpu.memory_space<vmem>>, vector<1x4x4xf32>
    %16 = vector.shape_cast %15 : vector<1x4x4xf32> to vector<4x4xf32>
    %cst_20 = arith.constant dense<0.000000e+00> : vector<256x4xf32>
    %17 = tpu.matmul %14, %16, %cst_20 {dimension_numbers = #tpu.dot_dimension_numbers<[1], [0], [0], [1], [0, 0, 1, 1], [], []>} : vector<256x4xf32>, vector<4x4xf32>, vector<256x4xf32> -> vector<256x4xf32>
    %18 = arith.addf %12, %17 : vector<256x4xf32>
    %c0_21 = arith.constant 0 : index
    %c1_22 = arith.constant 1 : index
    %c0_23 = arith.constant 0 : index
    %c0_24 = arith.constant 0 : index
    %19 = vector.load %arg1[%c0_21, %c1_22, %c0_23, %c0_24] : memref<1x18x18x4xf32, #tpu.memory_space<vmem>>, vector<1x16x16x4xf32>
    %20 = vector.shape_cast %19 : vector<1x16x16x4xf32> to vector<256x4xf32>
    %c3 = arith.constant 3 : index
    %c0_25 = arith.constant 0 : index
    %c0_26 = arith.constant 0 : index
    %21 = vector.load %arg2[%c3, %c0_25, %c0_26] : memref<9x4x4xf32, #tpu.memory_space<vmem>>, vector<1x4x4xf32>
    %22 = vector.shape_cast %21 : vector<1x4x4xf32> to vector<4x4xf32>
    %cst_27 = arith.constant dense<0.000000e+00> : vector<256x4xf32>
    %23 = tpu.matmul %20, %22, %cst_27 {dimension_numbers = #tpu.dot_dimension_numbers<[1], [0], [0], [1], [0, 0, 1, 1], [], []>} : vector<256x4xf32>, vector<4x4xf32>, vector<256x4xf32> -> vector<256x4xf32>
    %24 = arith.addf %18, %23 : vector<256x4xf32>
    %c0_28 = arith.constant 0 : index
    %c1_29 = arith.constant 1 : index
    %c1_30 = arith.constant 1 : index
    %c0_31 = arith.constant 0 : index
    %25 = vector.load %arg1[%c0_28, %c1_29, %c1_30, %c0_31] : memref<1x18x18x4xf32, #tpu.memory_space<vmem>>, vector<1x16x16x4xf32>
    %26 = vector.shape_cast %25 : vector<1x16x16x4xf32> to vector<256x4xf32>
    %c4 = arith.constant 4 : index
    %c0_32 = arith.constant 0 : index
    %c0_33 = arith.constant 0 : index
    %27 = vector.load %arg2[%c4, %c0_32, %c0_33] : memref<9x4x4xf32, #tpu.memory_space<vmem>>, vector<1x4x4xf32>
    %28 = vector.shape_cast %27 : vector<1x4x4xf32> to vector<4x4xf32>
    %cst_34 = arith.constant dense<0.000000e+00> : vector<256x4xf32>
    %29 = tpu.matmul %26, %28, %cst_34 {dimension_numbers = #tpu.dot_dimension_numbers<[1], [0], [0], [1], [0, 0, 1, 1], [], []>} : vector<256x4xf32>, vector<4x4xf32>, vector<256x4xf32> -> vector<256x4xf32>
    %30 = arith.addf %24, %29 : vector<256x4xf32>
    %c0_35 = arith.constant 0 : index
    %c1_36 = arith.constant 1 : index
    %c2_37 = arith.constant 2 : index
    %c0_38 = arith.constant 0 : index
    %31 = vector.load %arg1[%c0_35, %c1_36, %c2_37, %c0_38] : memref<1x18x18x4xf32, #tpu.memory_space<vmem>>, vector<1x16x16x4xf32>
    %32 = vector.shape_cast %31 : vector<1x16x16x4xf32> to vector<256x4xf32>
    %c5 = arith.constant 5 : index
    %c0_39 = arith.constant 0 : index
    %c0_40 = arith.constant 0 : index
    %33 = vector.load %arg2[%c5, %c0_39, %c0_40] : memref<9x4x4xf32, #tpu.memory_space<vmem>>, vector<1x4x4xf32>
    %34 = vector.shape_cast %33 : vector<1x4x4xf32> to vector<4x4xf32>
    %cst_41 = arith.constant dense<0.000000e+00> : vector<256x4xf32>
    %35 = tpu.matmul %32, %34, %cst_41 {dimension_numbers = #tpu.dot_dimension_numbers<[1], [0], [0], [1], [0, 0, 1, 1], [], []>} : vector<256x4xf32>, vector<4x4xf32>, vector<256x4xf32> -> vector<256x4xf32>
    %36 = arith.addf %30, %35 : vector<256x4xf32>
    %c0_42 = arith.constant 0 : index
    %c2_43 = arith.constant 2 : index
    %c0_44 = arith.constant 0 : index
    %c0_45 = arith.constant 0 : index
    %37 = vector.load %arg1[%c0_42, %c2_43, %c0_44, %c0_45] : memref<1x18x18x4xf32, #tpu.memory_space<vmem>>, vector<1x16x16x4xf32>
    %38 = vector.shape_cast %37 : vector<1x16x16x4xf32> to vector<256x4xf32>
    %c6 = arith.constant 6 : index
    %c0_46 = arith.constant 0 : index
    %c0_47 = arith.constant 0 : index
    %39 = vector.load %arg2[%c6, %c0_46, %c0_47] : memref<9x4x4xf32, #tpu.memory_space<vmem>>, vector<1x4x4xf32>
    %40 = vector.shape_cast %39 : vector<1x4x4xf32> to vector<4x4xf32>
    %cst_48 = arith.constant dense<0.000000e+00> : vector<256x4xf32>
    %41 = tpu.matmul %38, %40, %cst_48 {dimension_numbers = #tpu.dot_dimension_numbers<[1], [0], [0], [1], [0, 0, 1, 1], [], []>} : vector<256x4xf32>, vector<4x4xf32>, vector<256x4xf32> -> vector<256x4xf32>
    %42 = arith.addf %36, %41 : vector<256x4xf32>
    %c0_49 = arith.constant 0 : index
    %c2_50 = arith.constant 2 : index
    %c1_51 = arith.constant 1 : index
    %c0_52 = arith.constant 0 : index
    %43 = vector.load %arg1[%c0_49, %c2_50, %c1_51, %c0_52] : memref<1x18x18x4xf32, #tpu.memory_space<vmem>>, vector<1x16x16x4xf32>
    %44 = vector.shape_cast %43 : vector<1x16x16x4xf32> to vector<256x4xf32>
    %c7 = arith.constant 7 : index
    %c0_53 = arith.constant 0 : index
    %c0_54 = arith.constant 0 : index
    %45 = vector.load %arg2[%c7, %c0_53, %c0_54] : memref<9x4x4xf32, #tpu.memory_space<vmem>>, vector<1x4x4xf32>
    %46 = vector.shape_cast %45 : vector<1x4x4xf32> to vector<4x4xf32>
    %cst_55 = arith.constant dense<0.000000e+00> : vector<256x4xf32>
    %47 = tpu.matmul %44, %46, %cst_55 {dimension_numbers = #tpu.dot_dimension_numbers<[1], [0], [0], [1], [0, 0, 1, 1], [], []>} : vector<256x4xf32>, vector<4x4xf32>, vector<256x4xf32> -> vector<256x4xf32>
    %48 = arith.addf %42, %47 : vector<256x4xf32>
    %c0_56 = arith.constant 0 : index
    %c2_57 = arith.constant 2 : index
    %c2_58 = arith.constant 2 : index
    %c0_59 = arith.constant 0 : index
    %49 = vector.load %arg1[%c0_56, %c2_57, %c2_58, %c0_59] : memref<1x18x18x4xf32, #tpu.memory_space<vmem>>, vector<1x16x16x4xf32>
    %50 = vector.shape_cast %49 : vector<1x16x16x4xf32> to vector<256x4xf32>
    %c8 = arith.constant 8 : index
    %c0_60 = arith.constant 0 : index
    %c0_61 = arith.constant 0 : index
    %51 = vector.load %arg2[%c8, %c0_60, %c0_61] : memref<9x4x4xf32, #tpu.memory_space<vmem>>, vector<1x4x4xf32>
    %52 = vector.shape_cast %51 : vector<1x4x4xf32> to vector<4x4xf32>
    %cst_62 = arith.constant dense<0.000000e+00> : vector<256x4xf32>
    %53 = tpu.matmul %50, %52, %cst_62 {dimension_numbers = #tpu.dot_dimension_numbers<[1], [0], [0], [1], [0, 0, 1, 1], [], []>} : vector<256x4xf32>, vector<4x4xf32>, vector<256x4xf32> -> vector<256x4xf32>
    %54 = arith.addf %48, %53 : vector<256x4xf32>
    %c0_63 = arith.constant 0 : index
    %c0_64 = arith.constant 0 : index
    %55 = vector.load %arg3[%c0_63, %c0_64] : memref<1x4xf32, #tpu.memory_space<vmem>>, vector<1x4xf32>
    %56 = vector.broadcast %55 : vector<1x4xf32> to vector<256x4xf32>
    %57 = arith.addf %54, %56 : vector<256x4xf32>
    %cst_65 = arith.constant dense<0.000000e+00> : vector<4xf32>
    %58 = vector.multi_reduction <add>, %57, %cst_65 [0] : vector<256x4xf32> to vector<4xf32>
    %59 = vector.shape_cast %58 : vector<4xf32> to vector<1x1x4xf32>
    %c0_66 = arith.constant 0 : index
    %c0_67 = arith.constant 0 : index
    %c0_68 = arith.constant 0 : index
    %60 = vector.load %arg5[%c0_66, %c0_67, %c0_68] : memref<1x2x4xf32, #tpu.memory_space<vmem>>, vector<1x1x4xf32>
    tpu.vector_store %arg5[%c0_66, %c0_67, %c0_68], %59 {strides = array<i32>} : memref<1x2x4xf32, #tpu.memory_space<vmem>>, vector<1x1x4xf32>,
    %61 = arith.mulf %57, %57 : vector<256x4xf32>
    %cst_69 = arith.constant dense<0.000000e+00> : vector<4xf32>
    %62 = vector.multi_reduction <add>, %61, %cst_69 [0] : vector<256x4xf32> to vector<4xf32>
    %63 = vector.shape_cast %62 : vector<4xf32> to vector<1x1x4xf32>
    %c0_70 = arith.constant 0 : index
    %c1_71 = arith.constant 1 : index
    %c0_72 = arith.constant 0 : index
    %64 = vector.load %arg5[%c0_70, %c1_71, %c0_72] : memref<1x2x4xf32, #tpu.memory_space<vmem>>, vector<1x1x4xf32>
    tpu.vector_store %arg5[%c0_70, %c1_71, %c0_72], %63 {strides = array<i32>} : memref<1x2x4xf32, #tpu.memory_space<vmem>>, vector<1x1x4xf32>,
    %65 = vector.shape_cast %57 : vector<256x4xf32> to vector<1x16x16x4xf32>
    %cst_73 = arith.constant 0.000000e+00 : f32
    %66 = vector.broadcast %cst_73 : f32 to vector<1x1x18x4xf32>
    %cst_74 = arith.constant 0.000000e+00 : f32
    %67 = vector.broadcast %cst_74 : f32 to vector<1x18x1x4xf32>
    %c0_75 = arith.constant 0 : index
    %c0_76 = arith.constant 0 : index
    %c0_77 = arith.constant 0 : index
    %c0_78 = arith.constant 0 : index
    %68 = vector.load %arg4[%c0_75, %c0_76, %c0_77, %c0_78] : memref<1x18x18x4xf32, #tpu.memory_space<vmem>>, vector<1x1x18x4xf32>
    tpu.vector_store %arg4[%c0_75, %c0_76, %c0_77, %c0_78], %66 {strides = array<i32>} : memref<1x18x18x4xf32, #tpu.memory_space<vmem>>, vector<1x1x18x4xf32>,
    %c0_79 = arith.constant 0 : index
    %c17 = arith.constant 17 : index
    %c0_80 = arith.constant 0 : index
    %c0_81 = arith.constant 0 : index
    %69 = vector.load %arg4[%c0_79, %c17, %c0_80, %c0_81] : memref<1x18x18x4xf32, #tpu.memory_space<vmem>>, vector<1x1x18x4xf32>
    tpu.vector_store %arg4[%c0_79, %c17, %c0_80, %c0_81], %66 {strides = array<i32>} : memref<1x18x18x4xf32, #tpu.memory_space<vmem>>, vector<1x1x18x4xf32>,
    %c0_82 = arith.constant 0 : index
    %c0_83 = arith.constant 0 : index
    %c0_84 = arith.constant 0 : index
    %c0_85 = arith.constant 0 : index
    %70 = vector.load %arg4[%c0_82, %c0_83, %c0_84, %c0_85] : memref<1x18x18x4xf32, #tpu.memory_space<vmem>>, vector<1x18x1x4xf32>
    tpu.vector_store %arg4[%c0_82, %c0_83, %c0_84, %c0_85], %67 {strides = array<i32>} : memref<1x18x18x4xf32, #tpu.memory_space<vmem>>, vector<1x18x1x4xf32>,
    %c0_86 = arith.constant 0 : index
    %c0_87 = arith.constant 0 : index
    %c17_88 = arith.constant 17 : index
    %c0_89 = arith.constant 0 : index
    %71 = vector.load %arg4[%c0_86, %c0_87, %c17_88, %c0_89] : memref<1x18x18x4xf32, #tpu.memory_space<vmem>>, vector<1x18x1x4xf32>
    tpu.vector_store %arg4[%c0_86, %c0_87, %c17_88, %c0_89], %67 {strides = array<i32>} : memref<1x18x18x4xf32, #tpu.memory_space<vmem>>, vector<1x18x1x4xf32>,
    %c0_90 = arith.constant 0 : index
    %c1_91 = arith.constant 1 : index
    %c1_92 = arith.constant 1 : index
    %c0_93 = arith.constant 0 : index
    %72 = vector.load %arg4[%c0_90, %c1_91, %c1_92, %c0_93] : memref<1x18x18x4xf32, #tpu.memory_space<vmem>>, vector<1x16x16x4xf32>
    tpu.vector_store %arg4[%c0_90, %c1_91, %c1_92, %c0_93], %65 {strides = array<i32>} : memref<1x18x18x4xf32, #tpu.memory_space<vmem>>, vector<1x16x16x4xf32>,
    return
  }
  func.func @transform_0(%arg0: i32) -> (i32, i32, i32, i32) {
    %c0_i32 = arith.constant 0 : i32
    %c0_i32_0 = arith.constant 0 : i32
    %c0_i32_1 = arith.constant 0 : i32
    %c0_i32_2 = arith.constant 0 : i32
    return %arg0, %c0_i32, %c0_i32_0, %c0_i32_1 : i32, i32, i32, i32
  }
  func.func @transform_1(%arg0: i32) -> (i32, i32, i32) {
    %c0_i32 = arith.constant 0 : i32
    %c0_i32_0 = arith.constant 0 : i32
    %c0_i32_1 = arith.constant 0 : i32
    %c0_i32_2 = arith.constant 0 : i32
    return %c0_i32, %c0_i32_0, %c0_i32_1 : i32, i32, i32
  }
  func.func @transform_2(%arg0: i32) -> (i32, i32) {
    %c0_i32 = arith.constant 0 : i32
    %c0_i32_0 = arith.constant 0 : i32
    %c0_i32_1 = arith.constant 0 : i32
    return %c0_i32, %c0_i32_0 : i32, i32
  }
  func.func @transform_3(%arg0: i32) -> (i32, i32, i32, i32) {
    %c0_i32 = arith.constant 0 : i32
    %c0_i32_0 = arith.constant 0 : i32
    %c0_i32_1 = arith.constant 0 : i32
    %c0_i32_2 = arith.constant 0 : i32
    return %arg0, %c0_i32, %c0_i32_0, %c0_i32_1 : i32, i32, i32, i32
  }
  func.func @transform_4(%arg0: i32) -> (i32, i32, i32) {
    %c0_i32 = arith.constant 0 : i32
    %c0_i32_0 = arith.constant 0 : i32
    %c0_i32_1 = arith.constant 0 : i32
    return %arg0, %c0_i32, %c0_i32_0 : i32, i32, i32
  }
}

module attributes {stable_mosaic.version = 11 : i64} {
  func.func @_bn2_add_kernel(%arg0: i32, %arg1: memref<1x16x16x4xf32, #tpu.memory_space<vmem>>, %arg2: memref<1x4xf32, #tpu.memory_space<vmem>>, %arg3: memref<1x4xf32, #tpu.memory_space<vmem>>, %arg4: memref<1x16x16x4xf32, #tpu.memory_space<vmem>>, %arg5: memref<1x16x16x4xf32, #tpu.memory_space<vmem>>) attributes {dimension_semantics = [#tpu.dimension_semantics<parallel>], iteration_bounds = array<i64: 2>, scalar_prefetch = 0 : i64, scratch_operands = 0 : i64, tpu.core_type = #tpu.core_type<tc>, window_params = [{transform_indices = @transform_0, window_bounds = array<i64: 1, 16, 16, 4>}, {pipeline_mode = #tpu.pipeline_mode<synchronous>, transform_indices = @transform_1, window_bounds = array<i64: 1, 4>}, {pipeline_mode = #tpu.pipeline_mode<synchronous>, transform_indices = @transform_2, window_bounds = array<i64: 1, 4>}, {transform_indices = @transform_3, window_bounds = array<i64: 1, 16, 16, 4>}, {transform_indices = @transform_4, window_bounds = array<i64: 1, 16, 16, 4>}]} {
    %c0 = arith.constant 0 : index
    %c0_0 = arith.constant 0 : index
    %c0_1 = arith.constant 0 : index
    %c0_2 = arith.constant 0 : index
    %0 = vector.load %arg1[%c0, %c0_0, %c0_1, %c0_2] : memref<1x16x16x4xf32, #tpu.memory_space<vmem>>, vector<1x16x16x4xf32>
    %c0_3 = arith.constant 0 : index
    %c0_4 = arith.constant 0 : index
    %1 = vector.load %arg2[%c0_3, %c0_4] : memref<1x4xf32, #tpu.memory_space<vmem>>, vector<1x4xf32>
    %2 = vector.shape_cast %1 : vector<1x4xf32> to vector<1x1x1x4xf32>
    %3 = vector.broadcast %2 : vector<1x1x1x4xf32> to vector<1x16x16x4xf32>
    %4 = arith.mulf %0, %3 : vector<1x16x16x4xf32>
    %c0_5 = arith.constant 0 : index
    %c0_6 = arith.constant 0 : index
    %5 = vector.load %arg3[%c0_5, %c0_6] : memref<1x4xf32, #tpu.memory_space<vmem>>, vector<1x4xf32>
    %6 = vector.shape_cast %5 : vector<1x4xf32> to vector<1x1x1x4xf32>
    %7 = vector.broadcast %6 : vector<1x1x1x4xf32> to vector<1x16x16x4xf32>
    %8 = arith.addf %4, %7 : vector<1x16x16x4xf32>
    %c0_7 = arith.constant 0 : index
    %c0_8 = arith.constant 0 : index
    %c0_9 = arith.constant 0 : index
    %c0_10 = arith.constant 0 : index
    %9 = vector.load %arg4[%c0_7, %c0_8, %c0_9, %c0_10] : memref<1x16x16x4xf32, #tpu.memory_space<vmem>>, vector<1x16x16x4xf32>
    %10 = arith.addf %8, %9 : vector<1x16x16x4xf32>
    %cst = arith.constant 0.000000e+00 : f32
    %11 = vector.broadcast %cst : f32 to vector<1x16x16x4xf32>
    %12 = arith.maximumf %10, %11 : vector<1x16x16x4xf32>
    %c0_11 = arith.constant 0 : index
    %c0_12 = arith.constant 0 : index
    %c0_13 = arith.constant 0 : index
    %c0_14 = arith.constant 0 : index
    %13 = vector.load %arg5[%c0_11, %c0_12, %c0_13, %c0_14] : memref<1x16x16x4xf32, #tpu.memory_space<vmem>>, vector<1x16x16x4xf32>
    tpu.vector_store %arg5[%c0_11, %c0_12, %c0_13, %c0_14], %12 {strides = array<i32>} : memref<1x16x16x4xf32, #tpu.memory_space<vmem>>, vector<1x16x16x4xf32>,
    return
  }
  func.func @transform_0(%arg0: i32) -> (i32, i32, i32, i32) {
    %c0_i32 = arith.constant 0 : i32
    %c0_i32_0 = arith.constant 0 : i32
    %c0_i32_1 = arith.constant 0 : i32
    %c0_i32_2 = arith.constant 0 : i32
    return %arg0, %c0_i32, %c0_i32_0, %c0_i32_1 : i32, i32, i32, i32
  }
  func.func @transform_1(%arg0: i32) -> (i32, i32) {
    %c0_i32 = arith.constant 0 : i32
    %c0_i32_0 = arith.constant 0 : i32
    %c0_i32_1 = arith.constant 0 : i32
    return %c0_i32, %c0_i32_0 : i32, i32
  }
  func.func @transform_2(%arg0: i32) -> (i32, i32) {
    %c0_i32 = arith.constant 0 : i32
    %c0_i32_0 = arith.constant 0 : i32
    %c0_i32_1 = arith.constant 0 : i32
    return %c0_i32, %c0_i32_0 : i32, i32
  }
  func.func @transform_3(%arg0: i32) -> (i32, i32, i32, i32) {
    %c0_i32 = arith.constant 0 : i32
    %c0_i32_0 = arith.constant 0 : i32
    %c0_i32_1 = arith.constant 0 : i32
    %c0_i32_2 = arith.constant 0 : i32
    return %arg0, %c0_i32, %c0_i32_0, %c0_i32_1 : i32, i32, i32, i32
  }
  func.func @transform_4(%arg0: i32) -> (i32, i32, i32, i32) {
    %c0_i32 = arith.constant 0 : i32
    %c0_i32_0 = arith.constant 0 : i32
    %c0_i32_1 = arith.constant 0 : i32
    %c0_i32_2 = arith.constant 0 : i32
    return %arg0, %c0_i32, %c0_i32_0, %c0_i32_1 : i32, i32, i32, i32
  }
}

module attributes {stable_mosaic.version = 11 : i64} {
  func.func @_bn1_conv2_kernel(%arg0: i32, %arg1: memref<1x18x18x4xf32, #tpu.memory_space<vmem>>, %arg2: memref<1x4xf32, #tpu.memory_space<vmem>>, %arg3: memref<1x4xf32, #tpu.memory_space<vmem>>, %arg4: memref<9x4x4xf32, #tpu.memory_space<vmem>>, %arg5: memref<1x4xf32, #tpu.memory_space<vmem>>, %arg6: memref<1x16x16x4xf32, #tpu.memory_space<vmem>>, %arg7: memref<1x2x4xf32, #tpu.memory_space<vmem>>) attributes {dimension_semantics = [#tpu.dimension_semantics<parallel>], iteration_bounds = array<i64: 2>, scalar_prefetch = 0 : i64, scratch_operands = 0 : i64, tpu.core_type = #tpu.core_type<tc>, window_params = [{transform_indices = @transform_0, window_bounds = array<i64: 1, 18, 18, 4>}, {pipeline_mode = #tpu.pipeline_mode<synchronous>, transform_indices = @transform_1, window_bounds = array<i64: 1, 4>}, {pipeline_mode = #tpu.pipeline_mode<synchronous>, transform_indices = @transform_2, window_bounds = array<i64: 1, 4>}, {pipeline_mode = #tpu.pipeline_mode<synchronous>, transform_indices = @transform_3, window_bounds = array<i64: 9, 4, 4>}, {pipeline_mode = #tpu.pipeline_mode<synchronous>, transform_indices = @transform_4, window_bounds = array<i64: 1, 4>}, {transform_indices = @transform_5, window_bounds = array<i64: 1, 16, 16, 4>}, {transform_indices = @transform_6, window_bounds = array<i64: 1, 2, 4>}]} {
    %c0 = arith.constant 0 : index
    %c0_0 = arith.constant 0 : index
    %c0_1 = arith.constant 0 : index
    %c0_2 = arith.constant 0 : index
    %0 = vector.load %arg1[%c0, %c0_0, %c0_1, %c0_2] : memref<1x18x18x4xf32, #tpu.memory_space<vmem>>, vector<1x18x18x4xf32>
    %c0_3 = arith.constant 0 : index
    %c0_4 = arith.constant 0 : index
    %1 = vector.load %arg2[%c0_3, %c0_4] : memref<1x4xf32, #tpu.memory_space<vmem>>, vector<1x4xf32>
    %2 = vector.shape_cast %1 : vector<1x4xf32> to vector<1x1x1x4xf32>
    %3 = vector.broadcast %2 : vector<1x1x1x4xf32> to vector<1x18x18x4xf32>
    %4 = arith.mulf %0, %3 : vector<1x18x18x4xf32>
    %c0_5 = arith.constant 0 : index
    %c0_6 = arith.constant 0 : index
    %5 = vector.load %arg3[%c0_5, %c0_6] : memref<1x4xf32, #tpu.memory_space<vmem>>, vector<1x4xf32>
    %6 = vector.shape_cast %5 : vector<1x4xf32> to vector<1x1x1x4xf32>
    %7 = vector.broadcast %6 : vector<1x1x1x4xf32> to vector<1x18x18x4xf32>
    %8 = arith.addf %4, %7 : vector<1x18x18x4xf32>
    %cst = arith.constant 0.000000e+00 : f32
    %9 = vector.broadcast %cst : f32 to vector<1x18x18x4xf32>
    %10 = arith.maximumf %8, %9 : vector<1x18x18x4xf32>
    %11 = tpu.iota {dimensions = array<i32: 1>} : vector<1x18x18x1xi32>
    %12 = tpu.iota {dimensions = array<i32: 2>} : vector<1x18x18x1xi32>
    %c0_i32 = arith.constant 0 : i32
    %13 = vector.broadcast %c0_i32 : i32 to vector<1x18x18x1xi32>
    %14 = arith.cmpi sgt, %11, %13 : vector<1x18x18x1xi32>
    %c17_i32 = arith.constant 17 : i32
    %15 = vector.broadcast %c17_i32 : i32 to vector<1x18x18x1xi32>
    %16 = arith.cmpi slt, %11, %15 : vector<1x18x18x1xi32>
    %17 = arith.andi %14, %16 : vector<1x18x18x1xi1>
    %c0_i32_7 = arith.constant 0 : i32
    %18 = vector.broadcast %c0_i32_7 : i32 to vector<1x18x18x1xi32>
    %19 = arith.cmpi sgt, %12, %18 : vector<1x18x18x1xi32>
    %20 = arith.andi %17, %19 : vector<1x18x18x1xi1>
    %c17_i32_8 = arith.constant 17 : i32
    %21 = vector.broadcast %c17_i32_8 : i32 to vector<1x18x18x1xi32>
    %22 = arith.cmpi slt, %12, %21 : vector<1x18x18x1xi32>
    %23 = arith.andi %20, %22 : vector<1x18x18x1xi1>
    %cst_9 = arith.constant 0.000000e+00 : f32
    %24 = vector.shape_cast %23 : vector<1x18x18x1xi1> to vector<1x18x18x1xi1>
    %25 = vector.broadcast %24 : vector<1x18x18x1xi1> to vector<1x18x18x4xi1>
    %26 = vector.broadcast %cst_9 : f32 to vector<1x18x18x4xf32>
    %27 = arith.select %25, %10, %26 : vector<1x18x18x4xi1>, vector<1x18x18x4xf32>
    %cst_10 = arith.constant 0.000000e+00 : f32
    %28 = vector.broadcast %cst_10 : f32 to vector<256x4xf32>
    %29 = vector.extract_strided_slice %27 {offsets = [0, 0, 0, 0], sizes = [1, 16, 16, 4], strides = [1, 1, 1, 1]} : vector<1x18x18x4xf32> to vector<1x16x16x4xf32>
    %30 = vector.shape_cast %29 : vector<1x16x16x4xf32> to vector<256x4xf32>
    %c0_11 = arith.constant 0 : index
    %c0_12 = arith.constant 0 : index
    %c0_13 = arith.constant 0 : index
    %31 = vector.load %arg4[%c0_11, %c0_12, %c0_13] : memref<9x4x4xf32, #tpu.memory_space<vmem>>, vector<1x4x4xf32>
    %32 = vector.shape_cast %31 : vector<1x4x4xf32> to vector<4x4xf32>
    %cst_14 = arith.constant dense<0.000000e+00> : vector<256x4xf32>
    %33 = tpu.matmul %30, %32, %cst_14 {dimension_numbers = #tpu.dot_dimension_numbers<[1], [0], [0], [1], [0, 0, 1, 1], [], []>} : vector<256x4xf32>, vector<4x4xf32>, vector<256x4xf32> -> vector<256x4xf32>
    %34 = arith.addf %28, %33 : vector<256x4xf32>
    %35 = vector.extract_strided_slice %27 {offsets = [0, 0, 1, 0], sizes = [1, 16, 16, 4], strides = [1, 1, 1, 1]} : vector<1x18x18x4xf32> to vector<1x16x16x4xf32>
    %36 = vector.shape_cast %35 : vector<1x16x16x4xf32> to vector<256x4xf32>
    %c1 = arith.constant 1 : index
    %c0_15 = arith.constant 0 : index
    %c0_16 = arith.constant 0 : index
    %37 = vector.load %arg4[%c1, %c0_15, %c0_16] : memref<9x4x4xf32, #tpu.memory_space<vmem>>, vector<1x4x4xf32>
    %38 = vector.shape_cast %37 : vector<1x4x4xf32> to vector<4x4xf32>
    %cst_17 = arith.constant dense<0.000000e+00> : vector<256x4xf32>
    %39 = tpu.matmul %36, %38, %cst_17 {dimension_numbers = #tpu.dot_dimension_numbers<[1], [0], [0], [1], [0, 0, 1, 1], [], []>} : vector<256x4xf32>, vector<4x4xf32>, vector<256x4xf32> -> vector<256x4xf32>
    %40 = arith.addf %34, %39 : vector<256x4xf32>
    %41 = vector.extract_strided_slice %27 {offsets = [0, 0, 2, 0], sizes = [1, 16, 16, 4], strides = [1, 1, 1, 1]} : vector<1x18x18x4xf32> to vector<1x16x16x4xf32>
    %42 = vector.shape_cast %41 : vector<1x16x16x4xf32> to vector<256x4xf32>
    %c2 = arith.constant 2 : index
    %c0_18 = arith.constant 0 : index
    %c0_19 = arith.constant 0 : index
    %43 = vector.load %arg4[%c2, %c0_18, %c0_19] : memref<9x4x4xf32, #tpu.memory_space<vmem>>, vector<1x4x4xf32>
    %44 = vector.shape_cast %43 : vector<1x4x4xf32> to vector<4x4xf32>
    %cst_20 = arith.constant dense<0.000000e+00> : vector<256x4xf32>
    %45 = tpu.matmul %42, %44, %cst_20 {dimension_numbers = #tpu.dot_dimension_numbers<[1], [0], [0], [1], [0, 0, 1, 1], [], []>} : vector<256x4xf32>, vector<4x4xf32>, vector<256x4xf32> -> vector<256x4xf32>
    %46 = arith.addf %40, %45 : vector<256x4xf32>
    %47 = vector.extract_strided_slice %27 {offsets = [0, 1, 0, 0], sizes = [1, 16, 16, 4], strides = [1, 1, 1, 1]} : vector<1x18x18x4xf32> to vector<1x16x16x4xf32>
    %48 = vector.shape_cast %47 : vector<1x16x16x4xf32> to vector<256x4xf32>
    %c3 = arith.constant 3 : index
    %c0_21 = arith.constant 0 : index
    %c0_22 = arith.constant 0 : index
    %49 = vector.load %arg4[%c3, %c0_21, %c0_22] : memref<9x4x4xf32, #tpu.memory_space<vmem>>, vector<1x4x4xf32>
    %50 = vector.shape_cast %49 : vector<1x4x4xf32> to vector<4x4xf32>
    %cst_23 = arith.constant dense<0.000000e+00> : vector<256x4xf32>
    %51 = tpu.matmul %48, %50, %cst_23 {dimension_numbers = #tpu.dot_dimension_numbers<[1], [0], [0], [1], [0, 0, 1, 1], [], []>} : vector<256x4xf32>, vector<4x4xf32>, vector<256x4xf32> -> vector<256x4xf32>
    %52 = arith.addf %46, %51 : vector<256x4xf32>
    %53 = vector.extract_strided_slice %27 {offsets = [0, 1, 1, 0], sizes = [1, 16, 16, 4], strides = [1, 1, 1, 1]} : vector<1x18x18x4xf32> to vector<1x16x16x4xf32>
    %54 = vector.shape_cast %53 : vector<1x16x16x4xf32> to vector<256x4xf32>
    %c4 = arith.constant 4 : index
    %c0_24 = arith.constant 0 : index
    %c0_25 = arith.constant 0 : index
    %55 = vector.load %arg4[%c4, %c0_24, %c0_25] : memref<9x4x4xf32, #tpu.memory_space<vmem>>, vector<1x4x4xf32>
    %56 = vector.shape_cast %55 : vector<1x4x4xf32> to vector<4x4xf32>
    %cst_26 = arith.constant dense<0.000000e+00> : vector<256x4xf32>
    %57 = tpu.matmul %54, %56, %cst_26 {dimension_numbers = #tpu.dot_dimension_numbers<[1], [0], [0], [1], [0, 0, 1, 1], [], []>} : vector<256x4xf32>, vector<4x4xf32>, vector<256x4xf32> -> vector<256x4xf32>
    %58 = arith.addf %52, %57 : vector<256x4xf32>
    %59 = vector.extract_strided_slice %27 {offsets = [0, 1, 2, 0], sizes = [1, 16, 16, 4], strides = [1, 1, 1, 1]} : vector<1x18x18x4xf32> to vector<1x16x16x4xf32>
    %60 = vector.shape_cast %59 : vector<1x16x16x4xf32> to vector<256x4xf32>
    %c5 = arith.constant 5 : index
    %c0_27 = arith.constant 0 : index
    %c0_28 = arith.constant 0 : index
    %61 = vector.load %arg4[%c5, %c0_27, %c0_28] : memref<9x4x4xf32, #tpu.memory_space<vmem>>, vector<1x4x4xf32>
    %62 = vector.shape_cast %61 : vector<1x4x4xf32> to vector<4x4xf32>
    %cst_29 = arith.constant dense<0.000000e+00> : vector<256x4xf32>
    %63 = tpu.matmul %60, %62, %cst_29 {dimension_numbers = #tpu.dot_dimension_numbers<[1], [0], [0], [1], [0, 0, 1, 1], [], []>} : vector<256x4xf32>, vector<4x4xf32>, vector<256x4xf32> -> vector<256x4xf32>
    %64 = arith.addf %58, %63 : vector<256x4xf32>
    %65 = vector.extract_strided_slice %27 {offsets = [0, 2, 0, 0], sizes = [1, 16, 16, 4], strides = [1, 1, 1, 1]} : vector<1x18x18x4xf32> to vector<1x16x16x4xf32>
    %66 = vector.shape_cast %65 : vector<1x16x16x4xf32> to vector<256x4xf32>
    %c6 = arith.constant 6 : index
    %c0_30 = arith.constant 0 : index
    %c0_31 = arith.constant 0 : index
    %67 = vector.load %arg4[%c6, %c0_30, %c0_31] : memref<9x4x4xf32, #tpu.memory_space<vmem>>, vector<1x4x4xf32>
    %68 = vector.shape_cast %67 : vector<1x4x4xf32> to vector<4x4xf32>
    %cst_32 = arith.constant dense<0.000000e+00> : vector<256x4xf32>
    %69 = tpu.matmul %66, %68, %cst_32 {dimension_numbers = #tpu.dot_dimension_numbers<[1], [0], [0], [1], [0, 0, 1, 1], [], []>} : vector<256x4xf32>, vector<4x4xf32>, vector<256x4xf32> -> vector<256x4xf32>
    %70 = arith.addf %64, %69 : vector<256x4xf32>
    %71 = vector.extract_strided_slice %27 {offsets = [0, 2, 1, 0], sizes = [1, 16, 16, 4], strides = [1, 1, 1, 1]} : vector<1x18x18x4xf32> to vector<1x16x16x4xf32>
    %72 = vector.shape_cast %71 : vector<1x16x16x4xf32> to vector<256x4xf32>
    %c7 = arith.constant 7 : index
    %c0_33 = arith.constant 0 : index
    %c0_34 = arith.constant 0 : index
    %73 = vector.load %arg4[%c7, %c0_33, %c0_34] : memref<9x4x4xf32, #tpu.memory_space<vmem>>, vector<1x4x4xf32>
    %74 = vector.shape_cast %73 : vector<1x4x4xf32> to vector<4x4xf32>
    %cst_35 = arith.constant dense<0.000000e+00> : vector<256x4xf32>
    %75 = tpu.matmul %72, %74, %cst_35 {dimension_numbers = #tpu.dot_dimension_numbers<[1], [0], [0], [1], [0, 0, 1, 1], [], []>} : vector<256x4xf32>, vector<4x4xf32>, vector<256x4xf32> -> vector<256x4xf32>
    %76 = arith.addf %70, %75 : vector<256x4xf32>
    %77 = vector.extract_strided_slice %27 {offsets = [0, 2, 2, 0], sizes = [1, 16, 16, 4], strides = [1, 1, 1, 1]} : vector<1x18x18x4xf32> to vector<1x16x16x4xf32>
    %78 = vector.shape_cast %77 : vector<1x16x16x4xf32> to vector<256x4xf32>
    %c8 = arith.constant 8 : index
    %c0_36 = arith.constant 0 : index
    %c0_37 = arith.constant 0 : index
    %79 = vector.load %arg4[%c8, %c0_36, %c0_37] : memref<9x4x4xf32, #tpu.memory_space<vmem>>, vector<1x4x4xf32>
    %80 = vector.shape_cast %79 : vector<1x4x4xf32> to vector<4x4xf32>
    %cst_38 = arith.constant dense<0.000000e+00> : vector<256x4xf32>
    %81 = tpu.matmul %78, %80, %cst_38 {dimension_numbers = #tpu.dot_dimension_numbers<[1], [0], [0], [1], [0, 0, 1, 1], [], []>} : vector<256x4xf32>, vector<4x4xf32>, vector<256x4xf32> -> vector<256x4xf32>
    %82 = arith.addf %76, %81 : vector<256x4xf32>
    %c0_39 = arith.constant 0 : index
    %c0_40 = arith.constant 0 : index
    %83 = vector.load %arg5[%c0_39, %c0_40] : memref<1x4xf32, #tpu.memory_space<vmem>>, vector<1x4xf32>
    %84 = vector.broadcast %83 : vector<1x4xf32> to vector<256x4xf32>
    %85 = arith.addf %82, %84 : vector<256x4xf32>
    %cst_41 = arith.constant dense<0.000000e+00> : vector<4xf32>
    %86 = vector.multi_reduction <add>, %85, %cst_41 [0] : vector<256x4xf32> to vector<4xf32>
    %87 = vector.shape_cast %86 : vector<4xf32> to vector<1x1x4xf32>
    %c0_42 = arith.constant 0 : index
    %c0_43 = arith.constant 0 : index
    %c0_44 = arith.constant 0 : index
    %88 = vector.load %arg7[%c0_42, %c0_43, %c0_44] : memref<1x2x4xf32, #tpu.memory_space<vmem>>, vector<1x1x4xf32>
    tpu.vector_store %arg7[%c0_42, %c0_43, %c0_44], %87 {strides = array<i32>} : memref<1x2x4xf32, #tpu.memory_space<vmem>>, vector<1x1x4xf32>,
    %89 = arith.mulf %85, %85 : vector<256x4xf32>
    %cst_45 = arith.constant dense<0.000000e+00> : vector<4xf32>
    %90 = vector.multi_reduction <add>, %89, %cst_45 [0] : vector<256x4xf32> to vector<4xf32>
    %91 = vector.shape_cast %90 : vector<4xf32> to vector<1x1x4xf32>
    %c0_46 = arith.constant 0 : index
    %c1_47 = arith.constant 1 : index
    %c0_48 = arith.constant 0 : index
    %92 = vector.load %arg7[%c0_46, %c1_47, %c0_48] : memref<1x2x4xf32, #tpu.memory_space<vmem>>, vector<1x1x4xf32>
    tpu.vector_store %arg7[%c0_46, %c1_47, %c0_48], %91 {strides = array<i32>} : memref<1x2x4xf32, #tpu.memory_space<vmem>>, vector<1x1x4xf32>,
    %93 = vector.shape_cast %85 : vector<256x4xf32> to vector<1x16x16x4xf32>
    %c0_49 = arith.constant 0 : index
    %c0_50 = arith.constant 0 : index
    %c0_51 = arith.constant 0 : index
    %c0_52 = arith.constant 0 : index
    %94 = vector.load %arg6[%c0_49, %c0_50, %c0_51, %c0_52] : memref<1x16x16x4xf32, #tpu.memory_space<vmem>>, vector<1x16x16x4xf32>
    tpu.vector_store %arg6[%c0_49, %c0_50, %c0_51, %c0_52], %93 {strides = array<i32>} : memref<1x16x16x4xf32, #tpu.memory_space<vmem>>, vector<1x16x16x4xf32>,
    return
  }
  func.func @transform_0(%arg0: i32) -> (i32, i32, i32, i32) {
    %c0_i32 = arith.constant 0 : i32
    %c0_i32_0 = arith.constant 0 : i32
    %c0_i32_1 = arith.constant 0 : i32
    %c0_i32_2 = arith.constant 0 : i32
    return %arg0, %c0_i32, %c0_i32_0, %c0_i32_1 : i32, i32, i32, i32
  }
  func.func @transform_1(%arg0: i32) -> (i32, i32) {
    %c0_i32 = arith.constant 0 : i32
    %c0_i32_0 = arith.constant 0 : i32
    %c0_i32_1 = arith.constant 0 : i32
    return %c0_i32, %c0_i32_0 : i32, i32
  }
  func.func @transform_2(%arg0: i32) -> (i32, i32) {
    %c0_i32 = arith.constant 0 : i32
    %c0_i32_0 = arith.constant 0 : i32
    %c0_i32_1 = arith.constant 0 : i32
    return %c0_i32, %c0_i32_0 : i32, i32
  }
  func.func @transform_3(%arg0: i32) -> (i32, i32, i32) {
    %c0_i32 = arith.constant 0 : i32
    %c0_i32_0 = arith.constant 0 : i32
    %c0_i32_1 = arith.constant 0 : i32
    %c0_i32_2 = arith.constant 0 : i32
    return %c0_i32, %c0_i32_0, %c0_i32_1 : i32, i32, i32
  }
  func.func @transform_4(%arg0: i32) -> (i32, i32) {
    %c0_i32 = arith.constant 0 : i32
    %c0_i32_0 = arith.constant 0 : i32
    %c0_i32_1 = arith.constant 0 : i32
    return %c0_i32, %c0_i32_0 : i32, i32
  }
  func.func @transform_5(%arg0: i32) -> (i32, i32, i32, i32) {
    %c0_i32 = arith.constant 0 : i32
    %c0_i32_0 = arith.constant 0 : i32
    %c0_i32_1 = arith.constant 0 : i32
    %c0_i32_2 = arith.constant 0 : i32
    return %arg0, %c0_i32, %c0_i32_0, %c0_i32_1 : i32, i32, i32, i32
  }
  func.func @transform_6(%arg0: i32) -> (i32, i32, i32) {
    %c0_i32 = arith.constant 0 : i32
    %c0_i32_0 = arith.constant 0 : i32
    %c0_i32_1 = arith.constant 0 : i32
    return %arg0, %c0_i32, %c0_i32_0 : i32, i32, i32
  }
}

</mosaic_0001>

<bundles_post_ra>
// kernel: residual_forward.5
= control target key start
LH: loop header
LB: loop body
LE: loop exit
PB: predicated region body
PF: predicated region fallthrough
CT: control target
= control target key end

     0   :  { %s1473_s0 = inlined_call_operand.hbm [shape: f32[2,16,16,4], index: 0, kind: input, shape index: {}]   ;;  %s1474_s1 = inlined_call_operand.hbm [shape: f32[1,4], index: 1, kind: input, shape index: {}]   ;;  %s1475_s2 = inlined_call_operand.hbm [shape: f32[1,4], index: 2, kind: input, shape index: {}]   ;;  %s1476_s3 = inlined_call_operand.hbm [shape: f32[2,16,16,4], index: 3, kind: input, shape index: {}]   ;;  %s1477_s4 = inlined_call_operand.hbm [shape: f32[2,16,16,4], index: 4, kind: output, shape index: {}]  }
   0x1   :  { %1483 = sst [smem:[#allocation15_spill]] %s1473_s0 }
   0x2   :  { %9 = vsyncpa [#allocation3], 0 }
   0x3   :  { %11 = vsyncpa [#allocation3 + $0x1], 0 }
   0x4   :  { %12 = vsyncpa [#allocation6], 0 }
   0x5   :  { %13 = vsyncpa [#allocation9], 0 }
   0x6   :  { %15 = vsyncpa [#allocation9 + $0x1], 0 }
   0x7   :  { %16 = vsyncpa [#allocation4], 0 }
   0x8   :  { %18 = vsyncpa [#allocation4 + $0x1], 0  ;;  %s978_s15 = smov 0   ;;  %s980_s16 = smov 0  }
   0x9   :  { %s982_s17 = smov 0   ;;  %s984_s18 = smov 0  }
   0xa LB: > { %s999_s19 = sadd.s32 4294967295, %s942_s18   ;;  %s649_s20 = sadd.s32 4294967294, %s942_s18   ;;  %s942_s18 = sphi %s984_s18, %s1504_s18   ;;  %s938_s17 = sphi %s982_s17, %s1503_s17   ;;  %s934_s16 = sphi %s980_s16, %s1502_s16   ;;  %s930_s15 = sphi %s978_s15, %s1501_s15  }
   0xb   : > { %s1003_s21 = sadd.s32 1, %s942_s18   ;;  %s31_s22 = sadd.s32 1, %s938_s17 }
   0xc   : > { %s28_s23 = ssub.s32 %s942_s18, %s1003_s21  ;;  %p38_p0 = scmp.ne.s32.totalorder %s938_s17, %s934_s16 }
   0xd   : > { %p29_p1 = scmp.eq.s32.totalorder %s28_s23, 0  ;;  %p39_p2 = scmp.eq.s32.totalorder %s942_s18, 0 }
   0xe   : > { %p44_p3 = scmp.ne.s32.totalorder %s934_s16, %s930_s15  ;;  %p1478_p4 = scmp.eq.s32.totalorder %s999_s19, 0 }
   0xf   : > { %s1015_s24 = scalar_select %p29_p1, %s938_s17, %s31_s22  }
  0x10   : > { %p1017_p5 = por %p39_p2, %p38_p0  ;;  %p1023_p6 = por %p1478_p4, %p44_p3 }
  0x11   : > { %p136_p7 = scmp.eq.s32.totalorder %s999_s19, 1  ;;  %p142_p8 = scmp.eq.s32.totalorder %s649_s20, 1 }
  0x12   : > { %s1485_s26 = scalar_select %p1023_p6, 1, 0 }
  0x13   : > { %p650_p9 = scmp.ge.s32.totalorder %s942_s18, 1  ;;  %p149_p10 = scmp.lt.s32.totalorder %s942_s18, 3 }
  0x14   : > { %p1030_p11 = por %p136_p7, %p38_p0  ;;  %p1034_p12 = por %p142_p8, %p44_p3 }
  0x15   : > { %p1038_p13 = pnand %p650_p9, %p149_p10  ;;  %s944_s30 = smov [#allocation5]  }
  0x16   : > { %s1486_s27 = scalar_select %p1030_p11, 1, 0 }
  0x17   : > { %s1487_s28 = scalar_select %p1034_p12, 1, 0 }
  0x18   : > { %s1488_s29 = scalar_select %p1038_p13, 1, 0 }
  0x19   : > { %p690_p2 = pneg %p1038_p13  ;;  %s162_s5 = sshll.u32 %s944_s30, 4  ;;  %s163_s5 = int_to_ptr.vmem [resolvable:$true] %s162_s5 }
  0x1a   : > { %p710_p4 = scmp.lt.s32.totalorder %s942_s18, 2  ;;  %p1489_p0 = scmp.eq.s32.totalorder %s999_s19, 0 }
  0x1b   : > { %s945_s8 = smov [#allocation7]   ;;  %s752_s12 = scalar_lea.hbm %s1474_s1, 16 }
  0x1c   : > { %p1048_p7 = pnand %p690_p2, %p1489_p0  ;;  %p1054_p3 = pnand %p710_p4, %p1017_p5 }
  0x1d   : > { %s173_s9 = sshll.u32 %s945_s8, 4  ;;  %p753_p8 = scmp.ne.s32.totalorder %s1474_s1, %s752_s12  ;;  %s1058_s9 = int_to_ptr.vmem [resolvable:$true] %s173_s9 }
  0x1e   : > { %s1491_s7 = scalar_select %p1054_p3, 1, 0 }
  0x1f   : > { %p754_p9 = pneg %p1048_p7  ;;  %p759_p10 = scmp.lt.u32.totalorder %s752_s12, %s1474_s1 }
  0x21   : > { %p755_p4 = pnand %p754_p9, %p753_p8 }
  0x23   : > { %p756_p5 = pneg %p755_p4 }
  0x25   : > { %p761_p2 = pnand %p759_p10, %p756_p5 }
  0x27   : > { %764 = shalt.err (!%p761_p2)
}
  0x28   : > { %s765_s23 = scalar_lea.vmem %s163_s5, 16  ;;  %s772_s25 = scalar_lea.vmem %s163_s5, 32 }
  0x29   : > { %p766_p0 = scmp.ne.s32.totalorder %s163_s5, %s765_s23  ;;  %p773_p11 = scmp.lt.s32.totalorder %s163_s5, %s163_s5 }
  0x2a   : > { %p774_p6 = scmp.lt.s32.totalorder %s772_s25, %s765_s23 }
  0x2b   : > { %p768_p1 = pnand %p766_p0, %p754_p9 }
  0x2c   : > { %p775_p13 = por %p774_p6, %p773_p11 }
  0x2d   : > { %p769_p12 = pneg %p768_p1 }
  0x2f   : > { %p776_p3 = pnand %p775_p13, %p769_p12 }
  0x31   : > { %779 = shalt.err (!%p776_p3)
}
  0x32   : > { %693 = dma.hbm_to_vmem [thread:$0]  (!%p1048_p7), %s1474_s1, 16, %s163_s5, [#allocation6]  }
  0x33   : > { %s1083_s10 = sand.u32 1, %s938_s17   ;;  %s780_s13 = scalar_lea.hbm %s1475_s2, 16 }
  0x34   : > { %p781_p6 = scmp.ne.s32.totalorder %s1475_s2, %s780_s13  ;;  %p787_p13 = scmp.lt.u32.totalorder %s780_s13, %s1475_s2 }
  0x36   : > { %p783_p11 = pnand %p781_p6, %p754_p9 }
  0x38   : > { %p784_p12 = pneg %p783_p11 }
  0x3a   : > { %p789_p1 = pnand %p787_p13, %p784_p12 }
  0x3c   : > { %792 = shalt.err (!%p789_p1)
}
  0x3d   : > { %s793_s5 = scalar_lea.vmem %s1058_s9, 16  ;;  %s800_s25 = scalar_lea.vmem %s1058_s9, 32 }
  0x3e   : > { %p794_p3 = scmp.ne.s32.totalorder %s1058_s9, %s793_s5  ;;  %p801_p5 = scmp.lt.s32.totalorder %s1058_s9, %s1058_s9 }
  0x3f   : > { %p802_p10 = scmp.lt.s32.totalorder %s800_s25, %s793_s5 }
  0x40   : > { %p796_p8 = pnand %p794_p3, %p754_p9 }
  0x41   : > { %p803_p2 = por %p802_p10, %p801_p5 }
  0x42   : > { %p797_p4 = pneg %p796_p8 }
  0x44   : > { %p804_p0 = pnand %p803_p2, %p797_p4 }
  0x46   : > { %807 = shalt.err (!%p804_p0)
}
  0x47   : > { %696 = dma.hbm_to_vmem [thread:$0]  (!%p1048_p7), %s1475_s2, 16, %s1058_s9, [#allocation6]  }
  0x48   : > { %s654_s11 = sshll.u32 %s1083_s10, 8  ;;  %s673_s12 = sshll.u32 %s942_s18, 12 }
  0x49   : > { %s1492_s0 = sld [smem:[#allocation15_spill]]  ;;  %s188_s6 = scalar_lea.vmem [#allocation2], %s654_s11 }
  0x4a   : > { %s195_s22 = sshll.u32 %s188_s6, 4  ;;  %s185_s23 = scalar_lea.sflag [#allocation3], %s1083_s10  ;;  %s1122_s22 = int_to_ptr.vmem [resolvable:$true] %s195_s22 }
  0x4b   : > { %p1493_p9 = scmp.ne.s32.totalorder %s1491_s7, 0 }
  0x4d   : > { %p810_p6 = pneg %p1493_p9 }
  0x4f   : > { %s1118_s20 = scalar_lea.hbm %s1492_s0, %s673_s12  ;;  %s813_s30 = scalar_lea.hbm %s1492_s0, 8192 }
  0x50   : > { %s808_s5 = scalar_lea.hbm %s1118_s20, 4096  ;;  %p814_p13 = scmp.lt.u32.totalorder %s1118_s20, %s1492_s0 }
  0x51   : > { %p809_p7 = scmp.ne.s32.totalorder %s1118_s20, %s808_s5  ;;  %p815_p1 = scmp.lt.u32.totalorder %s813_s30, %s808_s5 }
  0x52   : > { %p817_p8 = scmp.lt.u32.totalorder %s808_s5, %s1118_s20 }
  0x53   : > { %p811_p11 = pnand %p810_p6, %p809_p7  ;;  %p816_p3 = por %p815_p1, %p814_p13 }
  0x55   : > { %p812_p12 = pneg %p811_p11  ;;  %p818_p4 = por %p817_p8, %p816_p3 }
  0x57   : > { %p819_p5 = pnand %p818_p4, %p812_p12 }
  0x59   : > { %822 = shalt.err (!%p819_p5)
}
  0x5a   : > { %s823_s14 = scalar_lea.vmem %s1122_s22, 4096  ;;  %s946_s6 = smov [#allocation2]  }
  0x5b   : > { %p824_p10 = scmp.ne.s32.totalorder %s1122_s22, %s823_s14  ;;  %s828_s9 = sshll.u32 %s946_s6, 4  ;;  %s829_s9 = int_to_ptr.vmem [resolvable:$false] %s828_s9 }
  0x5c   : > { %s830_s25 = scalar_lea.vmem %s829_s9, 8192  ;;  %p831_p7 = scmp.lt.s32.totalorder %s1122_s22, %s829_s9 }
  0x5d   : > { %p826_p2 = pnand %p824_p10, %p810_p6  ;;  %p832_p11 = scmp.lt.s32.totalorder %s830_s25, %s823_s14 }
  0x5f   : > { %p827_p0 = pneg %p826_p2  ;;  %p833_p13 = por %p832_p11, %p831_p7 }
  0x61   : > { %p834_p1 = pnand %p833_p13, %p827_p0 }
  0x63   : > { %837 = shalt.err (!%p834_p1)
}
  0x64   : > { %s947_s5 = smov 128   ;;  %s948_s30 = smov 8  }
  0x65   : > { %700 = dma.hbm_to_vmem [thread:$0]  (!%p1493_p9), %s1118_s20, 4096, %s1122_s22, %s185_s23, %s947_s5, %s947_s5, %s948_s30  }
  0x66   : > { %s1160_s14 = scalar_lea.hbm %s1476_s3, %s673_s12  ;;  %s209_s6 = scalar_lea.vmem [#allocation8], %s654_s11 }
  0x67   : > { %s216_s9 = sshll.u32 %s209_s6, 4  ;;  %s206_s25 = scalar_lea.sflag [#allocation9], %s1083_s10  ;;  %s1164_s9 = int_to_ptr.vmem [resolvable:$true] %s216_s9 }
  0x68   : > { %s838_s0 = scalar_lea.hbm %s1160_s14, 4096  ;;  %s843_s12 = scalar_lea.hbm %s1476_s3, 8192 }
  0x69   : > { %p839_p12 = scmp.ne.s32.totalorder %s1160_s14, %s838_s0  ;;  %p844_p4 = scmp.lt.u32.totalorder %s1160_s14, %s1476_s3 }
  0x6a   : > { %p845_p5 = scmp.lt.u32.totalorder %s843_s12, %s838_s0  ;;  %p847_p2 = scmp.lt.u32.totalorder %s838_s0, %s1160_s14 }
  0x6b   : > { %p841_p3 = pnand %p839_p12, %p810_p6 }
  0x6c   : > { %p846_p10 = por %p845_p5, %p844_p4 }
  0x6d   : > { %p842_p8 = pneg %p841_p3 }
  0x6e   : > { %p848_p0 = por %p847_p2, %p846_p10 }
  0x70   : > { %p849_p7 = pnand %p848_p0, %p842_p8 }
  0x72   : > { %852 = shalt.err (!%p849_p7)
}
  0x73   : > { %s853_s11 = scalar_lea.vmem %s1164_s9, 4096  ;;  %s949_s13 = smov [#allocation8]  }
  0x74   : > { %p854_p11 = scmp.ne.s32.totalorder %s1164_s9, %s853_s11  ;;  %s858_s6 = sshll.u32 %s949_s13, 4  ;;  %s859_s6 = int_to_ptr.vmem [resolvable:$false] %s858_s6 }
  0x75   : > { %s860_s20 = scalar_lea.vmem %s859_s6, 8192  ;;  %p861_p12 = scmp.lt.s32.totalorder %s1164_s9, %s859_s6 }
  0x76   : > { %p856_p13 = pnand %p854_p11, %p810_p6  ;;  %p862_p3 = scmp.lt.s32.totalorder %s860_s20, %s853_s11 }
  0x78   : > { %p857_p1 = pneg %p856_p13  ;;  %p863_p4 = por %p862_p3, %p861_p12 }
  0x7a   : > { %p864_p5 = pnand %p863_p4, %p857_p1 }
  0x7c   : > { %867 = shalt.err (!%p864_p5)
}
  0x7d   : > { %703 = dma.hbm_to_vmem [thread:$0]  (!%p1493_p9), %s1160_s14, 4096, %s1164_s9, %s206_s25, %s947_s5, %s947_s5, %s948_s30  }
  0x7e   : > { %p1494_p6 = scmp.ne.s32.totalorder %s1488_s29, 0 }
  0x7f   : > { %s1198_s0 = sand.u32 (!%p1494_p6), 1, %s934_s16   ;;  %p1495_p8 = scmp.ne.s32.totalorder (!%p1494_p6), %s1485_s26, 0 }
  0x80   : > { %228 = sbr.rel (%p1494_p6) target bundleno = 196 (0xc4), region = 36  ;;  %s1201_s22 = sshll.u32 (!%p1494_p6), %s1198_s0, 8 }
  0x81   : > { %s231_s7 = scalar_lea.sflag (!%p1494_p6), [#allocation3], %s1198_s0  ;;  %s1205_s12 = scalar_lea.vmem (!%p1494_p6), [#allocation2], %s1201_s22 }
  0x87   : > { %913 = dma.done.wait (%p1495_p8), %s231_s7, 4096  }
  0x88   : > { %915 = vsyncadd (%p1495_p8), %s231_s7, 4294963200  ;;  %p1496_p9 = scmp.eq.s32.totalorder %s999_s19, 0 }
  0x8a   : > { %917 = dma.done.wait (%p1496_p9), [#allocation6], 32   ;;  %p1497_p10 = pmov %p1496_p9 }
  0x8b   : > { %s248_s29 = scalar_lea.sflag [#allocation9], %s1198_s0  ;;  %s1217_s10 = scalar_lea.vmem [#allocation8], %s1201_s22 }
  0x8c   : > { %919 = vsyncadd (%p1497_p10), [#allocation6], 4294967264 }
  0x8d   : > { %921 = dma.done.wait (%p1495_p8), %s248_s29, 4096  }
  0x8e   : > { %923 = vsyncadd (%p1495_p8), %s248_s29, 4294963200  ;;  %v281_v0 = vld [vmem:[%s1205_s12] sm:$0xff]  ;;  %v282_v4 = vld [vmem:[%s1205_s12 + $0x8] sm:$0xff]  ;;  %vm487_vm0 = vcmask 31744   ;;  %s1264_s26 = scalar_lea.vmem [#allocation10], %s1201_s22  ;;  %s675_s5 = sshll.u32 %s999_s19, 12 }
  0x8f   : > { %v1224_v1 = vld [vmem:[#allocation5] ss:$0 sm:$0xff]  ;;  %v1226_v2 = vld [vmem:[#allocation7] ss:$0 sm:$0xff]  ;;  %v391_v5 = vld [vmem:[%s1217_s10] sm:$0xff]  ;;  %s534_s30 = sshll.u32 %s1264_s26, 4  ;;  %s1419_s9 = scalar_lea.hbm %s1477_s4, %s675_s5  ;;  %s1421_s30 = int_to_ptr.vmem [resolvable:$true] %s534_s30 }
  0x90   : > { %v320_v3 = vmul.f32 %v1224_v1, %v281_v0  ;;  %v321_v6 = vmul.f32 %v1224_v1, %v282_v4  ;;  %v283_v7 = vld [vmem:[%s1205_s12 + $0x10] sm:$0xff]  ;;  %v284_v8 = vld [vmem:[%s1205_s12 + $0x18] sm:$0xff]  ;;  %v285_v14 = vld [vmem:[%s1205_s12 + $0x20] sm:$0xff]  ;;  %s521_s25 = scalar_lea.sflag [#allocation4], %s1198_s0  ;;  %s868_s23 = scalar_lea.vmem %s1421_s30, 4096 }
  0x91   : > { %v392_v10 = vld [vmem:[%s1217_s10 + $0x8] sm:$0xff]  ;;  %v322_v11 = vmul.f32 %v1224_v1, %v283_v7  ;;  %v393_v12 = vld [vmem:[%s1217_s10 + $0x10] sm:$0xff]  ;;  %v323_v13 = vmul.f32 %v1224_v1, %v284_v8  ;;  %v394_v16 = vld [vmem:[%s1217_s10 + $0x18] sm:$0xff]  ;;  %v324_v17 = vmul.f32 %v1224_v1, %v285_v14  ;;  %p869_p2 = scmp.ne.s32.totalorder %s1421_s30, %s868_s23  ;;  %p1498_p0 = scmp.ne.s32.totalorder %s1486_s27, 0 }
  0x92   : > { %v359_v9 = vadd.f32 %v1226_v2, %v320_v3  ;;  %v360_v15 = vadd.f32 %v1226_v2, %v321_v6  ;;  %v286_v18 = vld [vmem:[%s1205_s12 + $0x28] sm:$0xff]  ;;  %v287_v19 = vld [vmem:[%s1205_s12 + $0x30] sm:$0xff]  ;;  %v288_v25 = vld [vmem:[%s1205_s12 + $0x38] sm:$0xff]  ;;  %s950_s8 = smov [#allocation10]  }
  0x93   : > { %v361_v21 = vadd.f32 %v1226_v2, %v322_v11  ;;  %v362_v22 = vadd.f32 %v1226_v2, %v323_v13  ;;  %v395_v23 = vld [vmem:[%s1217_s10 + $0x20] sm:$0xff]  ;;  %v325_v24 = vmul.f32 %v1224_v1, %v286_v18  ;;  %v363_v27 = vadd.f32 %v1226_v2, %v324_v17  ;;  %v396_v28 = vld [vmem:[%s1217_s10 + $0x28] sm:$0xff]  ;;  %v397_v36 = vld [vmem:[%s1217_s10 + $0x30] sm:$0xff]  ;;  %p870_p7 = pnand %p869_p2, %p1498_p0  ;;  %s872_s11 = sshll.u32 %s950_s8, 4  ;;  %s873_s11 = int_to_ptr.vmem [resolvable:$false] %s872_s11 }
  0x94   : > { %v423_v20 = vadd.f32 %v391_v5, %v359_v9  ;;  %v424_v26 = vadd.f32 %v392_v10, %v360_v15  ;;  %v326_v29 = vmul.f32 %v1224_v1, %v287_v19  ;;  %v327_v30 = vmul.f32 %v1224_v1, %v288_v25  ;;  %v289_v31 = vld [vmem:[%s1205_s12 + $0x40] sm:$0xff]  ;;  %v290_v38 = vld [vmem:[%s1205_s12 + $0x48] sm:$0xff]  ;;  %v291_v43 = vld [vmem:[%s1205_s12 + $0x50] sm:$0xff]  ;;  %s874_s13 = scalar_lea.vmem %s873_s11, 8192  ;;  %p875_p13 = scmp.lt.s32.totalorder %s1421_s30, %s873_s11 }
  0x95   : > { %v425_v33 = vadd.f32 %v393_v12, %v361_v21  ;;  %v426_v34 = vadd.f32 %v394_v16, %v362_v22  ;;  %v364_v35 = vadd.f32 %v1226_v2, %v325_v24  ;;  %v398_v37 = vld [vmem:[%s1217_s10 + $0x38] sm:$0xff]  ;;  %v427_v40 = vadd.f32 %v395_v23, %v363_v27  ;;  %v399_v53 = vld [vmem:[%s1217_s10 + $0x40] sm:$0xff]  ;;  %v400_v58 = vld [vmem:[%s1217_s10 + $0x48] sm:$0xff]  ;;  %p871_p11 = pneg %p870_p7  ;;  %p876_p1 = scmp.lt.s32.totalorder %s874_s13, %s868_s23 }
  0x96   : > { %v455_v32 = vmax.f32 %v423_v20, 0.0  ;;  %v456_v39 = vmax.f32 %v424_v26, 0.0  ;;  %v365_v41 = vadd.f32 %v1226_v2, %v326_v29  ;;  %v366_v42 = vadd.f32 %v1226_v2, %v327_v30  ;;  %v292_v44 = vld [vmem:[%s1205_s12 + $0x58] sm:$0xff]  ;;  %v293_v49 = vld [vmem:[%s1205_s12 + $0x60] sm:$0xff]  ;;  %v294_v55 = vld [vmem:[%s1205_s12 + $0x68] sm:$0xff] }
  0x97   : > { %v457_v45 = vmax.f32 %v425_v33, 0.0  ;;  %v458_v46 = vmax.f32 %v426_v34, 0.0  ;;  %v428_v47 = vadd.f32 %v396_v28, %v364_v35  ;;  %v328_v48 = vmul.f32 %v1224_v1, %v289_v31  ;;  %v295_v61 = vld [vmem:[%s1205_s12 + $0x70] sm:$0xff]  ;;  %v296_v62 = vld [vmem:[%s1205_s12 + $0x78] sm:$0xff]  ;;  %v403_v10 = vld [vmem:[%s1217_s10 + $0x60] sm:$0xff]  ;;  %p877_p12 = por %p876_p1, %p875_p13 }
  0x98   : > { %488 = vst.msk [vmem:[%s1264_s26] sm:$0xff] %vm487_vm0, %v455_v32  ;;  %489 = vst.msk [vmem:[%s1264_s26 + $0x8] sm:$0xff] %vm487_vm0, %v456_v39  ;;  %v459_v50 = vmax.f32 %v427_v40, 0.0  ;;  %v429_v51 = vadd.f32 %v397_v36, %v365_v41  ;;  %v430_v52 = vadd.f32 %v398_v37, %v366_v42  ;;  %v329_v54 = vmul.f32 %v1224_v1, %v290_v38  ;;  %v401_v4 = vld [vmem:[%s1217_s10 + $0x50] sm:$0xff]  ;;  %v402_v5 = vld [vmem:[%s1217_s10 + $0x58] sm:$0xff] }
  0x99   : > { %490 = vst.msk [vmem:[%s1264_s26 + $0x10] sm:$0xff] %vm487_vm0, %v457_v45  ;;  %491 = vst.msk [vmem:[%s1264_s26 + $0x18] sm:$0xff] %vm487_vm0, %v458_v46  ;;  %v460_v56 = vmax.f32 %v428_v47, 0.0  ;;  %v367_v57 = vadd.f32 %v1226_v2, %v328_v48  ;;  %v330_v59 = vmul.f32 %v1224_v1, %v291_v43  ;;  %v331_v60 = vmul.f32 %v1224_v1, %v292_v44  ;;  %v404_v14 = vld [vmem:[%s1217_s10 + $0x68] sm:$0xff]  ;;  %v297_v17 = vld [vmem:[%s1205_s12 + $0x80] sm:$0xff]  ;;  %p878_p3 = pnand %p877_p12, %p871_p11 }
  0x9a   : > { %492 = vst.msk [vmem:[%s1264_s26 + $0x20] sm:$0xff] %vm487_vm0, %v459_v50  ;;  %v461_v63 = vmax.f32 %v429_v51, 0.0  ;;  %v462_v0 = vmax.f32 %v430_v52, 0.0  ;;  %v368_v3 = vadd.f32 %v1226_v2, %v329_v54  ;;  %v332_v6 = vmul.f32 %v1224_v1, %v293_v49  ;;  %v405_v22 = vld [vmem:[%s1217_s10 + $0x70] sm:$0xff]  ;;  %v406_v23 = vld [vmem:[%s1217_s10 + $0x78] sm:$0xff]  ;;  %v298_v24 = vld [vmem:[%s1205_s12 + $0x88] sm:$0xff] }
  0x9b   : > { %493 = vst.msk [vmem:[%s1264_s26 + $0x28] sm:$0xff] %vm487_vm0, %v460_v56  ;;  %v431_v7 = vadd.f32 %v399_v53, %v367_v57  ;;  %v369_v8 = vadd.f32 %v1226_v2, %v330_v59  ;;  %v370_v9 = vadd.f32 %v1226_v2, %v331_v60  ;;  %v333_v11 = vmul.f32 %v1224_v1, %v294_v55  ;;  %v299_v29 = vld [vmem:[%s1205_s12 + $0x90] sm:$0xff]  ;;  %v300_v30 = vld [vmem:[%s1205_s12 + $0x98] sm:$0xff]  ;;  %v301_v35 = vld [vmem:[%s1205_s12 + $0xa0] sm:$0xff] }
  0x9c   : > { %494 = vst.msk [vmem:[%s1264_s26 + $0x30] sm:$0xff] %vm487_vm0, %v461_v63  ;;  %495 = vst.msk [vmem:[%s1264_s26 + $0x38] sm:$0xff] %vm487_vm0, %v462_v0  ;;  %v432_v12 = vadd.f32 %v400_v58, %v368_v3  ;;  %v371_v13 = vadd.f32 %v1226_v2, %v332_v6  ;;  %v334_v15 = vmul.f32 %v1224_v1, %v295_v61  ;;  %v407_v39 = vld [vmem:[%s1217_s10 + $0x80] sm:$0xff]  ;;  %v408_v44 = vld [vmem:[%s1217_s10 + $0x88] sm:$0xff] }
  0x9d   : > { %v335_v16 = vmul.f32 %v1224_v1, %v296_v62  ;;  %v463_v18 = vmax.f32 %v431_v7, 0.0  ;;  %v433_v19 = vadd.f32 %v401_v4, %v369_v8  ;;  %v434_v20 = vadd.f32 %v402_v5, %v370_v9  ;;  %v302_v41 = vld [vmem:[%s1205_s12 + $0xa8] sm:$0xff]  ;;  %v303_v47 = vld [vmem:[%s1205_s12 + $0xb0] sm:$0xff]  ;;  %v304_v48 = vld [vmem:[%s1205_s12 + $0xb8] sm:$0xff] }
  0x9e   : > { %v372_v21 = vadd.f32 %v1226_v2, %v333_v11  ;;  %v464_v25 = vmax.f32 %v432_v12, 0.0  ;;  %v435_v26 = vadd.f32 %v403_v10, %v371_v13  ;;  %v373_v27 = vadd.f32 %v1226_v2, %v334_v15  ;;  %v409_v52 = vld [vmem:[%s1217_s10 + $0x90] sm:$0xff]  ;;  %v410_v53 = vld [vmem:[%s1217_s10 + $0x98] sm:$0xff]  ;;  %v411_v58 = vld [vmem:[%s1217_s10 + $0xa0] sm:$0xff] }
  0x9f   : > { %v374_v28 = vadd.f32 %v1226_v2, %v335_v16  ;;  %496 = vst.msk [vmem:[%s1264_s26 + $0x40] sm:$0xff] %vm487_vm0, %v463_v18  ;;  %v465_v31 = vmax.f32 %v433_v19, 0.0  ;;  %v466_v32 = vmax.f32 %v434_v20, 0.0  ;;  %v336_v34 = vmul.f32 %v1224_v1, %v297_v17  ;;  %v412_v62 = vld [vmem:[%s1217_s10 + $0xa8] sm:$0xff]  ;;  %v305_v3 = vld [vmem:[%s1205_s12 + $0xc0] sm:$0xff]  ;;  %v413_v8 = vld [vmem:[%s1217_s10 + $0xb0] sm:$0xff] }
  0xa0   : > { %v436_v33 = vadd.f32 %v404_v14, %v372_v21  ;;  %497 = vst.msk [vmem:[%s1264_s26 + $0x48] sm:$0xff] %vm487_vm0, %v464_v25  ;;  %v467_v36 = vmax.f32 %v435_v26, 0.0  ;;  %v437_v37 = vadd.f32 %v405_v22, %v373_v27  ;;  %v337_v40 = vmul.f32 %v1224_v1, %v298_v24  ;;  %v414_v9 = vld [vmem:[%s1217_s10 + $0xb8] sm:$0xff]  ;;  %v306_v10 = vld [vmem:[%s1205_s12 + $0xc8] sm:$0xff]  ;;  %v307_v15 = vld [vmem:[%s1205_s12 + $0xd0] sm:$0xff] }
  0xa1   : > { %v438_v38 = vadd.f32 %v406_v23, %v374_v28  ;;  %498 = vst.msk [vmem:[%s1264_s26 + $0x50] sm:$0xff] %vm487_vm0, %v465_v31  ;;  %499 = vst.msk [vmem:[%s1264_s26 + $0x58] sm:$0xff] %vm487_vm0, %v466_v32  ;;  %v375_v43 = vadd.f32 %v1226_v2, %v336_v34  ;;  %v338_v45 = vmul.f32 %v1224_v1, %v299_v29  ;;  %v308_v16 = vld [vmem:[%s1205_s12 + $0xd8] sm:$0xff]  ;;  %v309_v21 = vld [vmem:[%s1205_s12 + $0xe0] sm:$0xff] }
  0xa2   : > { %v468_v42 = vmax.f32 %v436_v33, 0.0  ;;  %v339_v46 = vmul.f32 %v1224_v1, %v300_v30  ;;  %500 = vst.msk [vmem:[%s1264_s26 + $0x60] sm:$0xff] %vm487_vm0, %v467_v36  ;;  %v469_v49 = vmax.f32 %v437_v37, 0.0  ;;  %v376_v51 = vadd.f32 %v1226_v2, %v337_v40  ;;  %v415_v25 = vld [vmem:[%s1217_s10 + $0xc0] sm:$0xff]  ;;  %v416_v30 = vld [vmem:[%s1217_s10 + $0xc8] sm:$0xff]  ;;  %v312_v34 = vld [vmem:[%s1205_s12 + $0xf8] sm:$0xff] }
  0xa3   : > { %v470_v50 = vmax.f32 %v438_v38, 0.0  ;;  %v340_v54 = vmul.f32 %v1224_v1, %v301_v35  ;;  %v439_v55 = vadd.f32 %v407_v39, %v375_v43  ;;  %v377_v56 = vadd.f32 %v1226_v2, %v338_v45  ;;  %v310_v27 = vld [vmem:[%s1205_s12 + $0xe8] sm:$0xff]  ;;  %v311_v33 = vld [vmem:[%s1205_s12 + $0xf0] sm:$0xff]  ;;  %v418_v39 = vld [vmem:[%s1217_s10 + $0xd8] sm:$0xff] }
  0xa4   : > { %501 = vst.msk [vmem:[%s1264_s26 + $0x68] sm:$0xff] %vm487_vm0, %v468_v42  ;;  %v378_v57 = vadd.f32 %v1226_v2, %v339_v46  ;;  %v341_v59 = vmul.f32 %v1224_v1, %v302_v41  ;;  %502 = vst.msk [vmem:[%s1264_s26 + $0x70] sm:$0xff] %vm487_vm0, %v469_v49  ;;  %v440_v60 = vadd.f32 %v408_v44, %v376_v51  ;;  %v417_v38 = vld [vmem:[%s1217_s10 + $0xd0] sm:$0xff]  ;;  %v419_v44 = vld [vmem:[%s1217_s10 + $0xe0] sm:$0xff] }
  0xa5   : > { %503 = vst.msk [vmem:[%s1264_s26 + $0x78] sm:$0xff] %vm487_vm0, %v470_v50  ;;  %v379_v61 = vadd.f32 %v1226_v2, %v340_v54  ;;  %v342_v63 = vmul.f32 %v1224_v1, %v303_v47  ;;  %v343_v0 = vmul.f32 %v1224_v1, %v304_v48  ;;  %v471_v4 = vmax.f32 %v439_v55, 0.0  ;;  %v420_v48 = vld [vmem:[%s1217_s10 + $0xe8] sm:$0xff]  ;;  %v421_v55 = vld [vmem:[%s1217_s10 + $0xf0] sm:$0xff] }
  0xa6   : > { %v441_v5 = vadd.f32 %v409_v52, %v377_v56  ;;  %v442_v6 = vadd.f32 %v410_v53, %v378_v57  ;;  %v380_v7 = vadd.f32 %v1226_v2, %v341_v59  ;;  %v472_v11 = vmax.f32 %v440_v60, 0.0  ;;  %v422_v56 = vld [vmem:[%s1217_s10 + $0xf8] sm:$0xff] }
  0xa7   : > { %v443_v12 = vadd.f32 %v411_v58, %v379_v61  ;;  %v381_v13 = vadd.f32 %v1226_v2, %v342_v63  ;;  %v382_v14 = vadd.f32 %v1226_v2, %v343_v0  ;;  %504 = vst.msk [vmem:[%s1264_s26 + $0x80] sm:$0xff] %vm487_vm0, %v471_v4  ;;  %v344_v20 = vmul.f32 %v1224_v1, %v305_v3 }
  0xa8   : > { %v473_v17 = vmax.f32 %v441_v5, 0.0  ;;  %v474_v18 = vmax.f32 %v442_v6, 0.0  ;;  %v444_v19 = vadd.f32 %v412_v62, %v380_v7  ;;  %505 = vst.msk [vmem:[%s1264_s26 + $0x88] sm:$0xff] %vm487_vm0, %v472_v11  ;;  %v345_v26 = vmul.f32 %v1224_v1, %v306_v10 }
  0xa9   : > { %v475_v22 = vmax.f32 %v443_v12, 0.0  ;;  %v445_v23 = vadd.f32 %v413_v8, %v381_v13  ;;  %v446_v24 = vadd.f32 %v414_v9, %v382_v14  ;;  %v383_v29 = vadd.f32 %v1226_v2, %v344_v20 }
  0xaa   : > { %506 = vst.msk [vmem:[%s1264_s26 + $0x90] sm:$0xff] %vm487_vm0, %v473_v17  ;;  %507 = vst.msk [vmem:[%s1264_s26 + $0x98] sm:$0xff] %vm487_vm0, %v474_v18  ;;  %v476_v28 = vmax.f32 %v444_v19, 0.0  ;;  %v346_v31 = vmul.f32 %v1224_v1, %v307_v15  ;;  %v347_v32 = vmul.f32 %v1224_v1, %v308_v16  ;;  %v384_v37 = vadd.f32 %v1226_v2, %v345_v26 }
  0xab   : > { %508 = vst.msk [vmem:[%s1264_s26 + $0xa0] sm:$0xff] %vm487_vm0, %v475_v22  ;;  %v477_v35 = vmax.f32 %v445_v23, 0.0  ;;  %v478_v36 = vmax.f32 %v446_v24, 0.0  ;;  %v348_v40 = vmul.f32 %v1224_v1, %v309_v21  ;;  %v447_v41 = vadd.f32 %v415_v25, %v383_v29 }
  0xac   : > { %509 = vst.msk [vmem:[%s1264_s26 + $0xa8] sm:$0xff] %vm487_vm0, %v476_v28  ;;  %v385_v42 = vadd.f32 %v1226_v2, %v346_v31  ;;  %v386_v43 = vadd.f32 %v1226_v2, %v347_v32  ;;  %v349_v45 = vmul.f32 %v1224_v1, %v310_v27  ;;  %v448_v46 = vadd.f32 %v416_v30, %v384_v37 }
  0xad   : > { %510 = vst.msk [vmem:[%s1264_s26 + $0xb0] sm:$0xff] %vm487_vm0, %v477_v35  ;;  %511 = vst.msk [vmem:[%s1264_s26 + $0xb8] sm:$0xff] %vm487_vm0, %v478_v36  ;;  %v387_v47 = vadd.f32 %v1226_v2, %v348_v40  ;;  %v350_v49 = vmul.f32 %v1224_v1, %v311_v33  ;;  %v351_v50 = vmul.f32 %v1224_v1, %v312_v34  ;;  %v479_v51 = vmax.f32 %v447_v41, 0.0 }
  0xae   : > { %v449_v52 = vadd.f32 %v417_v38, %v385_v42  ;;  %v450_v53 = vadd.f32 %v418_v39, %v386_v43  ;;  %v388_v54 = vadd.f32 %v1226_v2, %v349_v45  ;;  %v480_v57 = vmax.f32 %v448_v46, 0.0 }
  0xaf   : > { %v451_v58 = vadd.f32 %v419_v44, %v387_v47  ;;  %v389_v59 = vadd.f32 %v1226_v2, %v350_v49  ;;  %v390_v60 = vadd.f32 %v1226_v2, %v351_v50  ;;  %512 = vst.msk [vmem:[%s1264_s26 + $0xc0] sm:$0xff] %vm487_vm0, %v479_v51 }
  0xb0   : > { %v481_v1 = vmax.f32 %v449_v52, 0.0  ;;  %v482_v61 = vmax.f32 %v450_v53, 0.0  ;;  %v452_v62 = vadd.f32 %v420_v48, %v388_v54  ;;  %513 = vst.msk [vmem:[%s1264_s26 + $0xc8] sm:$0xff] %vm487_vm0, %v480_v57 }
  0xb1   : > { %v483_v63 = vmax.f32 %v451_v58, 0.0  ;;  %v453_v0 = vadd.f32 %v421_v55, %v389_v59  ;;  %v454_v3 = vadd.f32 %v422_v56, %v390_v60 }
  0xb2   : > { %514 = vst.msk [vmem:[%s1264_s26 + $0xd0] sm:$0xff] %vm487_vm0, %v481_v1  ;;  %515 = vst.msk [vmem:[%s1264_s26 + $0xd8] sm:$0xff] %vm487_vm0, %v482_v61  ;;  %v484_v2 = vmax.f32 %v452_v62, 0.0 }
  0xb3   : > { %516 = vst.msk [vmem:[%s1264_s26 + $0xe0] sm:$0xff] %vm487_vm0, %v483_v63  ;;  %v485_v4 = vmax.f32 %v453_v0, 0.0  ;;  %v486_v5 = vmax.f32 %v454_v3, 0.0 }
  0xb4   : > { %517 = vst.msk [vmem:[%s1264_s26 + $0xe8] sm:$0xff] %vm487_vm0, %v484_v2 }
  0xb5   : > { %518 = vst.msk [vmem:[%s1264_s26 + $0xf0] sm:$0xff] %vm487_vm0, %v485_v4  ;;  %519 = vst.msk [vmem:[%s1264_s26 + $0xf8] sm:$0xff] %vm487_vm0, %v486_v5 }
  0xb6   : > { %881 = shalt.err (!%p878_p3)
}
  0xb7   : > { %s882_s6 = scalar_lea.hbm %s1419_s9, 4096  ;;  %s886_s7 = scalar_lea.hbm %s1477_s4, 8192 }
  0xb8   : > { %p883_p4 = scmp.ne.s32.totalorder %s1419_s9, %s882_s6  ;;  %p887_p8 = scmp.lt.u32.totalorder %s1419_s9, %s1477_s4 }
  0xb9   : > { %p888_p9 = scmp.lt.u32.totalorder %s886_s7, %s882_s6  ;;  %p890_p2 = scmp.lt.u32.totalorder %s882_s6, %s1419_s9 }
  0xba   : > { %p884_p5 = pnand %p883_p4, %p1498_p0 }
  0xbb   : > { %p889_p10 = por %p888_p9, %p887_p8 }
  0xbc   : > { %p885_p6 = pneg %p884_p5 }
  0xbd   : > { %p891_p7 = por %p890_p2, %p889_p10 }
  0xbf   : > { %p892_p11 = pnand %p891_p7, %p885_p6 }
  0xc1   : > { %895 = shalt.err (!%p892_p11)
}
  0xc2   : > { %s951_s10 = smov 128   ;;  %s952_s26 = smov 8  }
  0xc3   : > { %688 = dma.vmem_to_hbm [thread:$0]  (%p1498_p0), %s1421_s30, 4096, %s1419_s9, %s521_s25, %s951_s10, %s951_s10, %s952_s26  }
  0xc4 PF: > { %s549_s5 = sand.u32 1, %s930_s15   ;;  %p1499_p13 = scmp.ne.s32.totalorder %s1487_s28, 0 }
  0xc5   : > { %p1500_p1 = scmp.ge.s32.totalorder %s942_s18, 2  ;;  %s550_s19 = scalar_lea.sflag [#allocation4], %s549_s5 }
  0xc7   : > { %p705_p12 = pnand %p1500_p1, %p1499_p13 }
  0xc9   : > { %925 = dma.done.wait (!%p705_p12), %s550_s19, 4096  }
  0xca   : > { %927 = vsyncadd (!%p705_p12), %s550_s19, 4294963200  ;;  %p21_p3 = scmp.ge.s32.totalorder %s1003_s21, 4   ;;  %s1501_s15 = smov %s934_s16 }
  0xcb   : > { %s1502_s16 = smov %s938_s17  ;;  %s1503_s17 = smov %s1015_s24 }
  0xcc   : > { %s1504_s18 = smov %s1003_s21  ;;  %23 = sbr.rel (!%p21_p3) target bundleno = 10 (0xa), region = 102 }
  0xd3   :  { %555 = vsyncpa [#allocation3], 1 }
  0xd4   :  { %557 = vsyncpa [#allocation3 + $0x1], 1 }
  0xd5   :  { %558 = vsyncpa [#allocation6], 1 }
  0xd6   :  { %559 = vsyncpa [#allocation9], 1 }
  0xd7   :  { %561 = vsyncpa [#allocation9 + $0x1], 1 }
  0xd8   :  { %562 = vsyncpa [#allocation4], 1 }
  0xd9   :  { %564 = vsyncpa [#allocation4 + $0x1], 1 }

// kernel: residual_forward.4
= control target key start
LH: loop header
LB: loop body
LE: loop exit
PB: predicated region body
PF: predicated region fallthrough
CT: control target
= control target key end

     0   :  { %12 = vsyncpa [#allocation3], 0  ;;  %s7259_s0 = inlined_call_operand.hbm [shape: f32[2,18,18,4], index: 0, kind: input, shape index: {}]   ;;  %s7260_s1 = inlined_call_operand.hbm [shape: f32[1,4], index: 1, kind: input, shape index: {}]   ;;  %s7261_s2 = inlined_call_operand.hbm [shape: f32[1,4], index: 2, kind: input, shape index: {}]   ;;  %s7262_s3 = inlined_call_operand.hbm [shape: f32[9,4,4], index: 3, kind: input, shape index: {}]   ;;  %s7263_s4 = inlined_call_operand.hbm [shape: f32[1,4], index: 4, kind: input, shape index: {}]   ;;  %s7264_s5 = inlined_call_operand.hbm [shape: f32[2,16,16,4], index: 5, kind: output, shape index: {0}]   ;;  %s7265_s6 = inlined_call_operand.hbm [shape: f32[2,2,4], index: 6, kind: output, shape index: {1}]  }
   0x1   :  { %14 = vsyncpa [#allocation3 + $0x1], 0 }
   0x2   :  { %15 = vsyncpa [#allocation6], 0 }
   0x3   :  { %16 = vsyncpa [#allocation9], 0 }
   0x4   :  { %17 = vsyncpa [#allocation4], 0 }
   0x5   :  { %19 = vsyncpa [#allocation4 + $0x1], 0 }
   0x6   :  { %20 = vsyncpa [#allocation13], 0 }
   0x7   :  { %22 = vsyncpa [#allocation13 + $0x1], 0  ;;  %s5543_s21 = smov 0   ;;  %s5545_s22 = smov 0  }
   0x8   :  { %s5547_s23 = smov 0   ;;  %s5549_s24 = smov 0  }
   0x9 LB: > { %s5564_s25 = sadd.s32 4294967295, %s5492_s24   ;;  %s3817_s26 = sadd.s32 4294967294, %s5492_s24   ;;  %s5492_s24 = sphi %s5549_s24, %s7467_s24   ;;  %s5488_s23 = sphi %s5547_s23, %s7466_s23   ;;  %s5484_s22 = sphi %s5545_s22, %s7465_s22   ;;  %s5480_s21 = sphi %s5543_s21, %s7464_s21  }
   0xa   : > { %p48_p0 = scmp.ne.s32.totalorder %s5484_s22, %s5480_s21  ;;  %p7266_p1 = scmp.eq.s32.totalorder %s5564_s25, 0 }
   0xb   : > { %p162_p3 = scmp.eq.s32.totalorder %s3817_s26, 1  ;;  %p3818_p5 = scmp.ge.s32.totalorder %s5492_s24, 1 }
   0xc   : > { %p5573_p4 = por %p7266_p1, %p48_p0  ;;  %p195_p7 = scmp.lt.s32.totalorder %s5492_s24, 3 }
   0xd   : > { %p5578_p6 = por %p162_p3, %p48_p0  ;;  %s5494_s30 = smov [#allocation5]  }
   0xe   : > { %s7347_s27 = scalar_select %p5573_p4, 1, 0 }
   0xf   : > { %s7348_s28 = scalar_select %p5578_p6, 1, 0 }
  0x10   : > { %p5583_p8 = pnand %p3818_p5, %p195_p7  ;;  %s208_s7 = sshll.u32 %s5494_s30, 4  ;;  %s209_s7 = int_to_ptr.vmem [resolvable:$true] %s208_s7 }
  0x11   : > { %s5495_s8 = smov [#allocation8]   ;;  %s5496_s11 = smov [#allocation7]  }
  0x12   : > { %s7349_s29 = scalar_select %p5583_p8, 1, 0 }
  0x13   : > { %p5166_p10 = pneg %p5583_p8  ;;  %s229_s9 = sshll.u32 %s5495_s8, 4  ;;  %s5596_s9 = int_to_ptr.vmem [resolvable:$true] %s229_s9 }
  0x14   : > { %s5598_s12 = sshll.u32 %s5496_s11, 4  ;;  %s5244_s15 = scalar_lea.hbm %s7260_s1, 16  ;;  %s220_s12 = int_to_ptr.vmem [resolvable:$true] %s5598_s12 }
  0x15   : > { %p5592_p11 = pnand %p5166_p10, %p7266_p1  ;;  %p5245_p12 = scmp.ne.s32.totalorder %s7260_s1, %s5244_s15 }
  0x16   : > { %p5251_p5 = scmp.lt.u32.totalorder %s5244_s15, %s7260_s1 }
  0x17   : > { %p5608_p13 = pneg %p5592_p11 }
  0x19   : > { %p5247_p0 = pnand %p5608_p13, %p5245_p12 }
  0x1b   : > { %p5248_p3 = pneg %p5247_p0 }
  0x1d   : > { %p5253_p7 = pnand %p5251_p5, %p5248_p3 }
  0x1f   : > { %5256 = shalt.err (!%p5253_p7)
}
  0x20   : > { %s5257_s26 = scalar_lea.vmem %s209_s7, 16  ;;  %s5264_s30 = scalar_lea.vmem %s209_s7, 32 }
  0x21   : > { %p5258_p10 = scmp.ne.s32.totalorder %s209_s7, %s5257_s26  ;;  %p5265_p2 = scmp.lt.s32.totalorder %s209_s7, %s209_s7 }
  0x22   : > { %p5266_p6 = scmp.lt.s32.totalorder %s5264_s30, %s5257_s26 }
  0x23   : > { %p5260_p9 = pnand %p5258_p10, %p5608_p13 }
  0x24   : > { %p5267_p4 = por %p5266_p6, %p5265_p2 }
  0x25   : > { %p5261_p1 = pneg %p5260_p9 }
  0x27   : > { %p5268_p8 = pnand %p5267_p4, %p5261_p1 }
  0x29   : > { %5271 = shalt.err (!%p5268_p8)
}
  0x2a   : > { %5169 = dma.hbm_to_vmem [thread:$0]  (!%p5592_p11), %s7260_s1, 16, %s209_s7, [#allocation6]  }
  0x2b   : > { %s5272_s15 = scalar_lea.hbm %s7262_s3, 576 }
  0x2c   : > { %p5273_p9 = scmp.ne.s32.totalorder %s7262_s3, %s5272_s15  ;;  %p5279_p1 = scmp.lt.u32.totalorder %s5272_s15, %s7262_s3 }
  0x2e   : > { %p5275_p12 = pnand %p5273_p9, %p5608_p13 }
  0x30   : > { %p5276_p2 = pneg %p5275_p12 }
  0x32   : > { %p5281_p4 = pnand %p5279_p1, %p5276_p2 }
  0x34   : > { %5284 = shalt.err (!%p5281_p4)
}
  0x35   : > { %s5285_s7 = scalar_lea.vmem %s5596_s9, 576  ;;  %p5293_p3 = scmp.lt.s32.totalorder %s5596_s9, %s5596_s9 }
  0x36   : > { %p5286_p6 = scmp.ne.s32.totalorder %s5596_s9, %s5285_s7  ;;  %p5294_p5 = scmp.lt.s32.totalorder %s5285_s7, %s5285_s7 }
  0x38   : > { %p5288_p8 = pnand %p5286_p6, %p5608_p13  ;;  %p5295_p7 = por %p5294_p5, %p5293_p3 }
  0x3a   : > { %p5289_p0 = pneg %p5288_p8 }
  0x3c   : > { %p5296_p10 = pnand %p5295_p7, %p5289_p0 }
  0x3e   : > { %5299 = shalt.err (!%p5296_p10)
}
  0x3f   : > { %s5497_s26 = smov 64   ;;  %s5498_s30 = smov 4  }
  0x40   : > { %5175 = dma.hbm_to_vmem [thread:$0]  (!%p5592_p11), %s7262_s3, 576, %s5596_s9, [#allocation9], %s5497_s26, %s5497_s26, %s5498_s30  }
  0x41   : > { %s5300_s15 = scalar_lea.hbm %s7261_s2, 16 }
  0x42   : > { %p5301_p9 = scmp.ne.s32.totalorder %s7261_s2, %s5300_s15  ;;  %p5307_p1 = scmp.lt.u32.totalorder %s5300_s15, %s7261_s2 }
  0x44   : > { %p5303_p12 = pnand %p5301_p9, %p5608_p13 }
  0x46   : > { %p5304_p2 = pneg %p5303_p12 }
  0x48   : > { %p5309_p4 = pnand %p5307_p1, %p5304_p2 }
  0x4a   : > { %5312 = shalt.err (!%p5309_p4)
}
  0x4b   : > { %s5313_s7 = scalar_lea.vmem %s220_s12, 16  ;;  %s5320_s9 = scalar_lea.vmem %s220_s12, 32 }
  0x4c   : > { %p5314_p6 = scmp.ne.s32.totalorder %s220_s12, %s5313_s7  ;;  %p5321_p3 = scmp.lt.s32.totalorder %s220_s12, %s220_s12 }
  0x4d   : > { %p5322_p5 = scmp.lt.s32.totalorder %s5320_s9, %s5313_s7 }
  0x4e   : > { %p5316_p8 = pnand %p5314_p6, %p5608_p13 }
  0x4f   : > { %p5323_p7 = por %p5322_p5, %p5321_p3 }
  0x50   : > { %p5317_p0 = pneg %p5316_p8 }
  0x52   : > { %p5324_p10 = pnand %p5323_p7, %p5317_p0 }
  0x54   : > { %5327 = shalt.err (!%p5324_p10)
}
  0x55   : > { %5172 = dma.hbm_to_vmem [thread:$0]  (!%p5592_p11), %s7261_s2, 16, %s220_s12, [#allocation6]  }
  0x56   : > { %s5499_s8 = smov [#allocation10]   ;;  %s5328_s15 = scalar_lea.hbm %s7263_s4, 16 }
  0x57   : > { %s243_s11 = sshll.u32 %s5499_s8, 4  ;;  %p5329_p9 = scmp.ne.s32.totalorder %s7263_s4, %s5328_s15  ;;  %s244_s11 = int_to_ptr.vmem [resolvable:$true] %s243_s11 }
  0x58   : > { %p5335_p1 = scmp.lt.u32.totalorder %s5328_s15, %s7263_s4 }
  0x59   : > { %p5331_p12 = pnand %p5329_p9, %p5608_p13 }
  0x5b   : > { %p5332_p2 = pneg %p5331_p12 }
  0x5d   : > { %p5337_p4 = pnand %p5335_p1, %p5332_p2 }
  0x5f   : > { %5340 = shalt.err (!%p5337_p4)
}
  0x60   : > { %s5341_s12 = scalar_lea.vmem %s244_s11, 16  ;;  %s5348_s7 = scalar_lea.vmem %s244_s11, 32 }
  0x61   : > { %p5342_p6 = scmp.ne.s32.totalorder %s244_s11, %s5341_s12  ;;  %p5349_p3 = scmp.lt.s32.totalorder %s244_s11, %s244_s11 }
  0x62   : > { %p5350_p5 = scmp.lt.s32.totalorder %s5348_s7, %s5341_s12 }
  0x63   : > { %p5344_p8 = pnand %p5342_p6, %p5608_p13 }
  0x64   : > { %p5351_p7 = por %p5350_p5, %p5349_p3 }
  0x65   : > { %p5345_p0 = pneg %p5344_p8 }
  0x67   : > { %p5352_p10 = pnand %p5351_p7, %p5345_p0 }
  0x69   : > { %5355 = shalt.err (!%p5352_p10)
}
  0x6a   : > { %5178 = dma.hbm_to_vmem [thread:$0]  (!%p5592_p11), %s7263_s4, 16, %s244_s11, [#allocation9]  }
  0x6b   : > { %s5685_s18 = sadd.s32 1, %s5492_s24   ;;  %s35_s30 = sadd.s32 1, %s5488_s23 }
  0x6c   : > { %s32_s10 = ssub.s32 %s5492_s24, %s5685_s18  ;;  %p42_p13 = scmp.ne.s32.totalorder %s5488_s23, %s5484_s22 }
  0x6d   : > { %p33_p9 = scmp.eq.s32.totalorder %s32_s10, 0  ;;  %p43_p12 = scmp.eq.s32.totalorder %s5492_s24, 0 }
  0x6e   : > { %p7352_p2 = scmp.eq.s32.totalorder %s5564_s25, 1  ;;  %p5194_p4 = scmp.lt.s32.totalorder %s5492_s24, 2 }
  0x6f   : > { %s5701_s13 = scalar_select %p33_p9, %s5488_s23, %s35_s30  }
  0x70   : > { %p5695_p1 = por %p7352_p2, %p42_p13  ;;  %p44_p6 = por %p43_p12, %p42_p13 }
  0x71   : > { %s254_s14 = sand.u32 1, %s5488_s23   ;;  %s5142_s11 = smul.u32 6912, %s5492_s24 }
  0x72   : > { %s5141_s15 = smul.u32 432, %s254_s14  ;;  %p5705_p11 = pnand %p5194_p4, %p44_p6 }
  0x73   : > { %s5712_s20 = scalar_lea.hbm %s7259_s0, %s5142_s11  ;;  %s5716_s9 = scalar_lea.sflag [#allocation3], %s254_s14 }
  0x74   : > { %s258_s12 = scalar_lea.vmem [#allocation2], %s5141_s15  ;;  %s5356_s26 = scalar_lea.hbm %s5712_s20, 6912 }
  0x75   : > { %s265_s7 = sshll.u32 %s258_s12, 4  ;;  %p5357_p8 = scmp.ne.s32.totalorder %s5712_s20, %s5356_s26  ;;  %s5714_s7 = int_to_ptr.vmem [resolvable:$true] %s265_s7 }
  0x76   : > { %p5358_p0 = pneg %p5705_p11  ;;  %s5361_s11 = scalar_lea.hbm %s7259_s0, 13824 }
  0x77   : > { %p5362_p7 = scmp.lt.u32.totalorder %s5712_s20, %s7259_s0  ;;  %p5363_p10 = scmp.lt.u32.totalorder %s5361_s11, %s5356_s26 }
  0x78   : > { %p5359_p3 = pnand %p5358_p0, %p5357_p8  ;;  %p5365_p9 = scmp.lt.u32.totalorder %s5356_s26, %s5712_s20 }
  0x79   : > { %p5364_p13 = por %p5363_p10, %p5362_p7 }
  0x7a   : > { %p5360_p5 = pneg %p5359_p3 }
  0x7b   : > { %p5366_p12 = por %p5365_p9, %p5364_p13 }
  0x7d   : > { %p5367_p2 = pnand %p5366_p12, %p5360_p5 }
  0x7f   : > { %5370 = shalt.err (!%p5367_p2)
}
  0x80   : > { %s5371_s14 = scalar_lea.vmem %s5714_s7, 6912  ;;  %s5500_s15 = smov [#allocation2]  }
  0x81   : > { %p5372_p4 = scmp.ne.s32.totalorder %s5714_s7, %s5371_s14  ;;  %s5376_s12 = sshll.u32 %s5500_s15, 4  ;;  %s5377_s12 = int_to_ptr.vmem [resolvable:$false] %s5376_s12 }
  0x82   : > { %s5378_s30 = scalar_lea.vmem %s5377_s12, 13824  ;;  %p5379_p3 = scmp.lt.s32.totalorder %s5714_s7, %s5377_s12 }
  0x83   : > { %p5374_p6 = pnand %p5372_p4, %p5358_p0  ;;  %p5380_p7 = scmp.lt.s32.totalorder %s5378_s30, %s5371_s14 }
  0x85   : > { %p5375_p8 = pneg %p5374_p6  ;;  %p5381_p10 = por %p5380_p7, %p5379_p3 }
  0x87   : > { %p5382_p13 = pnand %p5381_p10, %p5375_p8 }
  0x89   : > { %5385 = shalt.err (!%p5382_p13)
}
  0x8a   : > { %s5501_s26 = smov 128   ;;  %s5502_s10 = smov 8  }
  0x8b   : > { %5182 = dma.hbm_to_vmem [thread:$0]  (!%p5705_p11), %s5712_s20, 6912, %s5714_s7, %s5716_s9, %s5501_s26, %s5501_s26, %s5502_s10  }
  0x8c   : > { %p7355_p0 = scmp.ne.s32.totalorder %s7349_s29, 0 }
  0x8e   : > { %277 = sbr.rel (%p7355_p0) target bundleno = 727 (0x2d7), region = 40 }
  0x95   : > { %s5747_s11 = sand.u32 1, %s5484_s22   ;;  %p7356_p5 = scmp.ne.s32.totalorder %s7347_s27, 0 }
  0x96   : > { %s5143_s17 = smul.u32 432, %s5747_s11  ;;  %s280_s19 = scalar_lea.sflag [#allocation3], %s5747_s11 }
  0x98   : > { %s5751_s14 = scalar_lea.vmem [#allocation2], %s5143_s17 }
  0x99   : > { %5459 = dma.done.wait (%p7356_p5), %s280_s19, 6912  }
  0x9a   : > { %5461 = vsyncadd (%p7356_p5), %s280_s19, 4294960384  ;;  %p7357_p11 = scmp.eq.s32.totalorder %s5564_s25, 0 }
  0x9c   : > { %5463 = dma.done.wait (%p7357_p11), [#allocation6], 32   ;;  %p7358_p9 = pmov %p7357_p11 }
  0x9e   : > { %5465 = vsyncadd (%p7358_p9), [#allocation6], 4294967264  ;;  %p7359_p12 = pmov %p7358_p9 }
  0x9f   : > { %p7360_p2 = pmov %p7358_p9 }
  0xa0   : > { %5467 = dma.done.wait (%p7359_p12), [#allocation9], 592  }
  0xa1   : > { %5469 = vsyncadd (%p7360_p2), [#allocation9], 4294966704  ;;  %vm783_vm0 = vcmask 31744   ;;  %v563_v0 = vlaneseq  ;;  %v7269_v1 = vmov 0.0   ;;  %vm848_vm1 = vcmask 1043456   ;;  %v336_v6 = vld [vmem:[%s5751_s14 + $0x18] sm:$0xff] }
  0xa2   : > { %v5766_v2 = vrot.slane %v7269_v1, 1  ;;  %v782_v4 = vld [vmem:[#allocation8 + $0x4] sm:$0xf]  ;;  %v2051_v5 = vld [vmem:[#allocation8 + $0x10] sm:$0xf]  ;;  %vm700_vm3 = vcmask 1046528  }
  0xa3   : > { %v5770_v3 = vshrl.u32 %v563_v0, 7  ;;  %4433 = vmatprep.subr.msk.mxu1 %vm848_vm1, %v782_v4  ;;  %4633 = vmatprep.subr.msk.mxu0 %vm848_vm1, %v2051_v5  ;;  %v337_v8 = vld [vmem:[%s5751_s14 + $0x20] sm:$0xff]  ;;  %v5787_v14 = vld [vmem:[#allocation8 + $0x14] sm:$0xf]  ;;  %v339_v17 = vld [vmem:[%s5751_s14 + $0x30] sm:$0xff]  ;;  %vm1369_vm5 = vcmask 1045504  }
  0xa4   : > { %7361 = vst [vmem:[#allocation19_spill] sm:$0xff] %v5766_v2  ;;  %4435 = vmatprep.mubr.msk.f32.mxu1 %vm783_vm0, %v5766_v2  ;;  %v5779_v9 = vld [vmem:[#allocation5] ss:$0 sm:$0xff]  ;;  %v5781_v10 = vld [vmem:[#allocation7] ss:$0 sm:$0xff]  ;;  %4434 = vmatpush3.msk.msra.mxu1 %vm848_vm1, %v782_v4  ;;  %v340_v18 = vld [vmem:[%s5751_s14 + $0x38] sm:$0xff] }
  0xa5   : > { %v5774_v7 = vadd.s32 16, %v5770_v3  ;;  %4634 = vmatpush3.msk.msra.mxu0 %vm848_vm1, %v2051_v5  ;;  %v397_v11 = vmul.f32 %v5779_v9, %v336_v6  ;;  %v398_v12 = vmul.f32 %v5779_v9, %v337_v8  ;;  %v651_v13 = vld [vmem:[#allocation8] sm:$0xf]  ;;  %v338_v15 = vld [vmem:[%s5751_s14 + $0x28] sm:$0x3]  ;;  %4436 = vmatmul.mubr.msk.f32.vlgmr.msra.gmra.mrb[0].mxu1 %vm783_vm0, %v5766_v2  ;;  %vm567_vm2 = vcmp.gt.s32.totalorder %v5770_v3, 0 }
  0xa6   : > { %4483 = vmatprep.subr.msk.mxu1 %vm848_vm1, %v651_v13  ;;  %v399_v16 = vmul.f32 %v5779_v9, %v338_v15  ;;  %v341_v19 = vld [vmem:[%s5751_s14 + $0x40] sm:$0x3]  ;;  %4683 = vmatprep.subr.msk.mxu0 %vm848_vm1, %v5787_v14  ;;  %v400_v22 = vmul.f32 %v5779_v9, %v339_v17  ;;  %v342_v23 = vld [vmem:[%s5751_s14 + $0x48] sm:$0xff]  ;;  %v343_v24 = vld [vmem:[%s5751_s14 + $0x50] sm:$0xff]  ;;  %v401_v26 = vmul.f32 %v5779_v9, %v340_v18  ;;  %s3830_s27 = sshll.u32 %s5747_s11, 8  ;;  %s4135_s16 = sshll.u32 %s5564_s25, 12 }
  0xa7   : > { %v458_v20 = vadd.f32 %v5781_v10, %v397_v11  ;;  %v459_v21 = vadd.f32 %v5781_v10, %v398_v12  ;;  %vm578_vm4 = vcmp.lt.s32.totalorder %v5774_v7, 17  ;;  %4484 = vmatpush3.msk.msra.mxu1 %vm848_vm1, %v651_v13  ;;  %v402_v27 = vmul.f32 %v5779_v9, %v341_v19  ;;  %v344_v45 = vld [vmem:[%s5751_s14 + $0x58] sm:$0x3]  ;;  %v345_v50 = vld [vmem:[%s5751_s14 + $0x60] sm:$0xff]  ;;  %v346_v55 = vld [vmem:[%s5751_s14 + $0x68] sm:$0xff]  ;;  %s7010_s29 = scalar_lea.vmem [#allocation11], %s3830_s27  ;;  %s7170_s15 = scalar_lea.hbm %s7264_s5, %s4135_s16 }
  0xa8   : > { %v460_v25 = vadd.f32 %v5781_v10, %v399_v16  ;;  %v403_v28 = vmul.f32 %v5779_v9, %v342_v23  ;;  %v461_v31 = vadd.f32 %v5781_v10, %v400_v22  ;;  %v404_v32 = vmul.f32 %v5779_v9, %v343_v24  ;;  %v347_v56 = vld [vmem:[%s5751_s14 + $0x70] sm:$0x3]  ;;  %v348_v61 = vld [vmem:[%s5751_s14 + $0x78] sm:$0xff]  ;;  %v349_v62 = vld [vmem:[%s5751_s14 + $0x80] sm:$0xff]  ;;  %s3661_s20 = sshll.u32 %s7010_s29, 4  ;;  %s3643_s12 = scalar_lea.sflag [#allocation4], %s5747_s11  ;;  %s7172_s20 = int_to_ptr.vmem [resolvable:$true] %s3661_s20 }
  0xa9   : > { %v512_v29 = vmax.f32 %v458_v20, 0.0  ;;  %v5811_v30 = vmax.f32 %v459_v21, 0.0  ;;  %v462_v34 = vadd.f32 %v5781_v10, %v401_v26  ;;  %v463_v35 = vadd.f32 %v5781_v10, %v402_v27  ;;  %v350_v6 = vld [vmem:[%s5751_s14 + $0x88] sm:$0x3]  ;;  %v5869_v8 = vld [vmem:[#allocation8 + $0x18] sm:$0xf] }
  0xaa   : > { %v514_v33 = vmax.f32 %v460_v25, 0.0  ;;  %v464_v36 = vadd.f32 %v5781_v10, %v403_v28  ;;  %v515_v39 = vmax.f32 %v461_v31, 0.0  ;;  %v465_v40 = vadd.f32 %v5781_v10, %v404_v32  ;;  %v351_v19 = vld [vmem:[%s5751_s14 + $0x90] sm:$0xff]  ;;  %v352_v32 = vld [vmem:[%s5751_s14 + $0x98] sm:$0xff]  ;;  %v366_v1 = vld [vmem:[%s5751_s14 + $0x108] sm:$0xff]  ;;  %s5386_s30 = scalar_lea.vmem %s7172_s20, 4096 }
  0xab   : > { %v5820_v37 = vsel %vm567_vm2, %v512_v29, 0.0  ;;  %v707_v38 = vrot.slane %v5811_v30, 1  ;;  %v5829_v43 = vmax.f32 %v462_v34, 0.0  ;;  %v517_v44 = vmax.f32 %v463_v35, 0.0  ;;  %v367_v2 = vld [vmem:[%s5751_s14 + $0x110] sm:$0xff]  ;;  %p5387_p4 = scmp.ne.s32.totalorder %s7172_s20, %s5386_s30  ;;  %s5504_s26 = smov [#allocation11]  }
  0xac   : > { %7362 = vst [vmem:[#allocation20_spill] sm:$0xff] %v5820_v37  ;;  %v706_v41 = vrot.slane %v5820_v37, 1  ;;  %v5827_v42 = vsel %vm578_vm4, %v514_v33, 0.0  ;;  %v5836_v48 = vsel %vm567_vm2, %v515_v39, 0.0  ;;  %v518_v49 = vmax.f32 %v464_v36, 0.0  ;;  %s5390_s10 = sshll.u32 %s5504_s26, 4  ;;  %s5391_s10 = int_to_ptr.vmem [resolvable:$false] %s5390_s10 }
  0xad   : > { %v709_v46 = vrot.slane %v5827_v42, 1  ;;  %v1378_v47 = vrot.slane %v5827_v42, 2  ;;  %v711_v52 = vrot.slane %v5836_v48, 1  ;;  %v712_v53 = vrot.slane %v5829_v43, 1  ;;  %v5921_v39 = vld [vmem:[#allocation8 + $0x8] sm:$0xf]  ;;  %p5388_p6 = pnand %p5387_p4, %p5695_p1  ;;  %p5393_p3 = scmp.lt.s32.totalorder %s7172_s20, %s5391_s10 }
  0xae   : > { %v708_v51 = vsel %vm700_vm3, %v706_v41, %v707_v38  ;;  %v5844_v54 = vsel %vm578_vm4, %v517_v44, 0.0  ;;  %v5852_v59 = vmax.f32 %v465_v40, 0.0  ;;  %v5856_v60 = vsel %vm567_vm2, %v518_v49, 0.0  ;;  %4533 = vmatprep.subr.msk.mxu1 %vm848_vm1, %v5921_v39  ;;  %s5392_s17 = scalar_lea.vmem %s5391_s10, 8192 }
  0xaf   : > { %4438 = vmatprep.mubr.msk.f32.mxu1 %vm783_vm0, %v708_v51  ;;  %4635 = vmatprep.mubr.msk.f32.mxu0 %vm783_vm0, %v708_v51  ;;  %v710_v57 = vsel %vm700_vm3, %v707_v38, %v709_v46  ;;  %v714_v58 = vrot.slane %v5844_v54, 1  ;;  %v5863_v63 = vsel %vm700_vm3, %v711_v52, %v712_v53  ;;  %v716_v0 = vrot.slane %v5856_v60, 1  ;;  %v353_v46 = vld [vmem:[%s5751_s14 + $0xa0] sm:$0x3]  ;;  %p5389_p8 = pneg %p5388_p6  ;;  %p5394_p7 = scmp.lt.s32.totalorder %s5392_s17, %s5386_s30 }
  0xb0   : > { %4439 = vmatmul.mubr.msk.f32.gmra.mrb[2].mxu1 %vm783_vm0, %v710_v57  ;;  %4636 = vmatmul.mubr.msk.f32.vlgmr.msra.gmra.mrb[0].mxu0 %vm783_vm0, %v710_v57  ;;  %7363 = vst [vmem:[#allocation21_spill] sm:$0xff] %v5863_v63  ;;  %v405_v4 = vmul.f32 %v5779_v9, %v344_v45  ;;  %v406_v5 = vmul.f32 %v5779_v9, %v345_v50  ;;  %v717_v12 = vrot.slane %v5852_v59, 1 }
  0xb1   : > { %4684 = vmatpush3.msk.msra.mxu0 %vm848_vm1, %v5787_v14  ;;  %4441 = vmatprep.mubr.msk.f32.mxu1 %vm783_vm0, %v5863_v63  ;;  %v5876_v11 = vsel %vm700_vm3, %v712_v53, %v714_v58  ;;  %v407_v13 = vmul.f32 %v5779_v9, %v346_v55  ;;  %v408_v15 = vmul.f32 %v5779_v9, %v347_v56  ;;  %v354_v53 = vld [vmem:[%s5751_s14 + $0xa8] sm:$0xff]  ;;  %p5395_p10 = por %p5394_p7, %p5393_p3 }
  0xb2   : > { %7364 = vst [vmem:[#allocation22_spill] sm:$0xff] %v5876_v11  ;;  %4638 = vmatprep.mubr.msk.f32.mxu0 %vm783_vm0, %v5863_v63  ;;  %v466_v16 = vadd.f32 %v5781_v10, %v405_v4  ;;  %v467_v17 = vadd.f32 %v5781_v10, %v406_v5  ;;  %v409_v14 = vmul.f32 %v5779_v9, %v348_v61  ;;  %v355_v61 = vld [vmem:[%s5751_s14 + $0xb0] sm:$0xff]  ;;  %v378_v63 = vld [vmem:[%s5751_s14 + $0x168] sm:$0xff] }
  0xb3   : > { %v410_v18 = vmul.f32 %v5779_v9, %v349_v62  ;;  %v5889_v20 = vsel %vm700_vm3, %v716_v0, %v717_v12  ;;  %v468_v21 = vadd.f32 %v5781_v10, %v407_v13  ;;  %v469_v22 = vadd.f32 %v5781_v10, %v408_v15  ;;  %4733 = vmatprep.subr.msk.mxu0 %vm848_vm1, %v5869_v8  ;;  %v356_v62 = vld [vmem:[%s5751_s14 + $0xb8] sm:$0x3]  ;;  %p5396_p13 = pnand %p5395_p10, %p5389_p8 }
  0xb4   : > { %7365 = vst [vmem:[#allocation23_spill] sm:$0xff] %v5889_v20  ;;  %v411_v23 = vmul.f32 %v5779_v9, %v350_v6  ;;  %4442 = vmatmul.mubr.msk.f32.gmra.mrb[4].mxu1 %vm783_vm0, %v5876_v11  ;;  %4639 = vmatmul.mubr.msk.f32.gmra.mrb[2].mxu0 %vm783_vm0, %v5876_v11  ;;  %v520_v24 = vmax.f32 %v466_v16, 0.0  ;;  %v521_v25 = vmax.f32 %v467_v17, 0.0  ;;  %v470_v26 = vadd.f32 %v5781_v10, %v409_v14 }
  0xb5   : > { %v471_v27 = vadd.f32 %v5781_v10, %v410_v18  ;;  %4444 = vmatprep.mubr.msk.f32.mxu1 %vm783_vm0, %v5889_v20  ;;  %4641 = vmatprep.mubr.msk.f32.mxu0 %vm783_vm0, %v5889_v20  ;;  %v5906_v28 = vmax.f32 %v468_v21, 0.0  ;;  %v523_v29 = vmax.f32 %v469_v22, 0.0  ;;  %v412_v33 = vmul.f32 %v5779_v9, %v351_v19  ;;  %v358_v22 = vld [vmem:[%s5751_s14 + $0xc8] sm:$0xff] }
  0xb6   : > { %v472_v31 = vadd.f32 %v5781_v10, %v411_v23  ;;  %v5913_v34 = vsel %vm578_vm4, %v520_v24, 0.0  ;;  %v5917_v35 = vsel %vm567_vm2, %v521_v25, 0.0  ;;  %v524_v36 = vmax.f32 %v470_v26, 0.0 }
  0xb7   : > { %v5919_v38 = vmax.f32 %v471_v27, 0.0  ;;  %v719_v40 = vrot.slane %v5913_v34, 1  ;;  %v721_v41 = vrot.slane %v5917_v35, 1  ;;  %v722_v44 = vrot.slane %v5906_v28, 1 }
  0xb8   : > { %v5928_v45 = vsel %vm578_vm4, %v523_v29, 0.0  ;;  %v5936_v50 = vsel %vm567_vm2, %v524_v36, 0.0  ;;  %v526_v52 = vmax.f32 %v472_v31, 0.0  ;;  %v413_v58 = vmul.f32 %v5779_v9, %v352_v32 }
  0xb9   : > { %v724_v49 = vrot.slane %v5928_v45, 1  ;;  %v727_v51 = vrot.slane %v5919_v38, 1  ;;  %v5941_v55 = vsel %vm700_vm3, %v717_v12, %v719_v40  ;;  %v5944_v56 = vsel %vm700_vm3, %v721_v41, %v722_v44  ;;  %v357_v12 = vld [vmem:[%s5751_s14 + $0xc0] sm:$0xff] }
  0xba   : > { %7366 = vst [vmem:[#allocation24_spill] sm:$0xff] %v5941_v55  ;;  %7367 = vst [vmem:[#allocation25_spill] sm:$0xff] %v5944_v56  ;;  %v726_v57 = vrot.slane %v5936_v50, 1  ;;  %4445 = vmatmul.mubr.msk.f32.gmra.mrb[6].mxu1 %vm783_vm0, %v5941_v55  ;;  %4642 = vmatmul.mubr.msk.f32.gmra.mrb[4].mxu0 %vm783_vm0, %v5941_v55  ;;  %v5959_v4 = vsel %vm578_vm4, %v526_v52, 0.0  ;;  %v473_v5 = vadd.f32 %v5781_v10, %v412_v33  ;;  %v359_v52 = vld [vmem:[%s5751_s14 + $0xd0] sm:$0x3] }
  0xbb   : > { %v5955_v0 = vsel %vm700_vm3, %v722_v44, %v724_v49  ;;  %v414_v6 = vmul.f32 %v5779_v9, %v353_v46  ;;  %4447 = vmatprep.mubr.msk.f32.mxu1 %vm783_vm0, %v5944_v56  ;;  %4644 = vmatprep.mubr.msk.f32.mxu0 %vm783_vm0, %v5944_v56  ;;  %v729_v15 = vrot.slane %v5959_v4, 1  ;;  %v474_v16 = vadd.f32 %v5781_v10, %v413_v58 }
  0xbc   : > { %7368 = vst [vmem:[#allocation26_spill] sm:$0xff] %v5955_v0  ;;  %v5969_v13 = vsel %vm700_vm3, %v726_v57, %v727_v51  ;;  %v415_v17 = vmul.f32 %v5779_v9, %v354_v53  ;;  %v527_v14 = vmax.f32 %v473_v5, 0.0  ;;  %v416_v19 = vmul.f32 %v5779_v9, %v355_v61  ;;  %v361_v5 = vld [vmem:[%s5751_s14 + $0xe0] sm:$0xff] }
  0xbd   : > { %7369 = vst [vmem:[#allocation27_spill] sm:$0xff] %v5969_v13  ;;  %v475_v18 = vadd.f32 %v5781_v10, %v414_v6  ;;  %v417_v21 = vmul.f32 %v5779_v9, %v356_v62  ;;  %v5979_v23 = vsel %vm700_vm3, %v727_v51, %v729_v15  ;;  %v5981_v24 = vmax.f32 %v474_v16, 0.0  ;;  %v360_v62 = vld [vmem:[%s5751_s14 + $0xd8] sm:$0xff] }
  0xbe   : > { %7370 = vst [vmem:[#allocation28_spill] sm:$0xff] %v5979_v23  ;;  %v476_v25 = vadd.f32 %v5781_v10, %v415_v17  ;;  %v418_v26 = vmul.f32 %v5779_v9, %v357_v12  ;;  %4448 = vmatmul.mubr.msk.f32.gmra.mrb[8].mxu1 %vm783_vm0, %v5955_v0  ;;  %4645 = vmatmul.mubr.msk.f32.gmra.mrb[6].mxu0 %vm783_vm0, %v5955_v0  ;;  %v5991_v27 = vsel %vm567_vm2, %v527_v14, 0.0  ;;  %v1398_v55 = vrot.slane %v5959_v4, 2 }
  0xbf   : > { %v529_v29 = vmax.f32 %v475_v18, 0.0  ;;  %v477_v31 = vadd.f32 %v5781_v10, %v416_v19  ;;  %v478_v32 = vadd.f32 %v5781_v10, %v417_v21  ;;  %4450 = vmatprep.mubr.msk.f32.mxu1 %vm783_vm0, %v5969_v13  ;;  %4647 = vmatprep.mubr.msk.f32.mxu0 %vm783_vm0, %v5969_v13  ;;  %v731_v33 = vrot.slane %v5991_v27, 1 }
  0xc0   : > { %v732_v36 = vrot.slane %v5981_v24, 1  ;;  %v530_v40 = vmax.f32 %v476_v25, 0.0  ;;  %v419_v41 = vmul.f32 %v5779_v9, %v358_v22  ;;  %v479_v51 = vadd.f32 %v5781_v10, %v418_v26 }
  0xc1   : > { %v6004_v44 = vsel %vm578_vm4, %v529_v29, 0.0  ;;  %v6006_v46 = vmax.f32 %v477_v31, 0.0  ;;  %v532_v49 = vmax.f32 %v478_v32, 0.0  ;;  %v420_v19 = vmul.f32 %v5779_v9, %v359_v52  ;;  %v362_v29 = vld [vmem:[%s5751_s14 + $0xe8] sm:$0x3]  ;;  %v363_v31 = vld [vmem:[%s5751_s14 + $0xf0] sm:$0xff] }
  0xc2   : > { %v6011_v53 = vsel %vm700_vm3, %v731_v33, %v732_v36  ;;  %v734_v57 = vrot.slane %v6004_v44, 1  ;;  %v6016_v58 = vsel %vm567_vm2, %v530_v40, 0.0  ;;  %v480_v61 = vadd.f32 %v5781_v10, %v419_v41  ;;  %4451 = vmatmul.mubr.msk.f32.gmra.mrb[10].mxu1 %vm783_vm0, %v5979_v23  ;;  %4648 = vmatmul.mubr.msk.f32.gmra.mrb[8].mxu0 %vm783_vm0, %v5979_v23 }
  0xc3   : > { %7371 = vst [vmem:[#allocation29_spill] sm:$0xff] %v6011_v53  ;;  %v736_v6 = vrot.slane %v6016_v58, 1  ;;  %v737_v12 = vrot.slane %v6006_v46, 1  ;;  %v6029_v15 = vsel %vm578_vm4, %v532_v49, 0.0  ;;  %v533_v16 = vmax.f32 %v479_v51, 0.0  ;;  %4453 = vmatprep.mubr.msk.f32.mxu1 %vm783_vm0, %v6011_v53  ;;  %4650 = vmatprep.mubr.msk.f32.mxu0 %vm783_vm0, %v6011_v53 }
  0xc4   : > { %v6036_v17 = vsel %vm700_vm3, %v732_v36, %v734_v57  ;;  %v739_v14 = vrot.slane %v6029_v15, 1  ;;  %v6039_v18 = vmax.f32 %v480_v61, 0.0  ;;  %v421_v25 = vmul.f32 %v5779_v9, %v360_v62  ;;  %v364_v57 = vld [vmem:[%s5751_s14 + $0xf8] sm:$0xff] }
  0xc5   : > { %7372 = vst [vmem:[#allocation30_spill] sm:$0xff] %v6036_v17  ;;  %v6043_v21 = vsel %vm700_vm3, %v736_v6, %v737_v12  ;;  %v6047_v22 = vsel %vm567_vm2, %v533_v16, 0.0  ;;  %v422_v26 = vmul.f32 %v5779_v9, %v361_v5  ;;  %v481_v40 = vadd.f32 %v5781_v10, %v420_v19 }
  0xc6   : > { %7373 = vst [vmem:[#allocation31_spill] sm:$0xff] %v6043_v21  ;;  %v6054_v32 = vsel %vm700_vm3, %v737_v12, %v739_v14  ;;  %v741_v33 = vrot.slane %v6047_v22, 1  ;;  %v742_v36 = vrot.slane %v6039_v18, 1  ;;  %4454 = vmatmul.mubr.msk.f32.gmra.mrb[12].mxu1 %vm783_vm0, %v6036_v17  ;;  %4651 = vmatmul.mubr.msk.f32.gmra.mrb[10].mxu0 %vm783_vm0, %v6036_v17  ;;  %v482_v41 = vadd.f32 %v5781_v10, %v421_v25 }
  0xc7   : > { %7374 = vst [vmem:[#allocation32_spill] sm:$0xff] %v6054_v32  ;;  %v483_v49 = vadd.f32 %v5781_v10, %v422_v26  ;;  %v1375_v51 = vrot.slane %v5820_v37, 2  ;;  %v1376_v52 = vrot.slane %v5811_v30, 2  ;;  %4456 = vmatprep.mubr.msk.f32.mxu1 %vm783_vm0, %v6043_v21  ;;  %4653 = vmatprep.mubr.msk.f32.mxu0 %vm783_vm0, %v6043_v21  ;;  %v535_v62 = vmax.f32 %v481_v40, 0.0 }
  0xc8   : > { %v6073_v61 = vsel %vm700_vm3, %v741_v33, %v742_v36  ;;  %v423_v5 = vmul.f32 %v5779_v9, %v362_v29  ;;  %v424_v6 = vmul.f32 %v5779_v9, %v363_v31  ;;  %v536_v12 = vmax.f32 %v482_v41, 0.0  ;;  %v365_v33 = vld [vmem:[%s5751_s14 + $0x100] sm:$0x3] }
  0xc9   : > { %7375 = vst [vmem:[#allocation33_spill] sm:$0xff] %v6073_v61  ;;  %v6077_v16 = vmax.f32 %v483_v49, 0.0  ;;  %v6080_v14 = vsel %vm1369_vm5, %v1375_v51, %v1376_v52  ;;  %v6085_v19 = vsel %vm1369_vm5, %v1376_v52, %v1378_v47  ;;  %v6089_v25 = vsel %vm578_vm4, %v535_v62, 0.0 }
  0xca   : > { %v484_v26 = vadd.f32 %v5781_v10, %v423_v5  ;;  %v425_v29 = vmul.f32 %v5779_v9, %v364_v57  ;;  %v485_v31 = vadd.f32 %v5781_v10, %v424_v6  ;;  %4457 = vmatmul.mubr.msk.f32.gmra.mrb[14].mxu1 %vm783_vm0, %v6054_v32  ;;  %4654 = vmatmul.mubr.msk.f32.gmra.mrb[12].mxu0 %vm783_vm0, %v6054_v32  ;;  %v744_v42 = vrot.slane %v6089_v25, 1 }
  0xcb   : > { %v6102_v47 = vsel %vm567_vm2, %v536_v12, 0.0  ;;  %v747_v40 = vrot.slane %v6077_v16, 1  ;;  %v1380_v41 = vrot.slane %v5836_v48, 2  ;;  %4459 = vmatprep.mubr.msk.f32.mxu1 %vm783_vm0, %v6073_v61  ;;  %4656 = vmatprep.mubr.msk.f32.mxu0 %vm783_vm0, %v6073_v61  ;;  %v1381_v5 = vrot.slane %v5829_v43, 2 }
  0xcc   : > { %v746_v49 = vrot.slane %v6102_v47, 1  ;;  %v538_v51 = vmax.f32 %v484_v26, 0.0  ;;  %v486_v52 = vadd.f32 %v5781_v10, %v425_v29  ;;  %v539_v57 = vmax.f32 %v485_v31, 0.0 }
  0xcd   : > { %v6113_v62 = vsel %vm700_vm3, %v742_v36, %v744_v42  ;;  %v426_v6 = vmul.f32 %v5779_v9, %v365_v33  ;;  %v1383_v12 = vrot.slane %v5844_v54, 2  ;;  %v6140_v33 = vsel %vm1369_vm5, %v1380_v41, %v1381_v5 }
  0xce   : > { %7376 = vst [vmem:[#allocation34_spill] sm:$0xff] %v6113_v62  ;;  %v6121_v61 = vsel %vm700_vm3, %v746_v49, %v747_v40  ;;  %v6125_v26 = vsel %vm578_vm4, %v538_v51, 0.0  ;;  %v6127_v29 = vmax.f32 %v486_v52, 0.0  ;;  %v6131_v36 = vsel %vm567_vm2, %v539_v57, 0.0  ;;  %4460 = vmatmul.mubr.msk.f32.gmra.mrb[16].mxu1 %vm783_vm0, %v6113_v62  ;;  %4657 = vmatmul.mubr.msk.f32.gmra.mrb[14].mxu0 %vm783_vm0, %v6113_v62  ;;  %v368_v49 = vld [vmem:[%s5751_s14 + $0x118] sm:$0x3] }
  0xcf   : > { %7377 = vst [vmem:[#allocation35_spill] sm:$0xff] %v6121_v61  ;;  %v749_v54 = vrot.slane %v6125_v26, 1  ;;  %v751_v31 = vrot.slane %v6131_v36, 1  ;;  %v487_v42 = vadd.f32 %v5781_v10, %v426_v6  ;;  %4462 = vmatprep.mubr.msk.f32.mxu1 %vm783_vm0, %v6121_v61  ;;  %4685 = vmatprep.mubr.msk.f32.mxu0 %vm783_vm0, %v6080_v14  ;;  %v6150_v52 = vsel %vm1369_vm5, %v1381_v5, %v1383_v12  ;;  %v369_v62 = vld [vmem:[%s5751_s14 + $0x120] sm:$0xff]  ;;  %v370_v12 = vld [vmem:[%s5751_s14 + $0x128] sm:$0xff] }
  0xd0   : > { %v752_v51 = vrot.slane %v6127_v29, 1  ;;  %v427_v57 = vmul.f32 %v5779_v9, %v366_v1  ;;  %v428_v41 = vmul.f32 %v5779_v9, %v367_v2  ;;  %v1385_v21 = vrot.slane %v5856_v60, 2  ;;  %v6167_v2 = vld [vmem:[#allocation8 + $0x1c] sm:$0xf] }
  0xd1   : > { %v6156_v6 = vsel %vm700_vm3, %v747_v40, %v749_v54  ;;  %v541_v32 = vmax.f32 %v487_v42, 0.0  ;;  %v1386_v61 = vrot.slane %v5852_v59, 2  ;;  %v429_v1 = vmul.f32 %v5779_v9, %v368_v49 }
  0xd2   : > { %7378 = vst [vmem:[#allocation36_spill] sm:$0xff] %v6156_v6  ;;  %v6161_v17 = vsel %vm700_vm3, %v751_v31, %v752_v51  ;;  %v488_v53 = vadd.f32 %v5781_v10, %v427_v57  ;;  %v489_v5 = vadd.f32 %v5781_v10, %v428_v41  ;;  %4463 = vmatmul.mubr.msk.f32.gmra.mrb[18].mxu1 %vm783_vm0, %v6156_v6  ;;  %v1388_v31 = vrot.slane %v5913_v34, 2  ;;  %v372_v6 = vld [vmem:[%s5751_s14 + $0x138] sm:$0xff] }
  0xd3   : > { %7379 = vst [vmem:[#allocation37_spill] sm:$0xff] %v6161_v17  ;;  %4686 = vmatmul.mubr.msk.f32.vlgmr.msra.gmra.mrb[0].mxu0 %vm783_vm0, %v6085_v19  ;;  %v6175_v40 = vsel %vm578_vm4, %v541_v32, 0.0  ;;  %v6178_v54 = vsel %vm1369_vm5, %v1385_v21, %v1386_v61  ;;  %v430_v42 = vmul.f32 %v5779_v9, %v369_v62  ;;  %4465 = vmatprep.mubr.msk.f32.mxu1 %vm783_vm0, %v6161_v17  ;;  %v1390_v62 = vrot.slane %v5917_v35, 2  ;;  %v371_v17 = vld [vmem:[%s5751_s14 + $0x130] sm:$0x3] }
  0xd4   : > { %4734 = vmatpush3.msk.msra.mxu0 %vm848_vm1, %v5869_v8  ;;  %v754_v49 = vrot.slane %v6175_v40, 1  ;;  %v542_v57 = vmax.f32 %v488_v53, 0.0  ;;  %v6187_v41 = vmax.f32 %v489_v5, 0.0  ;;  %v490_v32 = vadd.f32 %v5781_v10, %v429_v1  ;;  %4688 = vmatprep.mubr.msk.f32.mxu0 %vm783_vm0, %v6140_v33 }
  0xd5   : > { %v6193_v34 = vsel %vm1369_vm5, %v1386_v61, %v1388_v31  ;;  %v431_v21 = vmul.f32 %v5779_v9, %v370_v12  ;;  %v491_v8 = vadd.f32 %v5781_v10, %v430_v42  ;;  %4783 = vmatprep.subr.msk.mxu0 %vm848_vm1, %v6167_v2  ;;  %v1391_v42 = vrot.slane %v5906_v28, 2 }
  0xd6   : > { %v6203_v53 = vsel %vm700_vm3, %v752_v51, %v754_v49  ;;  %v6207_v5 = vsel %vm567_vm2, %v542_v57, 0.0  ;;  %v757_v61 = vrot.slane %v6187_v41, 1  ;;  %v544_v1 = vmax.f32 %v490_v32, 0.0 }
  0xd7   : > { %7380 = vst [vmem:[#allocation38_spill] sm:$0xff] %v6203_v53  ;;  %4466 = vmatmul.mubr.msk.f32.gmra.mrb[20].mxu1 %vm783_vm0, %v6203_v53  ;;  %4689 = vmatmul.mubr.msk.f32.gmra.mrb[2].mxu0 %vm783_vm0, %v6150_v52  ;;  %v756_v12 = vrot.slane %v6207_v5, 1  ;;  %v492_v31 = vadd.f32 %v5781_v10, %v431_v21  ;;  %v545_v51 = vmax.f32 %v491_v8, 0.0  ;;  %v432_v57 = vmul.f32 %v5779_v9, %v371_v17  ;;  %v373_v53 = vld [vmem:[%s5751_s14 + $0x140] sm:$0xff] }
  0xd8   : > { %4691 = vmatprep.mubr.msk.f32.mxu0 %vm783_vm0, %v6178_v54  ;;  %v6221_v49 = vsel %vm578_vm4, %v544_v1, 0.0  ;;  %v1393_v32 = vrot.slane %v5928_v45, 2  ;;  %v433_v23 = vmul.f32 %v5779_v9, %v372_v6  ;;  %v374_v1 = vld [vmem:[%s5751_s14 + $0x148] sm:$0x3]  ;;  %v6242_v17 = vsel %vm1369_vm5, %v1390_v62, %v1391_v42  ;;  %v375_v62 = vld [vmem:[%s5751_s14 + $0x150] sm:$0xff] }
  0xd9   : > { %v6228_v21 = vsel %vm700_vm3, %v756_v12, %v757_v61  ;;  %v759_v8 = vrot.slane %v6221_v49, 1  ;;  %v6231_v13 = vmax.f32 %v492_v31, 0.0  ;;  %v6235_v0 = vsel %vm567_vm2, %v545_v51, 0.0  ;;  %7382 = vst [vmem:[#allocation40_spill] sm:$0xff] %v6242_v17 }
  0xda   : > { %7381 = vst [vmem:[#allocation39_spill] sm:$0xff] %v6228_v21  ;;  %4468 = vmatprep.mubr.msk.f32.mxu1 %vm783_vm0, %v6228_v21  ;;  %v761_v45 = vrot.slane %v6235_v0, 1  ;;  %v493_v6 = vadd.f32 %v5781_v10, %v432_v57  ;;  %v6246_v12 = vsel %vm1369_vm5, %v1391_v42, %v1393_v32  ;;  %v434_v21 = vmul.f32 %v5779_v9, %v373_v53 }
  0xdb   : > { %7383 = vst [vmem:[#allocation41_spill] sm:$0xff] %v6246_v12  ;;  %v6249_v31 = vsel %vm700_vm3, %v757_v61, %v759_v8  ;;  %4692 = vmatmul.mubr.msk.f32.gmra.mrb[4].mxu0 %vm783_vm0, %v6193_v34  ;;  %v762_v51 = vrot.slane %v6231_v13, 1  ;;  %v494_v56 = vadd.f32 %v5781_v10, %v433_v23  ;;  %v1395_v61 = vrot.slane %v5936_v50, 2 }
  0xdc   : > { %7384 = vst [vmem:[#allocation42_spill] sm:$0xff] %v6249_v31  ;;  %4469 = vmatmul.mubr.msk.f32.gmra.mrb[22].mxu1 %vm783_vm0, %v6249_v31  ;;  %4694 = vmatprep.mubr.msk.f32.mxu0 %vm783_vm0, %v6242_v17  ;;  %v547_v42 = vmax.f32 %v493_v6, 0.0  ;;  %v1396_v57 = vrot.slane %v5919_v38, 2  ;;  %v435_v32 = vmul.f32 %v5779_v9, %v374_v1  ;;  %v495_v23 = vadd.f32 %v5781_v10, %v434_v21  ;;  %v376_v31 = vld [vmem:[%s5751_s14 + $0x158] sm:$0xff] }
  0xdd   : > { %v6265_v8 = vsel %vm700_vm3, %v761_v45, %v762_v51  ;;  %v548_v53 = vmax.f32 %v494_v56, 0.0  ;;  %v436_v45 = vmul.f32 %v5779_v9, %v375_v62 }
  0xde   : > { %7385 = vst [vmem:[#allocation43_spill] sm:$0xff] %v6265_v8  ;;  %4471 = vmatprep.mubr.msk.f32.mxu1 %vm783_vm0, %v6265_v8  ;;  %v6274_v6 = vsel %vm578_vm4, %v547_v42, 0.0  ;;  %v6277_v20 = vsel %vm1369_vm5, %v1395_v61, %v1396_v57  ;;  %v496_v1 = vadd.f32 %v5781_v10, %v435_v32  ;;  %v6284_v4 = vmax.f32 %v495_v23, 0.0  ;;  %v377_v61 = vld [vmem:[%s5751_s14 + $0x160] sm:$0x3] }
  0xdf   : > { %7386 = vst [vmem:[#allocation44_spill] sm:$0xff] %v6277_v20  ;;  %v764_v56 = vrot.slane %v6274_v6, 1  ;;  %4695 = vmatmul.mubr.msk.f32.gmra.mrb[6].mxu0 %vm783_vm0, %v6246_v12  ;;  %v6288_v21 = vsel %vm567_vm2, %v548_v53, 0.0  ;;  %v6291_v42 = vsel %vm1369_vm5, %v1396_v57, %v1398_v55  ;;  %v437_v8 = vmul.f32 %v5779_v9, %v376_v31 }
  0xe0   : > { %7387 = vst [vmem:[#allocation45_spill] sm:$0xff] %v6291_v42  ;;  %v766_v32 = vrot.slane %v6288_v21, 1  ;;  %4697 = vmatprep.mubr.msk.f32.mxu0 %vm783_vm0, %v6277_v20  ;;  %v550_v62 = vmax.f32 %v496_v1, 0.0  ;;  %v497_v23 = vadd.f32 %v5781_v10, %v436_v45  ;;  %v767_v53 = vrot.slane %v6284_v4, 1 }
  0xe1   : > { %v6300_v11 = vsel %vm700_vm3, %v762_v51, %v764_v56  ;;  %v1400_v55 = vrot.slane %v5991_v27, 2  ;;  %v1401_v57 = vrot.slane %v5981_v24, 2  ;;  %v498_v31 = vadd.f32 %v5781_v10, %v437_v8  ;;  %v379_v56 = vld [vmem:[%s5751_s14 + $0x170] sm:$0xff] }
  0xe2   : > { %7388 = vst [vmem:[#allocation46_spill] sm:$0xff] %v6300_v11  ;;  %4472 = vmatmul.mubr.msk.f32.gmra.mrb[24].mxu1 %vm783_vm0, %v6300_v11  ;;  %v6310_v1 = vsel %vm578_vm4, %v550_v62, 0.0  ;;  %v551_v45 = vmax.f32 %v497_v23, 0.0  ;;  %v438_v51 = vmul.f32 %v5779_v9, %v377_v61  ;;  %v6316_v20 = vsel %vm700_vm3, %v766_v32, %v767_v53 }
  0xe3   : > { %7389 = vst [vmem:[#allocation47_spill] sm:$0xff] %v6316_v20  ;;  %v769_v12 = vrot.slane %v6310_v1, 1  ;;  %4698 = vmatmul.mubr.msk.f32.gmra.mrb[8].mxu0 %vm783_vm0, %v6291_v42  ;;  %v6322_v11 = vsel %vm1369_vm5, %v1400_v55, %v1401_v57  ;;  %v1403_v62 = vrot.slane %v6004_v44, 2  ;;  %4474 = vmatprep.mubr.msk.f32.mxu1 %vm783_vm0, %v6316_v20  ;;  %v6327_v8 = vmax.f32 %v498_v31, 0.0  ;;  %v380_v55 = vld [vmem:[%s5751_s14 + $0x178] sm:$0x3] }
  0xe4   : > { %7390 = vst [vmem:[#allocation48_spill] sm:$0xff] %v6322_v11  ;;  %v6331_v61 = vsel %vm567_vm2, %v551_v45, 0.0  ;;  %4700 = vmatprep.mubr.msk.f32.mxu0 %vm783_vm0, %v6322_v11  ;;  %v499_v32 = vadd.f32 %v5781_v10, %v438_v51  ;;  %v439_v23 = vmul.f32 %v5779_v9, %v378_v63  ;;  %v440_v20 = vmul.f32 %v5779_v9, %v379_v56 }
  0xe5   : > { %v6339_v42 = vsel %vm700_vm3, %v767_v53, %v769_v12  ;;  %v771_v44 = vrot.slane %v6331_v61, 1  ;;  %v6343_v31 = vsel %vm1369_vm5, %v1401_v57, %v1403_v62  ;;  %v772_v45 = vrot.slane %v6327_v8, 1 }
  0xe6   : > { %7391 = vst [vmem:[#allocation49_spill] sm:$0xff] %v6339_v42  ;;  %7392 = vst [vmem:[#allocation50_spill] sm:$0xff] %v6343_v31  ;;  %4475 = vmatmul.mubr.msk.f32.gmra.mrb[26].mxu1 %vm783_vm0, %v6339_v42  ;;  %v553_v11 = vmax.f32 %v499_v32, 0.0  ;;  %v500_v51 = vadd.f32 %v5781_v10, %v439_v23  ;;  %v1405_v63 = vrot.slane %v6016_v58, 2  ;;  %v501_v12 = vadd.f32 %v5781_v10, %v440_v20 }
  0xe7   : > { %4701 = vmatmul.mubr.msk.f32.gmra.mrb[10].mxu0 %vm783_vm0, %v6343_v31  ;;  %v1406_v53 = vrot.slane %v6006_v46, 2  ;;  %v441_v57 = vmul.f32 %v5779_v9, %v380_v55  ;;  %v1408_v56 = vrot.slane %v6029_v15, 2  ;;  %v6358_v62 = vsel %vm700_vm3, %v771_v44, %v772_v45 }
  0xe8   : > { %7393 = vst [vmem:[#allocation51_spill] sm:$0xff] %v6358_v62  ;;  %v6362_v32 = vsel %vm578_vm4, %v553_v11, 0.0  ;;  %v554_v23 = vmax.f32 %v500_v51, 0.0  ;;  %v1410_v42 = vrot.slane %v6047_v22, 2  ;;  %4477 = vmatprep.mubr.msk.f32.mxu1 %vm783_vm0, %v6358_v62  ;;  %v6368_v31 = vmax.f32 %v501_v12, 0.0 }
  0xe9   : > { %v774_v20 = vrot.slane %v6362_v32, 1  ;;  %v6371_v55 = vsel %vm1369_vm5, %v1405_v63, %v1406_v53  ;;  %v502_v15 = vadd.f32 %v5781_v10, %v441_v57  ;;  %v6381_v11 = vsel %vm1369_vm5, %v1406_v53, %v1408_v56 }
  0xea   : > { %7394 = vst [vmem:[#allocation52_spill] sm:$0xff] %v6368_v31  ;;  %v6376_v44 = vsel %vm567_vm2, %v554_v23, 0.0  ;;  %4703 = vmatprep.mubr.msk.f32.mxu0 %vm783_vm0, %v6371_v55  ;;  %v1411_v51 = vrot.slane %v6039_v18, 2  ;;  %v1413_v12 = vrot.slane %v6089_v25, 2  ;;  %v777_v57 = vrot.slane %v6368_v31, 1 }
  0xeb   : > { %v6386_v62 = vsel %vm700_vm3, %v772_v45, %v774_v20  ;;  %v776_v63 = vrot.slane %v6376_v44, 1  ;;  %v556_v17 = vmax.f32 %v502_v15, 0.0  ;;  %4704 = vmatmul.mubr.msk.f32.gmra.mrb[12].mxu0 %vm783_vm0, %v6381_v11  ;;  %v1415_v25 = vrot.slane %v6102_v47, 2 }
  0xec   : > { %7395 = vst [vmem:[#allocation53_spill] sm:$0xff] %v6386_v62  ;;  %4478 = vmatmul.mubr.msk.f32.gmra.mrb[28].mxu1 %vm783_vm0, %v6386_v62  ;;  %v6395_v53 = vsel %vm1369_vm5, %v1410_v42, %v1411_v51  ;;  %v6398_v56 = vsel %vm1369_vm5, %v1411_v51, %v1413_v12  ;;  %v1416_v45 = vrot.slane %v6077_v16, 2  ;;  %v1418_v42 = vrot.slane %v6125_v26, 2 }
  0xed   : > { %7396 = vst [vmem:[#allocation54_spill] sm:$0xff] %v6398_v56  ;;  %v6403_v23 = vsel %vm700_vm3, %v776_v63, %v777_v57  ;;  %v6407_v20 = vsel %vm578_vm4, %v556_v17, 0.0  ;;  %4706 = vmatprep.mubr.msk.f32.mxu0 %vm783_vm0, %v6395_v53  ;;  %v1420_v15 = vrot.slane %v6131_v36, 2  ;;  %v1421_v63 = vrot.slane %v6127_v29, 2 }
  0xee   : > { %7397 = vst [vmem:[#allocation55_spill] sm:$0xff] %v6403_v23  ;;  %4480 = vmatprep.mubr.msk.f32.mxu1 %vm783_vm0, %v6403_v23  ;;  %v779_v51 = vrot.slane %v6407_v20, 1  ;;  %v6417_v12 = vsel %vm1369_vm5, %v1415_v25, %v1416_v45  ;;  %v6428_v26 = vsel %vm1369_vm5, %v1416_v45, %v1418_v42  ;;  %v1423_v23 = vrot.slane %v6175_v40, 2  ;;  %v381_v45 = vld [vmem:[%s5751_s14 + $0x180] sm:$0xff] }
  0xef   : > { %7398 = vst [vmem:[#allocation56_spill] sm:$0xff] %v6417_v12  ;;  %4707 = vmatmul.mubr.msk.f32.gmra.mrb[14].mxu0 %vm783_vm0, %v6398_v56  ;;  %7400 = vst [vmem:[#allocation58_spill] sm:$0xff] %v6428_v26  ;;  %v6434_v25 = vsel %vm1369_vm5, %v1420_v15, %v1421_v63  ;;  %v1425_v62 = vrot.slane %v6207_v5, 2  ;;  %v1428_v42 = vrot.slane %v6221_v49, 2  ;;  %v6448_v15 = vld [vmem:[#allocation8 + $0xc] sm:$0xf]  ;;  %v442_v49 = vmul.f32 %v5779_v9, %v381_v45 }
  0xf0   : > { %v6423_v17 = vsel %vm700_vm3, %v777_v57, %v779_v51  ;;  %4709 = vmatprep.mubr.msk.f32.mxu0 %vm783_vm0, %v6417_v12  ;;  %7401 = vst [vmem:[#allocation59_spill] sm:$0xff] %v6434_v25  ;;  %v1426_v57 = vrot.slane %v6187_v41, 2  ;;  %v7402_v51 = vmov 0.0   ;;  %v6445_v40 = vsel %vm1369_vm5, %v1421_v63, %v1423_v23  ;;  %v382_v23 = vld [vmem:[%s5751_s14 + $0x188] sm:$0xff]  ;;  %v383_v63 = vld [vmem:[%s5751_s14 + $0x190] sm:$0x3] }
  0xf1   : > { %7399 = vst [vmem:[#allocation57_spill] sm:$0xff] %v6423_v17  ;;  %4481 = vmatmul.mubr.msk.f32.gmra.mrb[30].mxu1 %vm783_vm0, %v6423_v17  ;;  %7403 = vst [vmem:[#allocation60_spill] sm:$0xff] %v6445_v40  ;;  %v1430_v12 = vrot.slane %v6235_v0, 2  ;;  %v444_v56 = vmul.f32 %v5779_v9, %v383_v63 }
  0xf2   : > { %4485 = vmatprep.mubr.f32.mxu1 %v7402_v51  ;;  %v6452_v17 = vsel %vm1369_vm5, %v1425_v62, %v1426_v57  ;;  %v6470_v62 = vsel %vm1369_vm5, %v1426_v57, %v1428_v42  ;;  %v503_v57 = vadd.f32 %v5781_v10, %v442_v49  ;;  %v1440_v42 = vrot.slane %v6331_v61, 2 }
  0xf3   : > { %4710 = vmatmul.mubr.msk.f32.gmra.mrb[16].mxu0 %vm783_vm0, %v6428_v26  ;;  %v1431_v26 = vrot.slane %v6231_v13, 2  ;;  %v505_v63 = vadd.f32 %v5781_v10, %v444_v56  ;;  %v1446_v56 = vrot.slane %v6368_v31, 2 }
  0xf4   : > { %4712 = vmatprep.mubr.msk.f32.mxu0 %vm783_vm0, %v6434_v25  ;;  %v443_v25 = vmul.f32 %v5779_v9, %v382_v23  ;;  %v1441_v23 = vrot.slane %v6327_v8, 2 }
  0xf5   : > { %4486 = vmatmul.mubr.f32.vlgmr.msra.gmra.mrb[0].mxu1 %v7402_v51  ;;  %v6477_v45 = vsel %vm1369_vm5, %v1430_v12, %v1431_v26  ;;  %v1438_v12 = vrot.slane %v6310_v1, 2 }
  0xf6   : > { %4488 = vmatprep.mubr.msk.f32.mxu1 %vm783_vm0, %v5820_v37  ;;  %4534 = vmatpush3.msk.msra.mxu1 %vm848_vm1, %v5921_v39  ;;  %v1433_v37 = vrot.slane %v6274_v6, 2  ;;  %v1435_v39 = vrot.slane %v6288_v21, 2  ;;  %v504_v49 = vadd.f32 %v5781_v10, %v443_v25  ;;  %v6516_v10 = vsel %vm1369_vm5, %v1440_v42, %v1441_v23 }
  0xf7   : > { %4713 = vmatmul.mubr.msk.f32.gmra.mrb[18].mxu0 %vm783_vm0, %v6445_v40  ;;  %4583 = vmatprep.subr.msk.mxu1 %vm848_vm1, %v6448_v15  ;;  %v1436_v40 = vrot.slane %v6284_v4, 2  ;;  %7405 = vst [vmem:[#allocation62_spill] sm:$0xff] %v6516_v10 }
  0xf8   : > { %4715 = vmatprep.mubr.msk.f32.mxu0 %vm783_vm0, %v6452_v17  ;;  %v6490_v6 = vsel %vm1369_vm5, %v1431_v26, %v1433_v37  ;;  %v557_v37 = vmax.f32 %v503_v57, 0.0  ;;  %v1443_v26 = vrot.slane %v6362_v32, 2  ;;  %v6519_v25 = vmax.f32 %v504_v49, 0.0 }
  0xf9   : > { %4489 = vmatmul.mubr.msk.f32.gmra.mrb[2].mxu1 %vm783_vm0, %v5811_v30  ;;  %v6497_v9 = vsel %vm1369_vm5, %v1435_v39, %v1436_v40  ;;  %v6509_v1 = vsel %vm1369_vm5, %v1436_v40, %v1438_v12  ;;  %v1445_v39 = vrot.slane %v6376_v44, 2  ;;  %v559_v57 = vmax.f32 %v505_v63, 0.0 }
  0xfa   : > { %4491 = vmatprep.mubr.msk.f32.mxu1 %vm783_vm0, %v5836_v48  ;;  %7404 = vst [vmem:[#allocation61_spill] sm:$0xff] %v6509_v1  ;;  %v6525_v40 = vsel %vm567_vm2, %v557_v37, 0.0  ;;  %v6532_v32 = vsel %vm1369_vm5, %v1441_v23, %v1443_v26  ;;  %v1448_v12 = vrot.slane %v6407_v20, 2  ;;  %v2317_v49 = vrot.slane %v6519_v25, 2  ;;  %v6582_v26 = vld [vmem:[#allocation8 + $0x20] sm:$0xf] }
  0xfb   : > { %4716 = vmatmul.mubr.msk.f32.gmra.mrb[20].mxu0 %vm783_vm0, %v6470_v62  ;;  %v6538_v42 = vsel %vm1369_vm5, %v1445_v39, %v1446_v56  ;;  %v2316_v3 = vrot.slane %v6525_v40, 2  ;;  %v6544_v63 = vsel %vm578_vm4, %v559_v57, 0.0  ;;  %v6667_v39 = vld [vmem:[#allocation8 + $0x10] sm:$0xf] }
  0xfc   : > { %4718 = vmatprep.mubr.msk.f32.mxu0 %vm783_vm0, %v6477_v45  ;;  %7406 = vst [vmem:[#allocation63_spill] sm:$0xff] %v6538_v42  ;;  %v6553_v20 = vsel %vm1369_vm5, %v1446_v56, %v1448_v12  ;;  %v2319_v23 = vrot.slane %v6544_v63, 2  ;;  %v7414_v56 = vld [vmem:[#allocation45_spill] sm:$0xff]  ;;  %v7415_v57 = vld [vmem:[#allocation48_spill] sm:$0xff]  ;;  %v7416_v12 = vld [vmem:[#allocation50_spill] sm:$0xff] }
  0xfd   : > { %4492 = vmatmul.mubr.msk.f32.gmra.mrb[4].mxu1 %vm783_vm0, %v5829_v43  ;;  %7407 = vst [vmem:[#allocation64_spill] sm:$0xff] %v6553_v20  ;;  %v6559_v7 = vsel %vm1369_vm5, %v2316_v3, %v2317_v49  ;;  %v7417_v3 = vld [vmem:[#allocation21_spill] sm:$0xff] }
  0xfe   : > { %4494 = vmatprep.mubr.msk.f32.mxu1 %vm783_vm0, %v5856_v60  ;;  %7408 = vst [vmem:[#allocation65_spill] sm:$0xff] %v6559_v7  ;;  %v6568_v37 = vsel %vm1369_vm5, %v2317_v49, %v2319_v23  ;;  %v7418_v49 = vld [vmem:[#allocation22_spill] sm:$0xff]  ;;  %v7419_v23 = vld [vmem:[#allocation23_spill] sm:$0xff] }
  0xff   : > { %4719 = vmatmul.mubr.msk.f32.gmra.mrb[22].mxu0 %vm783_vm0, %v6490_v6  ;;  %7409 = vst [vmem:[#allocation66_spill] sm:$0xff] %v6568_v37 }
 0x100   : > { %4721 = vmatprep.mubr.msk.f32.mxu0 %vm783_vm0, %v6497_v9 }
 0x101   : > { %4495 = vmatmul.mubr.msk.f32.gmra.mrb[6].mxu1 %vm783_vm0, %v5852_v59 }
 0x102   : > { %4497 = vmatprep.mubr.msk.f32.mxu1 %vm783_vm0, %v5917_v35 }
 0x103   : > { %4722 = vmatmul.mubr.msk.f32.gmra.mrb[24].mxu0 %vm783_vm0, %v6509_v1 }
 0x104   : > { %4724 = vmatprep.mubr.msk.f32.mxu0 %vm783_vm0, %v6516_v10 }
 0x105   : > { %4498 = vmatmul.mubr.msk.f32.gmra.mrb[8].mxu1 %vm783_vm0, %v5906_v28 }
 0x106   : > { %4500 = vmatprep.mubr.msk.f32.mxu1 %vm783_vm0, %v5936_v50 }
 0x107   : > { %4725 = vmatmul.mubr.msk.f32.gmra.mrb[26].mxu0 %vm783_vm0, %v6532_v32 }
 0x108   : > { %4727 = vmatprep.mubr.msk.f32.mxu0 %vm783_vm0, %v6538_v42 }
 0x109   : > { %4501 = vmatmul.mubr.msk.f32.gmra.mrb[10].mxu1 %vm783_vm0, %v5919_v38 }
 0x10a   : > { %4503 = vmatprep.mubr.msk.f32.mxu1 %vm783_vm0, %v5991_v27 }
 0x10b   : > { %4728 = vmatmul.mubr.msk.f32.gmra.mrb[28].mxu0 %vm783_vm0, %v6553_v20 }
 0x10c   : > { %4730 = vmatprep.mubr.msk.f32.mxu0 %vm783_vm0, %v6559_v7  ;;  %v7424_v7 = vld [vmem:[#allocation58_spill] sm:$0xff] }
 0x10d   : > { %4504 = vmatmul.mubr.msk.f32.gmra.mrb[12].mxu1 %vm783_vm0, %v5981_v24 }
 0x10e   : > { %4506 = vmatprep.mubr.msk.f32.mxu1 %vm783_vm0, %v6016_v58 }
 0x10f   : > { %4731 = vmatmul.mubr.msk.f32.gmra.mrb[30].mxu0 %vm783_vm0, %v6568_v37  ;;  %v7423_v37 = vld [vmem:[#allocation25_spill] sm:$0xff] }
 0x110   : > { %4735 = vmatprep.mubr.msk.f32.mxu0 %vm783_vm0, %v5836_v48 }
 0x111   : > { %4507 = vmatmul.mubr.msk.f32.gmra.mrb[14].mxu1 %vm783_vm0, %v6006_v46 }
 0x112   : > { %4509 = vmatprep.mubr.msk.f32.mxu1 %vm783_vm0, %v6047_v22 }
 0x113   : > { %4736 = vmatmul.mubr.msk.f32.vlgmr.msra.gmra.mrb[0].mxu0 %vm783_vm0, %v5829_v43 }
 0x114   : > { %4784 = vmatpush3.msk.msra.mxu0 %vm848_vm1, %v6167_v2  ;;  %4738 = vmatprep.mubr.msk.f32.mxu0 %vm783_vm0, %v5856_v60  ;;  %v6645_v2 = vrot.slane %v7402_v51, 2 }
 0x115   : > { %4510 = vmatmul.mubr.msk.f32.gmra.mrb[16].mxu1 %vm783_vm0, %v6039_v18  ;;  %4833 = vmatprep.subr.msk.mxu0 %vm848_vm1, %v6582_v26 }
 0x116   : > { %4512 = vmatprep.mubr.msk.f32.mxu1 %vm783_vm0, %v6102_v47  ;;  %7410 = vst [vmem:[#allocation67_spill] sm:$0xff] %v6645_v2 }
 0x117   : > { %4739 = vmatmul.mubr.msk.f32.gmra.mrb[2].mxu0 %vm783_vm0, %v5852_v59 }
 0x118   : > { %4741 = vmatprep.mubr.msk.f32.mxu0 %vm783_vm0, %v5917_v35 }
 0x119   : > { %4513 = vmatmul.mubr.msk.f32.gmra.mrb[18].mxu1 %vm783_vm0, %v6077_v16 }
 0x11a   : > { %4515 = vmatprep.mubr.msk.f32.mxu1 %vm783_vm0, %v6131_v36 }
 0x11b   : > { %4742 = vmatmul.mubr.msk.f32.gmra.mrb[4].mxu0 %vm783_vm0, %v5906_v28 }
 0x11c   : > { %4744 = vmatprep.mubr.msk.f32.mxu0 %vm783_vm0, %v5936_v50 }
 0x11d   : > { %4516 = vmatmul.mubr.msk.f32.gmra.mrb[20].mxu1 %vm783_vm0, %v6127_v29 }
 0x11e   : > { %4518 = vmatprep.mubr.msk.f32.mxu1 %vm783_vm0, %v6207_v5 }
 0x11f   : > { %4745 = vmatmul.mubr.msk.f32.gmra.mrb[6].mxu0 %vm783_vm0, %v5919_v38 }
 0x120   : > { %4747 = vmatprep.mubr.msk.f32.mxu0 %vm783_vm0, %v5991_v27 }
 0x121   : > { %4519 = vmatmul.mubr.msk.f32.gmra.mrb[22].mxu1 %vm783_vm0, %v6187_v41 }
 0x122   : > { %4521 = vmatprep.mubr.msk.f32.mxu1 %vm783_vm0, %v6235_v0 }
 0x123   : > { %4748 = vmatmul.mubr.msk.f32.gmra.mrb[8].mxu0 %vm783_vm0, %v5981_v24 }
 0x124   : > { %4750 = vmatprep.mubr.msk.f32.mxu0 %vm783_vm0, %v6016_v58 }
 0x125   : > { %4522 = vmatmul.mubr.msk.f32.gmra.mrb[24].mxu1 %vm783_vm0, %v6231_v13 }
 0x126   : > { %4524 = vmatprep.mubr.msk.f32.mxu1 %vm783_vm0, %v6288_v21 }
 0x127   : > { %4751 = vmatmul.mubr.msk.f32.gmra.mrb[10].mxu0 %vm783_vm0, %v6006_v46 }
 0x128   : > { %4753 = vmatprep.mubr.msk.f32.mxu0 %vm783_vm0, %v6047_v22 }
 0x129   : > { %4525 = vmatmul.mubr.msk.f32.gmra.mrb[26].mxu1 %vm783_vm0, %v6284_v4 }
 0x12a   : > { %4527 = vmatprep.mubr.msk.f32.mxu1 %vm783_vm0, %v6331_v61 }
 0x12b   : > { %4754 = vmatmul.mubr.msk.f32.gmra.mrb[12].mxu0 %vm783_vm0, %v6039_v18 }
 0x12c   : > { %4756 = vmatprep.mubr.msk.f32.mxu0 %vm783_vm0, %v6102_v47 }
 0x12d   : > { %4528 = vmatmul.mubr.msk.f32.gmra.mrb[28].mxu1 %vm783_vm0, %v6327_v8 }
 0x12e   : > { %4530 = vmatprep.mubr.msk.f32.mxu1 %vm783_vm0, %v6376_v44 }
 0x12f   : > { %4757 = vmatmul.mubr.msk.f32.gmra.mrb[14].mxu0 %vm783_vm0, %v6077_v16 }
 0x130   : > { %4759 = vmatprep.mubr.msk.f32.mxu0 %vm783_vm0, %v6131_v36 }
 0x131   : > { %4531 = vmatmul.mubr.msk.f32.gmra.mrb[30].mxu1 %vm783_vm0, %v6368_v31 }
 0x132   : > { %4535 = vmatprep.mubr.msk.f32.mxu1 %vm783_vm0, %v6645_v2 }
 0x133   : > { %4760 = vmatmul.mubr.msk.f32.gmra.mrb[16].mxu0 %vm783_vm0, %v6127_v29 }
 0x134   : > { %4762 = vmatprep.mubr.msk.f32.mxu0 %vm783_vm0, %v6207_v5 }
 0x135   : > { %4536 = vmatmul.mubr.msk.f32.vlgmr.msra.gmra.mrb[0].mxu1 %vm783_vm0, %v6645_v2  ;;  %v7420_v2 = vld [vmem:[#allocation54_spill] sm:$0xff] }
 0x136   : > { %4538 = vmatprep.mubr.msk.f32.mxu1 %vm783_vm0, %v6080_v14  ;;  %4584 = vmatpush3.msk.msra.mxu1 %vm848_vm1, %v6448_v15  ;;  %v7411_v14 = vld [vmem:[#allocation40_spill] sm:$0xff] }
 0x137   : > { %4763 = vmatmul.mubr.msk.f32.gmra.mrb[18].mxu0 %vm783_vm0, %v6187_v41  ;;  %4883 = vmatprep.subr.msk.mxu1 %vm848_vm1, %v6667_v39  ;;  %v7413_v15 = vld [vmem:[#allocation44_spill] sm:$0xff] }
 0x138   : > { %4765 = vmatprep.mubr.msk.f32.mxu0 %vm783_vm0, %v6235_v0 }
 0x139   : > { %4539 = vmatmul.mubr.msk.f32.gmra.mrb[2].mxu1 %vm783_vm0, %v6085_v19  ;;  %v7412_v19 = vld [vmem:[#allocation41_spill] sm:$0xff] }
 0x13a   : > { %4541 = vmatprep.mubr.msk.f32.mxu1 %vm783_vm0, %v6140_v33 }
 0x13b   : > { %4766 = vmatmul.mubr.msk.f32.gmra.mrb[20].mxu0 %vm783_vm0, %v6231_v13 }
 0x13c   : > { %4768 = vmatprep.mubr.msk.f32.mxu0 %vm783_vm0, %v6288_v21 }
 0x13d   : > { %4542 = vmatmul.mubr.msk.f32.gmra.mrb[4].mxu1 %vm783_vm0, %v6150_v52 }
 0x13e   : > { %4544 = vmatprep.mubr.msk.f32.mxu1 %vm783_vm0, %v6178_v54 }
 0x13f   : > { %4769 = vmatmul.mubr.msk.f32.gmra.mrb[22].mxu0 %vm783_vm0, %v6284_v4 }
 0x140   : > { %4771 = vmatprep.mubr.msk.f32.mxu0 %vm783_vm0, %v6331_v61 }
 0x141   : > { %4545 = vmatmul.mubr.msk.f32.gmra.mrb[6].mxu1 %vm783_vm0, %v6193_v34 }
 0x142   : > { %4547 = vmatprep.mubr.msk.f32.mxu1 %vm783_vm0, %v7411_v14 }
 0x143   : > { %4772 = vmatmul.mubr.msk.f32.gmra.mrb[24].mxu0 %vm783_vm0, %v6327_v8 }
 0x144   : > { %4774 = vmatprep.mubr.msk.f32.mxu0 %vm783_vm0, %v6376_v44 }
 0x145   : > { %4548 = vmatmul.mubr.msk.f32.gmra.mrb[8].mxu1 %vm783_vm0, %v7412_v19 }
 0x146   : > { %4550 = vmatprep.mubr.msk.f32.mxu1 %vm783_vm0, %v7413_v15 }
 0x147   : > { %4775 = vmatmul.mubr.msk.f32.gmra.mrb[26].mxu0 %vm783_vm0, %v6368_v31  ;;  %v7428_v31 = vld [vmem:[#allocation60_spill] sm:$0xff] }
 0x148   : > { %4777 = vmatprep.mubr.msk.f32.mxu0 %vm783_vm0, %v6525_v40 }
 0x149   : > { %4551 = vmatmul.mubr.msk.f32.gmra.mrb[10].mxu1 %vm783_vm0, %v7414_v56 }
 0x14a   : > { %4553 = vmatprep.mubr.msk.f32.mxu1 %vm783_vm0, %v7415_v57 }
 0x14b   : > { %4778 = vmatmul.mubr.msk.f32.gmra.mrb[28].mxu0 %vm783_vm0, %v6519_v25 }
 0x14c   : > { %4780 = vmatprep.mubr.f32.mxu0 %v7402_v51 }
 0x14d   : > { %4554 = vmatmul.mubr.msk.f32.gmra.mrb[12].mxu1 %vm783_vm0, %v7416_v12 }
 0x14e   : > { %4556 = vmatprep.mubr.msk.f32.mxu1 %vm783_vm0, %v6371_v55 }
 0x14f   : > { %4781 = vmatmul.mubr.f32.gmra.mrb[30].mxu0 %v7402_v51  ;;  %v7421_v51 = vld [vmem:[#allocation56_spill] sm:$0xff] }
 0x150   : > { %4785 = vmatprep.mubr.msk.f32.mxu0 %vm783_vm0, %v7417_v3  ;;  %v7422_v3 = vld [vmem:[#allocation24_spill] sm:$0xff] }
 0x151   : > { %4557 = vmatmul.mubr.msk.f32.gmra.mrb[14].mxu1 %vm783_vm0, %v6381_v11 }
 0x152   : > { %4559 = vmatprep.mubr.msk.f32.mxu1 %vm783_vm0, %v6395_v53 }
 0x153   : > { %4786 = vmatmul.mubr.msk.f32.vlgmr.msra.gmra.mrb[0].mxu0 %vm783_vm0, %v7418_v49  ;;  %v7425_v49 = vld [vmem:[#allocation59_spill] sm:$0xff] }
 0x154   : > { %4834 = vmatpush3.msk.msra.mxu0 %vm848_vm1, %v6582_v26  ;;  %4788 = vmatprep.mubr.msk.f32.mxu0 %vm783_vm0, %v7419_v23  ;;  %v7426_v26 = vld [vmem:[#allocation26_spill] sm:$0xff]  ;;  %v7427_v23 = vld [vmem:[#allocation27_spill] sm:$0xff] }
 0x155   : > { %4560 = vmatmul.mubr.msk.f32.gmra.mrb[16].mxu1 %vm783_vm0, %v7420_v2 }
 0x156   : > { %4562 = vmatprep.mubr.msk.f32.mxu1 %vm783_vm0, %v7421_v51 }
 0x157   : > { %4789 = vmatmul.mubr.msk.f32.gmra.mrb[2].mxu0 %vm783_vm0, %v7422_v3  ;;  %v7429_v3 = vld [vmem:[#allocation28_spill] sm:$0xff] }
 0x158   : > { %4791 = vmatprep.mubr.msk.f32.mxu0 %vm783_vm0, %v7423_v37  ;;  %v7430_v37 = vld [vmem:[#allocation29_spill] sm:$0xff] }
 0x159   : > { %4563 = vmatmul.mubr.msk.f32.gmra.mrb[18].mxu1 %vm783_vm0, %v7424_v7 }
 0x15a   : > { %4565 = vmatprep.mubr.msk.f32.mxu1 %vm783_vm0, %v7425_v49 }
 0x15b   : > { %4792 = vmatmul.mubr.msk.f32.gmra.mrb[4].mxu0 %vm783_vm0, %v7426_v26  ;;  %v7431_v26 = vld [vmem:[#allocation30_spill] sm:$0xff] }
 0x15c   : > { %4794 = vmatprep.mubr.msk.f32.mxu0 %vm783_vm0, %v7427_v23  ;;  %v7432_v23 = vld [vmem:[#allocation31_spill] sm:$0xff] }
 0x15d   : > { %4566 = vmatmul.mubr.msk.f32.gmra.mrb[20].mxu1 %vm783_vm0, %v7428_v31 }
 0x15e   : > { %4568 = vmatprep.mubr.msk.f32.mxu1 %vm783_vm0, %v6452_v17 }
 0x15f   : > { %4795 = vmatmul.mubr.msk.f32.gmra.mrb[6].mxu0 %vm783_vm0, %v7429_v3  ;;  %v7433_v3 = vld [vmem:[#allocation32_spill] sm:$0xff] }
 0x160   : > { %4797 = vmatprep.mubr.msk.f32.mxu0 %vm783_vm0, %v7430_v37  ;;  %v7434_v37 = vld [vmem:[#allocation33_spill] sm:$0xff] }
 0x161   : > { %4569 = vmatmul.mubr.msk.f32.gmra.mrb[22].mxu1 %vm783_vm0, %v6470_v62 }
 0x162   : > { %4571 = vmatprep.mubr.msk.f32.mxu1 %vm783_vm0, %v6477_v45 }
 0x163   : > { %4798 = vmatmul.mubr.msk.f32.gmra.mrb[8].mxu0 %vm783_vm0, %v7431_v26  ;;  %v7435_v26 = vld [vmem:[#allocation34_spill] sm:$0xff] }
 0x164   : > { %4800 = vmatprep.mubr.msk.f32.mxu0 %vm783_vm0, %v7432_v23  ;;  %v7436_v23 = vld [vmem:[#allocation35_spill] sm:$0xff] }
 0x165   : > { %4572 = vmatmul.mubr.msk.f32.gmra.mrb[24].mxu1 %vm783_vm0, %v6490_v6 }
 0x166   : > { %4574 = vmatprep.mubr.msk.f32.mxu1 %vm783_vm0, %v6497_v9 }
 0x167   : > { %4801 = vmatmul.mubr.msk.f32.gmra.mrb[10].mxu0 %vm783_vm0, %v7433_v3  ;;  %v7437_v3 = vld [vmem:[#allocation36_spill] sm:$0xff] }
 0x168   : > { %4803 = vmatprep.mubr.msk.f32.mxu0 %vm783_vm0, %v7434_v37  ;;  %v7438_v37 = vld [vmem:[#allocation37_spill] sm:$0xff] }
 0x169   : > { %4575 = vmatmul.mubr.msk.f32.gmra.mrb[26].mxu1 %vm783_vm0, %v6509_v1  ;;  %v7441_v1 = vld [vmem:[#allocation39_spill] sm:$0xff] }
 0x16a   : > { %4577 = vmatprep.mubr.msk.f32.mxu1 %vm783_vm0, %v6516_v10  ;;  %v7439_v10 = vld [vmem:[#allocation20_spill] sm:$0xff] }
 0x16b   : > { %4804 = vmatmul.mubr.msk.f32.gmra.mrb[12].mxu0 %vm783_vm0, %v7435_v26  ;;  %v7440_v26 = vld [vmem:[#allocation38_spill] sm:$0xff] }
 0x16c   : > { %4806 = vmatprep.mubr.msk.f32.mxu0 %vm783_vm0, %v7436_v23 }
 0x16d   : > { %4578 = vmatmul.mubr.msk.f32.gmra.mrb[28].mxu1 %vm783_vm0, %v6532_v32 }
 0x16e   : > { %4580 = vmatprep.mubr.msk.f32.mxu1 %vm783_vm0, %v6538_v42  ;;  %v7442_v42 = vld [vmem:[#allocation42_spill] sm:$0xff] }
 0x16f   : > { %4807 = vmatmul.mubr.msk.f32.gmra.mrb[14].mxu0 %vm783_vm0, %v7437_v3 }
 0x170   : > { %4809 = vmatprep.mubr.msk.f32.mxu0 %vm783_vm0, %v7438_v37 }
 0x171   : > { %4581 = vmatmul.mubr.msk.f32.gmra.mrb[30].mxu1 %vm783_vm0, %v6553_v20  ;;  %v7443_v20 = vld [vmem:[#allocation43_spill] sm:$0xff] }
 0x172   : > { %4585 = vmatprep.mubr.msk.f32.mxu1 %vm783_vm0, %v7439_v10  ;;  %v7444_v10 = vld [vmem:[#allocation46_spill] sm:$0xff] }
 0x173   : > { %4810 = vmatmul.mubr.msk.f32.gmra.mrb[16].mxu0 %vm783_vm0, %v7440_v26 }
 0x174   : > { %4812 = vmatprep.mubr.msk.f32.mxu0 %vm783_vm0, %v7441_v1 }
 0x175   : > { %4586 = vmatmul.mubr.msk.f32.vlgmr.msra.gmra.mrb[0].mxu1 %vm783_vm0, %v5811_v30  ;;  %v7445_v30 = vld [vmem:[#allocation47_spill] sm:$0xff] }
 0x176   : > { %4588 = vmatprep.mubr.msk.f32.mxu1 %vm783_vm0, %v5836_v48  ;;  %4884 = vmatpush3.msk.msra.mxu1 %vm848_vm1, %v6667_v39  ;;  %v7446_v48 = vld [vmem:[#allocation49_spill] sm:$0xff]  ;;  %v7447_v39 = vld [vmem:[#allocation51_spill] sm:$0xff] }
 0x177   : > { %4813 = vmatmul.mubr.msk.f32.gmra.mrb[18].mxu0 %vm783_vm0, %v7442_v42 }
 0x178   : > { %4815 = vmatprep.mubr.msk.f32.mxu0 %vm783_vm0, %v7443_v20 }
 0x179   : > { %4589 = vmatmul.mubr.msk.f32.gmra.mrb[2].mxu1 %vm783_vm0, %v5829_v43  ;;  %v2045_v43 = vrot.slane %v6525_v40, 1 }
 0x17a   : > { %4591 = vmatprep.mubr.msk.f32.mxu1 %vm783_vm0, %v5856_v60  ;;  %v2046_v60 = vrot.slane %v6519_v25, 1 }
 0x17b   : > { %4816 = vmatmul.mubr.msk.f32.gmra.mrb[20].mxu0 %vm783_vm0, %v7444_v10 }
 0x17c   : > { %4818 = vmatprep.mubr.msk.f32.mxu0 %vm783_vm0, %v7445_v30 }
 0x17d   : > { %4592 = vmatmul.mubr.msk.f32.gmra.mrb[4].mxu1 %vm783_vm0, %v5852_v59  ;;  %v7448_v59 = vld [vmem:[#allocation53_spill] sm:$0xff] }
 0x17e   : > { %4594 = vmatprep.mubr.msk.f32.mxu1 %vm783_vm0, %v5917_v35  ;;  %v7449_v35 = vld [vmem:[#allocation55_spill] sm:$0xff] }
 0x17f   : > { %4819 = vmatmul.mubr.msk.f32.gmra.mrb[22].mxu0 %vm783_vm0, %v7446_v48  ;;  %v2048_v48 = vrot.slane %v6544_v63, 1 }
 0x180   : > { %4821 = vmatprep.mubr.msk.f32.mxu0 %vm783_vm0, %v7447_v39  ;;  %v7450_v39 = vld [vmem:[#allocation57_spill] sm:$0xff] }
 0x181   : > { %4595 = vmatmul.mubr.msk.f32.gmra.mrb[6].mxu1 %vm783_vm0, %v5906_v28  ;;  %v6833_v28 = vsel %vm700_vm3, %v2045_v43, %v2046_v60 }
 0x182   : > { %4597 = vmatprep.mubr.msk.f32.mxu1 %vm783_vm0, %v5936_v50  ;;  %v6842_v50 = vsel %vm700_vm3, %v2046_v60, %v2048_v48 }
 0x183   : > { %4822 = vmatmul.mubr.msk.f32.gmra.mrb[24].mxu0 %vm783_vm0, %v7448_v59 }
 0x184   : > { %4824 = vmatprep.mubr.msk.f32.mxu0 %vm783_vm0, %v7449_v35 }
 0x185   : > { %4598 = vmatmul.mubr.msk.f32.gmra.mrb[8].mxu1 %vm783_vm0, %v5919_v38  ;;  %v7451_v38 = vld [vmem:[#allocation19_spill] sm:$0xff] }
 0x186   : > { %4600 = vmatprep.mubr.msk.f32.mxu1 %vm783_vm0, %v5991_v27  ;;  %v7455_v27 = vld [vmem:[#allocation63_spill] sm:$0xff] }
 0x187   : > { %4825 = vmatmul.mubr.msk.f32.gmra.mrb[26].mxu0 %vm783_vm0, %v7450_v39 }
 0x188   : > { %4827 = vmatprep.mubr.msk.f32.mxu0 %vm783_vm0, %v6833_v28 }
 0x189   : > { %4601 = vmatmul.mubr.msk.f32.gmra.mrb[10].mxu1 %vm783_vm0, %v5981_v24  ;;  %v7454_v24 = vld [vmem:[#allocation62_spill] sm:$0xff] }
 0x18a   : > { %4603 = vmatprep.mubr.msk.f32.mxu1 %vm783_vm0, %v6016_v58  ;;  %v7457_v58 = vld [vmem:[#allocation51_spill] sm:$0xff] }
 0x18b   : > { %4828 = vmatmul.mubr.msk.f32.gmra.mrb[28].mxu0 %vm783_vm0, %v6842_v50 }
 0x18c   : > { %4830 = vmatprep.mubr.msk.f32.mxu0 %vm783_vm0, %v7451_v38 }
 0x18d   : > { %4604 = vmatmul.mubr.msk.f32.gmra.mrb[12].mxu1 %vm783_vm0, %v6006_v46  ;;  %v7456_v46 = vld [vmem:[#allocation49_spill] sm:$0xff] }
 0x18e   : > { %4606 = vmatprep.mubr.msk.f32.mxu1 %vm783_vm0, %v6047_v22  ;;  %v7459_v22 = vld [vmem:[#allocation65_spill] sm:$0xff] }
 0x18f   : > { %4831 = vmatmul.mubr.msk.f32.gmra.mrb[30].mxu0 %vm783_vm0, %v7451_v38 }
 0x190   : > { %4835 = vmatprep.mubr.msk.f32.mxu0 %vm783_vm0, %v6140_v33 }
 0x191   : > { %4607 = vmatmul.mubr.msk.f32.gmra.mrb[14].mxu1 %vm783_vm0, %v6039_v18  ;;  %v7458_v18 = vld [vmem:[#allocation64_spill] sm:$0xff] }
 0x192   : > { %4609 = vmatprep.mubr.msk.f32.mxu1 %vm783_vm0, %v6102_v47  ;;  %v7461_v47 = vld [vmem:[#allocation67_spill] sm:$0xff] }
 0x193   : > { %4836 = vmatmul.mubr.msk.f32.vlgmr.msra.gmra.mrb[0].mxu0 %vm783_vm0, %v6150_v52 }
 0x194   : > { %4838 = vmatprep.mubr.msk.f32.mxu0 %vm783_vm0, %v6178_v54 }
 0x195   : > { %4610 = vmatmul.mubr.msk.f32.gmra.mrb[16].mxu1 %vm783_vm0, %v6077_v16  ;;  %v7460_v16 = vld [vmem:[#allocation66_spill] sm:$0xff] }
 0x196   : > { %4612 = vmatprep.mubr.msk.f32.mxu1 %vm783_vm0, %v6131_v36 }
 0x197   : > { %4839 = vmatmul.mubr.msk.f32.gmra.mrb[2].mxu0 %vm783_vm0, %v6193_v34 }
 0x198   : > { %4841 = vmatprep.mubr.msk.f32.mxu0 %vm783_vm0, %v7411_v14 }
 0x199   : > { %4613 = vmatmul.mubr.msk.f32.gmra.mrb[18].mxu1 %vm783_vm0, %v6127_v29 }
 0x19a   : > { %4615 = vmatprep.mubr.msk.f32.mxu1 %vm783_vm0, %v6207_v5 }
 0x19b   : > { %4842 = vmatmul.mubr.msk.f32.gmra.mrb[4].mxu0 %vm783_vm0, %v7412_v19 }
 0x19c   : > { %4844 = vmatprep.mubr.msk.f32.mxu0 %vm783_vm0, %v7413_v15 }
 0x19d   : > { %4616 = vmatmul.mubr.msk.f32.gmra.mrb[20].mxu1 %vm783_vm0, %v6187_v41 }
 0x19e   : > { %4618 = vmatprep.mubr.msk.f32.mxu1 %vm783_vm0, %v6235_v0  ;;  %v7452_v0 = vld [vmem:[#allocation52_spill] sm:$0xff] }
 0x19f   : > { %4845 = vmatmul.mubr.msk.f32.gmra.mrb[6].mxu0 %vm783_vm0, %v7414_v56 }
 0x1a0   : > { %4847 = vmatprep.mubr.msk.f32.mxu0 %vm783_vm0, %v7415_v57 }
 0x1a1   : > { %4619 = vmatmul.mubr.msk.f32.gmra.mrb[22].mxu1 %vm783_vm0, %v6231_v13  ;;  %v7453_v13 = vld [vmem:[#allocation61_spill] sm:$0xff] }
 0x1a2   : > { %4621 = vmatprep.mubr.msk.f32.mxu1 %vm783_vm0, %v6288_v21 }
 0x1a3   : > { %4848 = vmatmul.mubr.msk.f32.gmra.mrb[8].mxu0 %vm783_vm0, %v7416_v12 }
 0x1a4   : > { %4850 = vmatprep.mubr.msk.f32.mxu0 %vm783_vm0, %v6371_v55 }
 0x1a5   : > { %4622 = vmatmul.mubr.msk.f32.gmra.mrb[24].mxu1 %vm783_vm0, %v6284_v4 }
 0x1a6   : > { %4624 = vmatprep.mubr.msk.f32.mxu1 %vm783_vm0, %v6331_v61 }
 0x1a7   : > { %4851 = vmatmul.mubr.msk.f32.gmra.mrb[10].mxu0 %vm783_vm0, %v6381_v11 }
 0x1a8   : > { %4853 = vmatprep.mubr.msk.f32.mxu0 %vm783_vm0, %v6395_v53 }
 0x1a9   : > { %4625 = vmatmul.mubr.msk.f32.gmra.mrb[26].mxu1 %vm783_vm0, %v6327_v8 }
 0x1aa   : > { %4627 = vmatprep.mubr.msk.f32.mxu1 %vm783_vm0, %v6376_v44 }
 0x1ab   : > { %4854 = vmatmul.mubr.msk.f32.gmra.mrb[12].mxu0 %vm783_vm0, %v7420_v2 }
 0x1ac   : > { %4856 = vmatprep.mubr.msk.f32.mxu0 %vm783_vm0, %v7421_v51 }
 0x1ad   : > { %4628 = vmatmul.mubr.msk.f32.gmra.mrb[28].mxu1 %vm783_vm0, %v7452_v0 }
 0x1ae   : > { %4630 = vmatprep.mubr.msk.f32.mxu1 %vm783_vm0, %v6525_v40 }
 0x1af   : > { %4857 = vmatmul.mubr.msk.f32.gmra.mrb[14].mxu0 %vm783_vm0, %v7424_v7 }
 0x1b0   : > { %4859 = vmatprep.mubr.msk.f32.mxu0 %vm783_vm0, %v7425_v49 }
 0x1b1   : > { %4631 = vmatmul.mubr.msk.f32.gmra.mrb[30].mxu1 %vm783_vm0, %v6519_v25 }
 0x1b2   : > { %4659 = vmatprep.mubr.msk.f32.mxu1 %vm783_vm0, %v7436_v23 }
 0x1b3   : > { %4860 = vmatmul.mubr.msk.f32.gmra.mrb[16].mxu0 %vm783_vm0, %v7428_v31 }
 0x1b4   : > { %4862 = vmatprep.mubr.msk.f32.mxu0 %vm783_vm0, %v6452_v17  ;;  %v7005_v17 = vld [vmem:[#allocation10] ss:$0 sm:$0xff] }
 0x1b5   : > { %4660 = vmatmul.mubr.msk.f32.vlgmr.msra.gmra.mrb[16].mxu1 %vm783_vm0, %v7437_v3 }
 0x1b6   : > { %4662 = vmatprep.mubr.msk.f32.mxu1 %vm783_vm0, %v7438_v37 }
 0x1b7   : > { %4863 = vmatmul.mubr.msk.f32.gmra.mrb[18].mxu0 %vm783_vm0, %v6470_v62 }
 0x1b8   : > { %4865 = vmatprep.mubr.msk.f32.mxu0 %vm783_vm0, %v6477_v45 }
 0x1b9   : > { %4663 = vmatmul.mubr.msk.f32.gmra.mrb[18].mxu1 %vm783_vm0, %v7440_v26 }
 0x1ba   : > { %4665 = vmatprep.mubr.msk.f32.mxu1 %vm783_vm0, %v7441_v1 }
 0x1bb   : > { %4866 = vmatmul.mubr.msk.f32.gmra.mrb[20].mxu0 %vm783_vm0, %v6490_v6 }
 0x1bc   : > { %4868 = vmatprep.mubr.msk.f32.mxu0 %vm783_vm0, %v6497_v9 }
 0x1bd   : > { %4666 = vmatmul.mubr.msk.f32.gmra.mrb[20].mxu1 %vm783_vm0, %v7442_v42 }
 0x1be   : > { %4668 = vmatprep.mubr.msk.f32.mxu1 %vm783_vm0, %v7443_v20 }
 0x1bf   : > { %4869 = vmatmul.mubr.msk.f32.gmra.mrb[22].mxu0 %vm783_vm0, %v7453_v13 }
 0x1c0   : > { %4871 = vmatprep.mubr.msk.f32.mxu0 %vm783_vm0, %v7454_v24 }
 0x1c1   : > { %4669 = vmatmul.mubr.msk.f32.gmra.mrb[22].mxu1 %vm783_vm0, %v7444_v10 }
 0x1c2   : > { %4671 = vmatprep.mubr.msk.f32.mxu1 %vm783_vm0, %v7445_v30 }
 0x1c3   : > { %4872 = vmatmul.mubr.msk.f32.gmra.mrb[24].mxu0 %vm783_vm0, %v6532_v32 }
 0x1c4   : > { %4874 = vmatprep.mubr.msk.f32.mxu0 %vm783_vm0, %v7455_v27 }
 0x1c5   : > { %4672 = vmatmul.mubr.msk.f32.gmra.mrb[24].mxu1 %vm783_vm0, %v7456_v46 }
 0x1c6   : > { %4674 = vmatprep.mubr.msk.f32.mxu1 %vm783_vm0, %v7457_v58 }
 0x1c7   : > { %4875 = vmatmul.mubr.msk.f32.gmra.mrb[26].mxu0 %vm783_vm0, %v7458_v18 }
 0x1c8   : > { %4877 = vmatprep.mubr.msk.f32.mxu0 %vm783_vm0, %v7459_v22 }
 0x1c9   : > { %4675 = vmatmul.mubr.msk.f32.gmra.mrb[26].mxu1 %vm783_vm0, %v7448_v59 }
 0x1ca   : > { %4677 = vmatprep.mubr.msk.f32.mxu1 %vm783_vm0, %v7449_v35 }
 0x1cb   : > { %4878 = vmatmul.mubr.msk.f32.gmra.mrb[28].mxu0 %vm783_vm0, %v7460_v16 }
 0x1cc   : > { %4880 = vmatprep.mubr.msk.f32.mxu0 %vm783_vm0, %v7461_v47 }
 0x1cd   : > { %4678 = vmatmul.mubr.msk.f32.gmra.mrb[28].mxu1 %vm783_vm0, %v7450_v39 }
 0x1ce   : > { %4680 = vmatprep.mubr.msk.f32.mxu1 %vm783_vm0, %v6833_v28 }
 0x1cf   : > { %4881 = vmatmul.mubr.msk.f32.gmra.mrb[30].mxu0 %vm783_vm0, %v7461_v47 }
 0x1d1   : > { %4681 = vmatmul.mubr.msk.f32.gmra.mrb[30].mxu1 %vm783_vm0, %v6842_v50 }
 0x248   : > { %v4587_v29 = vpop.f32.mrb[0].mxu1 }
 0x249   : > { %v1853_v36 = vpop.f32.mrb[1].mxu1 }
 0x24c   : > { %v4590_v33 = vpop.f32.mrb[2].mxu1 }
 0x24d   : > { %v1863_v52 = vpop.f32.mrb[3].mxu1 }
 0x250   : > { %v4593_v54 = vpop.f32.mrb[4].mxu1 }
 0x251   : > { %v1873_v41 = vpop.f32.mrb[5].mxu1 }
 0x254   : > { %v4596_v34 = vpop.f32.mrb[6].mxu1 }
 0x255   : > { %v1883_v5 = vpop.f32.mrb[7].mxu1 }
 0x258   : > { %v6988_v4 = vpop.f32.mrb[8].mxu1 }
 0x259   : > { %v6990_v21 = vpop.f32.mrb[9].mxu1 }
 0x25c   : > { %v6992_v8 = vpop.f32.mrb[10].mxu1 }
 0x25d   : > { %v6994_v61 = vpop.f32.mrb[11].mxu1 }
 0x260   : > { %v6996_v31 = vpop.f32.mrb[12].mxu1 }
 0x261   : > { %v6998_v55 = vpop.f32.mrb[13].mxu1 }
 0x264   : > { %v7000_v44 = vpop.f32.mrb[14].mxu1 }
 0x265   : > { %v7002_v11 = vpop.f32.mrb[15].mxu1 }
 0x266   : > { %v4837_v53 = vpop.f32.mrb[0].mxu0 }
 0x267   : > { %v4885_v62 = vadd.f32 %v4837_v53, %v4587_v29  ;;  %v3207_v45 = vpop.f32.mrb[1].mxu0 }
 0x268   : > { %v4886_v6 = vadd.f32 %v3207_v45, %v1853_v36 }
 0x269   : > { %v3406_v9 = vadd.f32 %v4885_v62, %v7005_v17 }
 0x26a   : > { %v3405_v1 = vadd.f32 %v4886_v6, %v7005_v17  ;;  %v4840_v25 = vpop.f32.mrb[2].mxu0 }
 0x26b   : > { %v3438_v40 = vsel %vm783_vm0, %v3406_v9, 0.0  ;;  %v3509_v32 = vmul.f32 %v3406_v9, %v3406_v9  ;;  %3611 = vst.msk [vmem:[%s7010_s29 + $0x8] sm:$0xff] %vm783_vm0, %v3406_v9  ;;  %v4887_v42 = vadd.f32 %v4840_v25, %v4590_v33  ;;  %v3217_v63 = vpop.f32.mrb[3].mxu0 }
 0x26c   : > { %v3437_v20 = vsel %vm783_vm0, %v3405_v1, 0.0  ;;  %v3508_v7 = vmul.f32 %v3405_v1, %v3405_v1  ;;  %3610 = vst.msk [vmem:[%s7010_s29] sm:$0xff] %vm783_vm0, %v3405_v1  ;;  %v4888_v2 = vadd.f32 %v3217_v63, %v1863_v52 }
 0x26d   : > { %v3541_v14 = vsel %vm783_vm0, %v3509_v32, 0.0  ;;  %v3439_v19 = vadd.f32 %v3438_v40, %v3437_v20  ;;  %v3408_v15 = vadd.f32 %v4887_v42, %v7005_v17 }
 0x26e   : > { %v3540_v56 = vsel %vm783_vm0, %v3508_v7, 0.0  ;;  %v3407_v57 = vadd.f32 %v4888_v2, %v7005_v17  ;;  %v4843_v12 = vpop.f32.mrb[4].mxu0 }
 0x26f   : > { %v3542_v51 = vadd.f32 %v3541_v14, %v3540_v56  ;;  %v3511_v49 = vmul.f32 %v3408_v15, %v3408_v15  ;;  %3613 = vst.msk [vmem:[%s7010_s29 + $0x18] sm:$0xff] %vm783_vm0, %v3408_v15  ;;  %v4889_v23 = vadd.f32 %v4843_v12, %v4593_v54  ;;  %v3227_v3 = vpop.f32.mrb[5].mxu0  ;;  %v3442_v39 = vsel %vm783_vm0, %v3408_v15, 0.0 }
 0x270   : > { %v3440_v37 = vsel %vm783_vm0, %v3407_v57, 0.0  ;;  %v3510_v26 = vmul.f32 %v3407_v57, %v3407_v57  ;;  %3612 = vst.msk [vmem:[%s7010_s29 + $0x10] sm:$0xff] %vm783_vm0, %v3407_v57  ;;  %v4890_v10 = vadd.f32 %v3227_v3, %v1873_v41 }
 0x271   : > { %v3441_v30 = vadd.f32 %v3440_v37, %v3439_v19  ;;  %v3410_v48 = vadd.f32 %v4889_v23, %v7005_v17  ;;  %v3545_v35 = vsel %vm783_vm0, %v3511_v49, 0.0 }
 0x272   : > { %v3543_v43 = vsel %vm783_vm0, %v3510_v26, 0.0  ;;  %v3409_v60 = vadd.f32 %v4890_v10, %v7005_v17  ;;  %v4846_v59 = vpop.f32.mrb[6].mxu0 }
 0x273   : > { %v3544_v28 = vadd.f32 %v3543_v43, %v3542_v51  ;;  %v3513_v50 = vmul.f32 %v3410_v48, %v3410_v48  ;;  %3615 = vst.msk [vmem:[%s7010_s29 + $0x28] sm:$0xff] %vm783_vm0, %v3410_v48  ;;  %v3443_v38 = vadd.f32 %v3442_v39, %v3441_v30  ;;  %v3237_v0 = vpop.f32.mrb[7].mxu0  ;;  %v4891_v27 = vadd.f32 %v4846_v59, %v4596_v34 }
 0x274   : > { %v3444_v13 = vsel %vm783_vm0, %v3409_v60, 0.0  ;;  %v3512_v24 = vmul.f32 %v3409_v60, %v3409_v60  ;;  %3614 = vst.msk [vmem:[%s7010_s29 + $0x20] sm:$0xff] %vm783_vm0, %v3409_v60  ;;  %v4892_v46 = vadd.f32 %v3237_v0, %v1883_v5  ;;  %v3446_v22 = vsel %vm783_vm0, %v3410_v48, 0.0 }
 0x275   : > { %v3445_v58 = vadd.f32 %v3444_v13, %v3443_v38  ;;  %v3546_v18 = vadd.f32 %v3545_v35, %v3544_v28  ;;  %v3412_v47 = vadd.f32 %v4891_v27, %v7005_v17  ;;  %v3549_v34 = vsel %vm783_vm0, %v3513_v50, 0.0 }
 0x276   : > { %v3547_v16 = vsel %vm783_vm0, %v3512_v24, 0.0  ;;  %v3411_v29 = vadd.f32 %v4892_v46, %v7005_v17  ;;  %v4849_v36 = vpop.f32.mrb[8].mxu0 }
 0x277   : > { %v3548_v33 = vadd.f32 %v3547_v16, %v3546_v18  ;;  %v3447_v52 = vadd.f32 %v3446_v22, %v3445_v58  ;;  %v4893_v54 = vadd.f32 %v4849_v36, %v6988_v4  ;;  %v3247_v41 = vpop.f32.mrb[9].mxu0  ;;  %v3515_v5 = vmul.f32 %v3412_v47, %v3412_v47  ;;  %3617 = vst.msk [vmem:[%s7010_s29 + $0x38] sm:$0xff] %vm783_vm0, %v3412_v47 }
 0x278   : > { %v3448_v53 = vsel %vm783_vm0, %v3411_v29, 0.0  ;;  %v3514_v62 = vmul.f32 %v3411_v29, %v3411_v29  ;;  %3616 = vst.msk [vmem:[%s7010_s29 + $0x30] sm:$0xff] %vm783_vm0, %v3411_v29  ;;  %v4894_v1 = vadd.f32 %v3247_v41, %v6990_v21  ;;  %v3450_v40 = vsel %vm783_vm0, %v3412_v47, 0.0 }
 0x279   : > { %v3449_v45 = vadd.f32 %v3448_v53, %v3447_v52  ;;  %v3550_v6 = vadd.f32 %v3549_v34, %v3548_v33  ;;  %v3414_v9 = vadd.f32 %v4893_v54, %v7005_v17  ;;  %v3553_v32 = vsel %vm783_vm0, %v3515_v5, 0.0 }
 0x27a   : > { %v3551_v4 = vsel %vm783_vm0, %v3514_v62, 0.0  ;;  %v4852_v25 = vpop.f32.mrb[10].mxu0  ;;  %v3413_v63 = vadd.f32 %v4894_v1, %v7005_v17 }
 0x27b   : > { %v3552_v42 = vadd.f32 %v3551_v4, %v3550_v6  ;;  %3619 = vst.msk [vmem:[%s7010_s29 + $0x48] sm:$0xff] %vm783_vm0, %v3414_v9  ;;  %v3257_v20 = vpop.f32.mrb[11].mxu0  ;;  %v3517_v7 = vmul.f32 %v3414_v9, %v3414_v9  ;;  %v3451_v2 = vadd.f32 %v3450_v40, %v3449_v45  ;;  %v4895_v14 = vadd.f32 %v4852_v25, %v6992_v8 }
 0x27c   : > { %v4896_v21 = vadd.f32 %v3257_v20, %v6994_v61  ;;  %v3452_v19 = vsel %vm783_vm0, %v3413_v63, 0.0  ;;  %v3516_v15 = vmul.f32 %v3413_v63, %v3413_v63  ;;  %3618 = vst.msk [vmem:[%s7010_s29 + $0x40] sm:$0xff] %vm783_vm0, %v3413_v63  ;;  %v3454_v23 = vsel %vm783_vm0, %v3414_v9, 0.0 }
 0x27d   : > { %v3554_v56 = vadd.f32 %v3553_v32, %v3552_v42  ;;  %v3453_v57 = vadd.f32 %v3452_v19, %v3451_v2  ;;  %v3416_v12 = vadd.f32 %v4895_v14, %v7005_v17  ;;  %v3557_v37 = vsel %vm783_vm0, %v3517_v7, 0.0 }
 0x27e   : > { %v3415_v51 = vadd.f32 %v4896_v21, %v7005_v17  ;;  %v4855_v49 = vpop.f32.mrb[12].mxu0  ;;  %v3555_v8 = vsel %vm783_vm0, %v3516_v15, 0.0 }
 0x27f   : > { %v4897_v61 = vadd.f32 %v4855_v49, %v6996_v31  ;;  %v3267_v3 = vpop.f32.mrb[13].mxu0  ;;  %v3556_v26 = vadd.f32 %v3555_v8, %v3554_v56  ;;  %v3519_v10 = vmul.f32 %v3416_v12, %v3416_v12  ;;  %3621 = vst.msk [vmem:[%s7010_s29 + $0x58] sm:$0xff] %vm783_vm0, %v3416_v12  ;;  %v3455_v30 = vadd.f32 %v3454_v23, %v3453_v57 }
 0x280   : > { %3620 = vst.msk [vmem:[%s7010_s29 + $0x50] sm:$0xff] %vm783_vm0, %v3415_v51  ;;  %v3456_v48 = vsel %vm783_vm0, %v3415_v51, 0.0  ;;  %v3518_v39 = vmul.f32 %v3415_v51, %v3415_v51  ;;  %v4898_v60 = vadd.f32 %v3267_v3, %v6998_v55  ;;  %v3458_v28 = vsel %vm783_vm0, %v3416_v12, 0.0 }
 0x281   : > { %v3418_v43 = vadd.f32 %v4897_v61, %v7005_v17  ;;  %v3457_v59 = vadd.f32 %v3456_v48, %v3455_v30  ;;  %v3558_v31 = vadd.f32 %v3557_v37, %v3556_v26  ;;  %v3561_v58 = vsel %vm783_vm0, %v3519_v10, 0.0 }
 0x282   : > { %v4858_v35 = vpop.f32.mrb[14].mxu0  ;;  %v3559_v50 = vsel %vm783_vm0, %v3518_v39, 0.0  ;;  %v3417_v0 = vadd.f32 %v4898_v60, %v7005_v17 }
 0x283   : > { %v3521_v38 = vmul.f32 %v3418_v43, %v3418_v43  ;;  %3623 = vst.msk [vmem:[%s7010_s29 + $0x68] sm:$0xff] %vm783_vm0, %v3418_v43  ;;  %v3277_v13 = vpop.f32.mrb[15].mxu0  ;;  %v3560_v24 = vadd.f32 %v3559_v50, %v3558_v31  ;;  %v3459_v27 = vadd.f32 %v3458_v28, %v3457_v59  ;;  %v4899_v46 = vadd.f32 %v4858_v35, %v7000_v44 }
 0x284   : > { %v4900_v55 = vadd.f32 %v3277_v13, %v7002_v11  ;;  %v3460_v18 = vsel %vm783_vm0, %v3417_v0, 0.0  ;;  %v3520_v22 = vmul.f32 %v3417_v0, %v3417_v0  ;;  %3622 = vst.msk [vmem:[%s7010_s29 + $0x60] sm:$0xff] %vm783_vm0, %v3417_v0  ;;  %v3462_v44 = vsel %vm783_vm0, %v3418_v43, 0.0 }
 0x285   : > { %v3461_v16 = vadd.f32 %v3460_v18, %v3459_v27  ;;  %v3562_v47 = vadd.f32 %v3561_v58, %v3560_v24  ;;  %v3420_v29 = vadd.f32 %v4899_v46, %v7005_v17  ;;  %v3565_v54 = vsel %vm783_vm0, %v3521_v38, 0.0 }
 0x286   : > { %v3419_v36 = vadd.f32 %v4900_v55, %v7005_v17  ;;  %v4861_v33 = vpop.f32.mrb[16].mxu0  ;;  %v3563_v11 = vsel %vm783_vm0, %v3520_v22, 0.0 }
 0x287   : > { %v3287_v52 = vpop.f32.mrb[17].mxu0  ;;  %v3564_v41 = vadd.f32 %v3563_v11, %v3562_v47  ;;  %3625 = vst.msk [vmem:[%s7010_s29 + $0x78] sm:$0xff] %vm783_vm0, %v3420_v29  ;;  %v3463_v5 = vadd.f32 %v3462_v44, %v3461_v16  ;;  %v3523_v53 = vmul.f32 %v3420_v29, %v3420_v29  ;;  %v3466_v32 = vsel %vm783_vm0, %v3420_v29, 0.0 }
 0x288   : > { %v4661_v34 = vpop.f32.mrb[16].mxu1  ;;  %3624 = vst.msk [vmem:[%s7010_s29 + $0x70] sm:$0xff] %vm783_vm0, %v3419_v36  ;;  %v3464_v45 = vsel %vm783_vm0, %v3419_v36, 0.0  ;;  %v3522_v6 = vmul.f32 %v3419_v36, %v3419_v36 }
 0x289   : > { %v2205_v62 = vpop.f32.mrb[17].mxu1  ;;  %v4901_v9 = vadd.f32 %v4861_v33, %v4661_v34  ;;  %v3465_v1 = vadd.f32 %v3464_v45, %v3463_v5  ;;  %v3566_v4 = vadd.f32 %v3565_v54, %v3564_v41  ;;  %v3569_v19 = vsel %vm783_vm0, %v3523_v53, 0.0 }
 0x28a   : > { %v4902_v25 = vadd.f32 %v3287_v52, %v2205_v62  ;;  %v4864_v40 = vpop.f32.mrb[18].mxu0  ;;  %v3567_v42 = vsel %vm783_vm0, %v3522_v6, 0.0 }
 0x28b   : > { %v3422_v63 = vadd.f32 %v4901_v9, %v7005_v17  ;;  %v3297_v20 = vpop.f32.mrb[19].mxu0  ;;  %v3568_v7 = vadd.f32 %v3567_v42, %v3566_v4  ;;  %v3467_v21 = vadd.f32 %v3466_v32, %v3465_v1 }
 0x28c   : > { %v4664_v2 = vpop.f32.mrb[18].mxu1  ;;  %v3421_v14 = vadd.f32 %v4902_v25, %v7005_v17 }
 0x28d   : > { %v3525_v15 = vmul.f32 %v3422_v63, %v3422_v63  ;;  %3627 = vst.msk [vmem:[%s7010_s29 + $0x88] sm:$0xff] %vm783_vm0, %v3422_v63  ;;  %v2215_v56 = vpop.f32.mrb[19].mxu1  ;;  %v4903_v57 = vadd.f32 %v4864_v40, %v4664_v2  ;;  %v3570_v49 = vadd.f32 %v3569_v19, %v3568_v7  ;;  %v3470_v26 = vsel %vm783_vm0, %v3422_v63, 0.0 }
 0x28e   : > { %v3468_v12 = vsel %vm783_vm0, %v3421_v14, 0.0  ;;  %v3524_v51 = vmul.f32 %v3421_v14, %v3421_v14  ;;  %3626 = vst.msk [vmem:[%s7010_s29 + $0x80] sm:$0xff] %vm783_vm0, %v3421_v14  ;;  %v4904_v23 = vadd.f32 %v3297_v20, %v2215_v56  ;;  %v4867_v8 = vpop.f32.mrb[20].mxu0 }
 0x28f   : > { %v3469_v61 = vadd.f32 %v3468_v12, %v3467_v21  ;;  %v3424_v3 = vadd.f32 %v4903_v57, %v7005_v17  ;;  %v3307_v37 = vpop.f32.mrb[21].mxu0  ;;  %v3573_v39 = vsel %vm783_vm0, %v3525_v15, 0.0 }
 0x290   : > { %v3571_v10 = vsel %vm783_vm0, %v3524_v51, 0.0  ;;  %v4667_v30 = vpop.f32.mrb[20].mxu1  ;;  %v3423_v48 = vadd.f32 %v4904_v23, %v7005_v17 }
 0x291   : > { %v3572_v43 = vadd.f32 %v3571_v10, %v3570_v49  ;;  %v3527_v60 = vmul.f32 %v3424_v3, %v3424_v3  ;;  %3629 = vst.msk [vmem:[%s7010_s29 + $0x98] sm:$0xff] %vm783_vm0, %v3424_v3  ;;  %v2225_v59 = vpop.f32.mrb[21].mxu1  ;;  %v3471_v31 = vadd.f32 %v3470_v26, %v3469_v61  ;;  %v4905_v50 = vadd.f32 %v4867_v8, %v4667_v30 }
 0x292   : > { %v3472_v35 = vsel %vm783_vm0, %v3423_v48, 0.0  ;;  %v3526_v28 = vmul.f32 %v3423_v48, %v3423_v48  ;;  %3628 = vst.msk [vmem:[%s7010_s29 + $0x90] sm:$0xff] %vm783_vm0, %v3423_v48  ;;  %v4906_v38 = vadd.f32 %v3307_v37, %v2225_v59  ;;  %v4870_v0 = vpop.f32.mrb[22].mxu0  ;;  %v3474_v46 = vsel %vm783_vm0, %v3424_v3, 0.0 }
 0x293   : > { %v3473_v13 = vadd.f32 %v3472_v35, %v3471_v31  ;;  %v3574_v24 = vadd.f32 %v3573_v39, %v3572_v43  ;;  %v3317_v27 = vpop.f32.mrb[23].mxu0  ;;  %v3426_v18 = vadd.f32 %v4905_v50, %v7005_v17  ;;  %v3577_v33 = vsel %vm783_vm0, %v3527_v60, 0.0 }
 0x294   : > { %v3575_v55 = vsel %vm783_vm0, %v3526_v28, 0.0  ;;  %v4670_v58 = vpop.f32.mrb[22].mxu1  ;;  %v3425_v22 = vadd.f32 %v4906_v38, %v7005_v17 }
 0x295   : > { %v3576_v16 = vadd.f32 %v3575_v55, %v3574_v24  ;;  %v2235_v47 = vpop.f32.mrb[23].mxu1  ;;  %v3475_v29 = vadd.f32 %v3474_v46, %v3473_v13  ;;  %v4907_v36 = vadd.f32 %v4870_v0, %v4670_v58  ;;  %v3529_v44 = vmul.f32 %v3426_v18, %v3426_v18  ;;  %3631 = vst.msk [vmem:[%s7010_s29 + $0xa8] sm:$0xff] %vm783_vm0, %v3426_v18 }
 0x296   : > { %v3476_v11 = vsel %vm783_vm0, %v3425_v22, 0.0  ;;  %v3528_v52 = vmul.f32 %v3425_v22, %v3425_v22  ;;  %3630 = vst.msk [vmem:[%s7010_s29 + $0xa0] sm:$0xff] %vm783_vm0, %v3425_v22  ;;  %v4873_v54 = vpop.f32.mrb[24].mxu0  ;;  %v4908_v53 = vadd.f32 %v3317_v27, %v2235_v47  ;;  %v3478_v9 = vsel %vm783_vm0, %v3426_v18, 0.0 }
 0x297   : > { %v3477_v41 = vadd.f32 %v3476_v11, %v3475_v29  ;;  %v3578_v34 = vadd.f32 %v3577_v33, %v3576_v16  ;;  %v3428_v5 = vadd.f32 %v4907_v36, %v7005_v17  ;;  %v3327_v62 = vpop.f32.mrb[25].mxu0  ;;  %v3581_v1 = vsel %vm783_vm0, %v3529_v44, 0.0 }
 0x298   : > { %v3579_v45 = vsel %vm783_vm0, %v3528_v52, 0.0  ;;  %v4673_v6 = vpop.f32.mrb[24].mxu1  ;;  %v3427_v40 = vadd.f32 %v4908_v53, %v7005_v17 }
 0x299   : > { %v3580_v4 = vadd.f32 %v3579_v45, %v3578_v34  ;;  %3633 = vst.msk [vmem:[%s7010_s29 + $0xb8] sm:$0xff] %vm783_vm0, %v3428_v5  ;;  %v2245_v25 = vpop.f32.mrb[25].mxu1  ;;  %v3531_v32 = vmul.f32 %v3428_v5, %v3428_v5  ;;  %v3479_v42 = vadd.f32 %v3478_v9, %v3477_v41  ;;  %v4909_v63 = vadd.f32 %v4873_v54, %v4673_v6 }
 0x29a   : > { %v4910_v20 = vadd.f32 %v3327_v62, %v2245_v25  ;;  %v4876_v7 = vpop.f32.mrb[26].mxu0  ;;  %v3480_v2 = vsel %vm783_vm0, %v3427_v40, 0.0  ;;  %v3530_v14 = vmul.f32 %v3427_v40, %v3427_v40  ;;  %3632 = vst.msk [vmem:[%s7010_s29 + $0xb0] sm:$0xff] %vm783_vm0, %v3427_v40  ;;  %v3482_v51 = vsel %vm783_vm0, %v3428_v5, 0.0 }
 0x29b   : > { %v3582_v21 = vadd.f32 %v3581_v1, %v3580_v4  ;;  %v3337_v19 = vpop.f32.mrb[27].mxu0  ;;  %v3481_v15 = vadd.f32 %v3480_v2, %v3479_v42  ;;  %v3430_v57 = vadd.f32 %v4909_v63, %v7005_v17  ;;  %v3585_v61 = vsel %vm783_vm0, %v3531_v32, 0.0 }
 0x29c   : > { %v4676_v56 = vpop.f32.mrb[26].mxu1  ;;  %v3429_v12 = vadd.f32 %v4910_v20, %v7005_v17  ;;  %v3583_v49 = vsel %vm783_vm0, %v3530_v14, 0.0 }
 0x29d   : > { %v2255_v23 = vpop.f32.mrb[27].mxu1  ;;  %v4911_v8 = vadd.f32 %v4876_v7, %v4676_v56  ;;  %v3584_v3 = vadd.f32 %v3583_v49, %v3582_v21  ;;  %v3533_v37 = vmul.f32 %v3430_v57, %v3430_v57  ;;  %3635 = vst.msk [vmem:[%s7010_s29 + $0xc8] sm:$0xff] %vm783_vm0, %v3430_v57  ;;  %v3483_v26 = vadd.f32 %v3482_v51, %v3481_v15 }
 0x29e   : > { %3634 = vst.msk [vmem:[%s7010_s29 + $0xc0] sm:$0xff] %vm783_vm0, %v3429_v12  ;;  %v4879_v10 = vpop.f32.mrb[28].mxu0  ;;  %v3484_v30 = vsel %vm783_vm0, %v3429_v12, 0.0  ;;  %v3532_v48 = vmul.f32 %v3429_v12, %v3429_v12  ;;  %v4912_v43 = vadd.f32 %v3337_v19, %v2255_v23  ;;  %v3486_v28 = vsel %vm783_vm0, %v3430_v57, 0.0 }
 0x29f   : > { %v3432_v39 = vadd.f32 %v4911_v8, %v7005_v17  ;;  %v3347_v60 = vpop.f32.mrb[29].mxu0  ;;  %v3485_v59 = vadd.f32 %v3484_v30, %v3483_v26  ;;  %v3586_v31 = vadd.f32 %v3585_v61, %v3584_v3  ;;  %v3589_v18 = vsel %vm783_vm0, %v3533_v37, 0.0 }
 0x2a0   : > { %v4679_v35 = vpop.f32.mrb[28].mxu1  ;;  %v3587_v50 = vsel %vm783_vm0, %v3532_v48, 0.0  ;;  %v3431_v13 = vadd.f32 %v4912_v43, %v7005_v17 }
 0x2a1   : > { %v3535_v38 = vmul.f32 %v3432_v39, %v3432_v39  ;;  %3637 = vst.msk [vmem:[%s7010_s29 + $0xd8] sm:$0xff] %vm783_vm0, %v3432_v39  ;;  %v2265_v0 = vpop.f32.mrb[29].mxu1  ;;  %v3588_v24 = vadd.f32 %v3587_v50, %v3586_v31  ;;  %v3487_v27 = vadd.f32 %v3486_v28, %v3485_v59  ;;  %v4913_v46 = vadd.f32 %v4879_v10, %v4679_v35 }
 0x2a2   : > { %v4914_v55 = vadd.f32 %v3347_v60, %v2265_v0  ;;  %v4882_v58 = vpop.f32.mrb[30].mxu0  ;;  %v3488_v22 = vsel %vm783_vm0, %v3431_v13, 0.0  ;;  %v3534_v16 = vmul.f32 %v3431_v13, %v3431_v13  ;;  %3636 = vst.msk [vmem:[%s7010_s29 + $0xd0] sm:$0xff] %vm783_vm0, %v3431_v13  ;;  %v3490_v52 = vsel %vm783_vm0, %v3432_v39, 0.0 }
 0x2a3   : > { %v3357_v47 = vpop.f32.mrb[31].mxu0  ;;  %v3489_v29 = vadd.f32 %v3488_v22, %v3487_v27  ;;  %v3590_v36 = vadd.f32 %v3589_v18, %v3588_v24  ;;  %v3434_v44 = vadd.f32 %v4913_v46, %v7005_v17  ;;  %v3593_v5 = vsel %vm783_vm0, %v3535_v38, 0.0 }
 0x2a4   : > { %v4682_v33 = vpop.f32.mrb[30].mxu1  ;;  %v3433_v11 = vadd.f32 %v4914_v55, %v7005_v17  ;;  %v3591_v54 = vsel %vm783_vm0, %v3534_v16, 0.0 }
 0x2a5   : > { %v2275_v41 = vpop.f32.mrb[31].mxu1  ;;  %v4915_v34 = vadd.f32 %v4882_v58, %v4682_v33  ;;  %v3592_v53 = vadd.f32 %v3591_v54, %v3590_v36  ;;  %v3537_v62 = vmul.f32 %v3434_v44, %v3434_v44  ;;  %3639 = vst.msk [vmem:[%s7010_s29 + $0xe8] sm:$0xff] %vm783_vm0, %v3434_v44  ;;  %v3491_v45 = vadd.f32 %v3490_v52, %v3489_v29 }
 0x2a6   : > { %3638 = vst.msk [vmem:[%s7010_s29 + $0xe0] sm:$0xff] %vm783_vm0, %v3433_v11  ;;  %v3492_v6 = vsel %vm783_vm0, %v3433_v11, 0.0  ;;  %v3536_v9 = vmul.f32 %v3433_v11, %v3433_v11  ;;  %v4916_v4 = vadd.f32 %v3357_v47, %v2275_v41  ;;  %v3494_v32 = vsel %vm783_vm0, %v3434_v44, 0.0 }
 0x2a7   : > { %v3436_v1 = vadd.f32 %v4915_v34, %v7005_v17  ;;  %v3493_v25 = vadd.f32 %v3492_v6, %v3491_v45  ;;  %v3594_v40 = vadd.f32 %v3593_v5, %v3592_v53  ;;  %v3597_v2 = vsel %vm783_vm0, %v3537_v62, 0.0 }
 0x2a8   : > { %v3595_v42 = vsel %vm783_vm0, %v3536_v9, 0.0  ;;  %v3435_v63 = vadd.f32 %v4916_v4, %v7005_v17 }
 0x2a9   : > { %3641 = vst.msk [vmem:[%s7010_s29 + $0xf8] sm:$0xff] %vm783_vm0, %v3436_v1  ;;  %v3596_v20 = vadd.f32 %v3595_v42, %v3594_v40  ;;  %v3495_v7 = vadd.f32 %v3494_v32, %v3493_v25  ;;  %v3539_v14 = vmul.f32 %v3436_v1, %v3436_v1 }
 0x2aa   : > { %v3496_v21 = vsel %vm783_vm0, %v3435_v63, 0.0  ;;  %v3538_v19 = vmul.f32 %v3435_v63, %v3435_v63  ;;  %3640 = vst.msk [vmem:[%s7010_s29 + $0xf0] sm:$0xff] %vm783_vm0, %v3435_v63 }
 0x2ab   : > { %v3497_v15 = vadd.f32 %v3496_v21, %v3495_v7  ;;  %v3598_v56 = vadd.f32 %v3597_v2, %v3596_v20 }
 0x2ac   : > { %5399 = shalt.err (!%p5396_p13)
}
 0x2ad   : > { %s5400_s19 = scalar_lea.hbm %s7170_s15, 4096  ;;  %s5404_s29 = scalar_lea.hbm %s7264_s5, 8192 }
 0x2ae   : > { %p5401_p0 = scmp.ne.s32.totalorder %s7170_s15, %s5400_s19  ;;  %p5405_p9 = scmp.lt.u32.totalorder %s7170_s15, %s7264_s5 }
 0x2af   : > { %p5406_p12 = scmp.lt.u32.totalorder %s5404_s29, %s5400_s19  ;;  %p5408_p4 = scmp.lt.u32.totalorder %s5400_s19, %s7170_s15 }
 0x2b0   : > { %p5402_p5 = pnand %p5401_p0, %p5695_p1 }
 0x2b1   : > { %p5407_p2 = por %p5406_p12, %p5405_p9 }
 0x2b2   : > { %p5403_p11 = pneg %p5402_p5 }
 0x2b3   : > { %p5409_p6 = por %p5408_p4, %p5407_p2 }
 0x2b5   : > { %p5410_p8 = pnand %p5409_p6, %p5403_p11 }
 0x2b7   : > { %5413 = shalt.err (!%p5410_p8)
}
 0x2b8   : > { %s5505_s9 = smov 128   ;;  %s5506_s30 = smov 8   ;;  %v3498_v17 = vsel %vm783_vm0, %v3436_v1, 0.0  ;;  %v3599_v57 = vsel %vm783_vm0, %v3538_v19, 0.0  ;;  %v3601_v49 = vsel %vm783_vm0, %v3539_v14, 0.0  ;;  %vm3506_vm6 = vcmask 24576  }
 0x2b9   : > { %5162 = dma.vmem_to_hbm [thread:$0]  (%p5695_p1), %s7172_s20, 4096, %s7170_s15, %s3643_s12, %s5505_s9, %s5505_s9, %s5506_s30   ;;  %v3499_v12 = vadd.f32 %v3498_v17, %v3497_v15  ;;  %v3600_v51 = vadd.f32 %v3599_v57, %v3598_v56 }
 0x2ba   : > { %s3831_s26 = sshll.u32 %s5747_s11, 1  ;;  %s4132_s20 = sshll.u32 %s5564_s25, 5 }
 0x2bb   : > { %v3500_v23 = vrot.slane %v3499_v12, 4  ;;  %v3602_v8 = vadd.f32 %v3601_v49, %v3600_v51  ;;  %s332_s15 = scalar_lea.vmem [#allocation12], %s3831_s26  ;;  %s7215_s19 = scalar_lea.hbm %s7265_s6, %s4132_s20 }
 0x2bc   : > { %s3677_s12 = sshll.u32 %s332_s15, 4  ;;  %s3648_s14 = scalar_lea.sflag [#allocation13], %s5747_s11  ;;  %s7217_s12 = int_to_ptr.vmem [resolvable:$true] %s3677_s12 }
 0x2bd   : > { %v3501_v61 = vadd.f32 %v3500_v23, %v3499_v12  ;;  %v3603_v3 = vrot.slane %v3602_v8, 4  ;;  %s5414_s27 = scalar_lea.vmem %s7217_s12, 32  ;;  %s5507_s25 = smov [#allocation12]  }
 0x2be   : > { %p5415_p3 = scmp.ne.s32.totalorder %s7217_s12, %s5414_s27  ;;  %s5418_s29 = sshll.u32 %s5507_s25, 4  ;;  %s5419_s29 = int_to_ptr.vmem [resolvable:$false] %s5418_s29 }
 0x2bf   : > { %v3502_v37 = vrot.slane %v3501_v61, 2  ;;  %v3604_v26 = vadd.f32 %v3603_v3, %v3602_v8  ;;  %s5420_s16 = scalar_lea.vmem %s5419_s29, 64  ;;  %p5421_p13 = scmp.lt.s32.totalorder %s7217_s12, %s5419_s29 }
 0x2c0   : > { %p5416_p7 = pnand %p5415_p3, %p5695_p1  ;;  %p5422_p0 = scmp.lt.s32.totalorder %s5420_s16, %s5414_s27 }
 0x2c1   : > { %v3503_v10 = vadd.f32 %v3502_v37, %v3501_v61  ;;  %v3605_v30 = vrot.slane %v3604_v26, 2 }
 0x2c2   : > { %p5417_p10 = pneg %p5416_p7  ;;  %p5423_p5 = por %p5422_p0, %p5421_p13 }
 0x2c3   : > { %v3504_v48 = vrot.slane %v3503_v10, 1  ;;  %v3606_v39 = vadd.f32 %v3605_v30, %v3604_v26 }
 0x2c4   : > { %p5424_p11 = pnand %p5423_p5, %p5417_p10 }
 0x2c5   : > { %v3505_v43 = vadd.f32 %v3504_v48, %v3503_v10  ;;  %v3607_v60 = vrot.slane %v3606_v39, 1 }
 0x2c7   : > { %3507 = vst.msk [vmem:[%s332_s15] sm:$0x1] %vm3506_vm6, %v3505_v43  ;;  %v3608_v59 = vadd.f32 %v3607_v60, %v3606_v39 }
 0x2c9   : > { %3609 = vst.msk [vmem:[%s332_s15 + $0x1] sm:$0x1] %vm3506_vm6, %v3608_v59 }
 0x2ca   : > { %5427 = shalt.err (!%p5424_p11)
}
 0x2cb   : > { %s5428_s11 = scalar_lea.hbm %s7215_s19, 32  ;;  %s5432_s30 = scalar_lea.hbm %s7265_s6, 64 }
 0x2cc   : > { %p5429_p9 = scmp.ne.s32.totalorder %s7215_s19, %s5428_s11  ;;  %p5433_p4 = scmp.lt.u32.totalorder %s7215_s19, %s7265_s6 }
 0x2cd   : > { %p5434_p6 = scmp.lt.u32.totalorder %s5432_s30, %s5428_s11  ;;  %p5436_p3 = scmp.lt.u32.totalorder %s5428_s11, %s7215_s19 }
 0x2ce   : > { %p5430_p12 = pnand %p5429_p9, %p5695_p1 }
 0x2cf   : > { %p5435_p8 = por %p5434_p6, %p5433_p4 }
 0x2d0   : > { %p5431_p2 = pneg %p5430_p12 }
 0x2d1   : > { %p5437_p7 = por %p5436_p3, %p5435_p8 }
 0x2d3   : > { %p5438_p10 = pnand %p5437_p7, %p5431_p2 }
 0x2d5   : > { %5441 = shalt.err (!%p5438_p10)
}
 0x2d6   : > { %5163 = dma.vmem_to_hbm [thread:$0]  (%p5695_p1), %s7217_s12, 32, %s7215_s19, %s3648_s14  }
 0x2d7 PF: > { %s3689_s15 = sand.u32 1, %s5480_s21   ;;  %p7462_p13 = scmp.ne.s32.totalorder %s7348_s28, 0 }
 0x2d8   : > { %p7463_p0 = scmp.ge.s32.totalorder %s5492_s24, 2  ;;  %s3690_s10 = scalar_lea.sflag [#allocation4], %s3689_s15 }
 0x2da   : > { %p5184_p5 = pnand %p7463_p0, %p7462_p13 }
 0x2dc   : > { %5471 = dma.done.wait (!%p5184_p5), %s3690_s10, 4096  }
 0x2dd   : > { %5473 = vsyncadd (!%p5184_p5), %s3690_s10, 4294963200  ;;  %s3699_s17 = scalar_lea.sflag [#allocation13], %s3689_s15 }
 0x2de   : > { %5475 = dma.done.wait (!%p5184_p5), %s3699_s17, 32  }
 0x2df   : > { %5477 = vsyncadd (!%p5184_p5), %s3699_s17, 4294967264  ;;  %p25_p1 = scmp.ge.s32.totalorder %s5685_s18, 4   ;;  %s7464_s21 = smov %s5484_s22 }
 0x2e0   : > { %s7465_s22 = smov %s5488_s23  ;;  %s7466_s23 = smov %s5701_s13 }
 0x2e1   : > { %s7467_s24 = smov %s5685_s18  ;;  %27 = sbr.rel (!%p25_p1) target bundleno = 9 (0x9), region = 126 }
 0x2e8   :  { %3704 = vsyncpa [#allocation3], 1 }
 0x2e9   :  { %3706 = vsyncpa [#allocation3 + $0x1], 1 }
 0x2ea   :  { %3707 = vsyncpa [#allocation6], 1 }
 0x2eb   :  { %3708 = vsyncpa [#allocation9], 1 }
 0x2ec   :  { %3709 = vsyncpa [#allocation4], 1 }
 0x2ed   :  { %3711 = vsyncpa [#allocation4 + $0x1], 1 }
 0x2ee   :  { %3712 = vsyncpa [#allocation13], 1 }
 0x2ef   :  { %3714 = vsyncpa [#allocation13 + $0x1], 1 }

// kernel: residual_forward.3
= control target key start
LH: loop header
LB: loop body
LE: loop exit
PB: predicated region body
PF: predicated region fallthrough
CT: control target
= control target key end

     0   :  { %10 = vsyncpa [#allocation3], 0  ;;  %s7446_s0 = inlined_call_operand.hbm [shape: f32[2,18,18,4], index: 0, kind: input, shape index: {}]   ;;  %s7447_s1 = inlined_call_operand.hbm [shape: f32[9,4,4], index: 1, kind: input, shape index: {}]   ;;  %s7448_s2 = inlined_call_operand.hbm [shape: f32[1,4], index: 2, kind: input, shape index: {}]   ;;  %s7449_s3 = inlined_call_operand.hbm [shape: f32[2,18,18,4], index: 3, kind: output, shape index: {0}]   ;;  %s7450_s4 = inlined_call_operand.hbm [shape: f32[2,2,4], index: 4, kind: output, shape index: {1}]  }
   0x1   :  { %12 = vsyncpa [#allocation3 + $0x1], 0 }
   0x2   :  { %13 = vsyncpa [#allocation6], 0 }
   0x3   :  { %14 = vsyncpa [#allocation4], 0 }
   0x4   :  { %16 = vsyncpa [#allocation4 + $0x1], 0 }
   0x5   :  { %17 = vsyncpa [#allocation10], 0 }
   0x6   :  { %19 = vsyncpa [#allocation10 + $0x1], 0  ;;  %s6003_s15 = smov 0   ;;  %s6005_s16 = smov 0  }
   0x7   :  { %s6007_s17 = smov 0   ;;  %s6009_s18 = smov 0  }
   0x8 LB: > { %s6024_s19 = sadd.s32 4294967295, %s5964_s18   ;;  %s4148_s20 = sadd.s32 4294967294, %s5964_s18   ;;  %s5964_s18 = sphi %s6009_s18, %s7579_s18   ;;  %s5960_s17 = sphi %s6007_s17, %s7578_s17   ;;  %s5956_s16 = sphi %s6005_s16, %s7577_s16   ;;  %s5952_s15 = sphi %s6003_s15, %s7576_s15  }
   0x9   : > { %p45_p0 = scmp.ne.s32.totalorder %s5956_s16, %s5952_s15  ;;  %p7451_p1 = scmp.eq.s32.totalorder %s6024_s19, 0 }
   0xa   : > { %p117_p3 = scmp.eq.s32.totalorder %s4148_s20, 1  ;;  %p4149_p5 = scmp.ge.s32.totalorder %s5964_s18, 1 }
   0xb   : > { %p6033_p4 = por %p7451_p1, %p45_p0  ;;  %p150_p7 = scmp.lt.s32.totalorder %s5964_s18, 3 }
   0xc   : > { %p6038_p6 = por %p117_p3, %p45_p0  ;;  %s5966_s24 = smov [#allocation5]  }
   0xd   : > { %s7499_s21 = scalar_select %p6033_p4, 1, 0 }
   0xe   : > { %s7500_s22 = scalar_select %p6038_p6, 1, 0 }
   0xf   : > { %p6043_p8 = pnand %p4149_p5, %p150_p7  ;;  %s162_s25 = sshll.u32 %s5966_s24, 4  ;;  %s6047_s25 = int_to_ptr.vmem [resolvable:$true] %s162_s25 }
  0x10   : > { %s5967_s27 = smov [#allocation7]   ;;  %s5776_s5 = scalar_lea.hbm %s7447_s1, 576 }
  0x11   : > { %p5711_p9 = pneg %p6043_p8  ;;  %s176_s28 = sshll.u32 %s5967_s27, 4  ;;  %s6058_s28 = int_to_ptr.vmem [resolvable:$true] %s176_s28 }
  0x12   : > { %p5777_p12 = scmp.ne.s32.totalorder %s7447_s1, %s5776_s5  ;;  %p5783_p5 = scmp.lt.u32.totalorder %s5776_s5, %s7447_s1 }
  0x13   : > { %p6054_p11 = pnand %p5711_p9, %p7451_p1 }
  0x15   : > { %p5778_p13 = pneg %p6054_p11 }
  0x17   : > { %p5779_p0 = pnand %p5778_p13, %p5777_p12 }
  0x19   : > { %p5780_p3 = pneg %p5779_p0 }
  0x1b   : > { %p5785_p7 = pnand %p5783_p5, %p5780_p3 }
  0x1d   : > { %5788 = shalt.err (!%p5785_p7)
}
  0x1e   : > { %s5789_s10 = scalar_lea.vmem %s6047_s25, 576  ;;  %p5797_p2 = scmp.lt.s32.totalorder %s6047_s25, %s6047_s25 }
  0x1f   : > { %p5790_p9 = scmp.ne.s32.totalorder %s6047_s25, %s5789_s10  ;;  %p5798_p12 = scmp.lt.s32.totalorder %s5789_s10, %s5789_s10 }
  0x21   : > { %p5792_p10 = pnand %p5790_p9, %p5778_p13  ;;  %p5799_p0 = por %p5798_p12, %p5797_p2 }
  0x23   : > { %p5793_p1 = pneg %p5792_p10 }
  0x25   : > { %p5800_p6 = pnand %p5799_p0, %p5793_p1 }
  0x27   : > { %5803 = shalt.err (!%p5800_p6)
}
  0x28   : > { %s5968_s11 = smov 64   ;;  %s5969_s12 = smov 4  }
  0x29   : > { %5714 = dma.hbm_to_vmem [thread:$0]  (!%p6054_p11), %s7447_s1, 576, %s6047_s25, [#allocation6], %s5968_s11, %s5968_s11, %s5969_s12  }
  0x2a   : > { %s5804_s27 = scalar_lea.hbm %s7448_s2, 16 }
  0x2b   : > { %p5805_p2 = scmp.ne.s32.totalorder %s7448_s2, %s5804_s27  ;;  %p5811_p10 = scmp.lt.u32.totalorder %s5804_s27, %s7448_s2 }
  0x2d   : > { %p5807_p1 = pnand %p5805_p2, %p5778_p13 }
  0x2f   : > { %p5808_p6 = pneg %p5807_p1 }
  0x31   : > { %p5813_p3 = pnand %p5811_p10, %p5808_p6 }
  0x33   : > { %5816 = shalt.err (!%p5813_p3)
}
  0x34   : > { %s5817_s25 = scalar_lea.vmem %s6058_s28, 16  ;;  %s5824_s7 = scalar_lea.vmem %s6058_s28, 32 }
  0x35   : > { %p5818_p5 = scmp.ne.s32.totalorder %s6058_s28, %s5817_s25  ;;  %p5825_p12 = scmp.lt.s32.totalorder %s6058_s28, %s6058_s28 }
  0x36   : > { %p5826_p0 = scmp.lt.s32.totalorder %s5824_s7, %s5817_s25 }
  0x37   : > { %p5820_p7 = pnand %p5818_p5, %p5778_p13 }
  0x38   : > { %p5827_p2 = por %p5826_p0, %p5825_p12 }
  0x39   : > { %p5821_p9 = pneg %p5820_p7 }
  0x3b   : > { %p5828_p1 = pnand %p5827_p2, %p5821_p9 }
  0x3d   : > { %5831 = shalt.err (!%p5828_p1)
}
  0x3e   : > { %5717 = dma.hbm_to_vmem [thread:$0]  (!%p6054_p11), %s7448_s2, 16, %s6058_s28, [#allocation6]  }
  0x3f   : > { %s6114_s10 = sadd.s32 1, %s5964_s18   ;;  %s32_s26 = sadd.s32 1, %s5960_s17 }
  0x40   : > { %s29_s11 = ssub.s32 %s5964_s18, %s6114_s10  ;;  %p39_p13 = scmp.ne.s32.totalorder %s5960_s17, %s5956_s16 }
  0x41   : > { %p30_p6 = scmp.eq.s32.totalorder %s29_s11, 0  ;;  %p40_p10 = scmp.eq.s32.totalorder %s5964_s18, 0 }
  0x42   : > { %p7503_p3 = scmp.eq.s32.totalorder %s6024_s19, 1  ;;  %p5731_p7 = scmp.lt.s32.totalorder %s5964_s18, 2 }
  0x43   : > { %s6130_s13 = scalar_select %p30_p6, %s5960_s17, %s32_s26  }
  0x44   : > { %p6124_p5 = por %p7503_p3, %p39_p13  ;;  %p41_p9 = por %p40_p10, %p39_p13 }
  0x45   : > { %s187_s14 = sand.u32 1, %s5960_s17   ;;  %s5694_s28 = smul.u32 6912, %s5964_s18 }
  0x46   : > { %s7504_s12 = scalar_select %p6124_p5, 1, 0 }
  0x47   : > { %s5693_s20 = smul.u32 432, %s187_s14  ;;  %p6134_p11 = pnand %p5731_p7, %p41_p9 }
  0x48   : > { %s6141_s30 = scalar_lea.hbm %s7446_s0, %s5694_s28  ;;  %s6145_s25 = scalar_lea.sflag [#allocation3], %s187_s14 }
  0x49   : > { %s191_s5 = scalar_lea.vmem [#allocation2], %s5693_s20  ;;  %s5832_s7 = scalar_lea.hbm %s6141_s30, 6912 }
  0x4a   : > { %s198_s6 = sshll.u32 %s191_s5, 4  ;;  %p5833_p12 = scmp.ne.s32.totalorder %s6141_s30, %s5832_s7  ;;  %s6143_s6 = int_to_ptr.vmem [resolvable:$true] %s198_s6 }
  0x4b   : > { %p5834_p0 = pneg %p6134_p11  ;;  %s5837_s26 = scalar_lea.hbm %s7446_s0, 13824 }
  0x4c   : > { %p5838_p13 = scmp.lt.u32.totalorder %s6141_s30, %s7446_s0  ;;  %p5839_p6 = scmp.lt.u32.totalorder %s5837_s26, %s5832_s7 }
  0x4d   : > { %p5835_p2 = pnand %p5834_p0, %p5833_p12  ;;  %p5841_p3 = scmp.lt.u32.totalorder %s5832_s7, %s6141_s30 }
  0x4e   : > { %p5840_p10 = por %p5839_p6, %p5838_p13 }
  0x4f   : > { %p5836_p1 = pneg %p5835_p2 }
  0x50   : > { %p5842_p7 = por %p5841_p3, %p5840_p10 }
  0x52   : > { %p5843_p9 = pnand %p5842_p7, %p5836_p1 }
  0x54   : > { %5846 = shalt.err (!%p5843_p9)
}
  0x55   : > { %s5847_s14 = scalar_lea.vmem %s6143_s6, 6912  ;;  %s5970_s20 = smov [#allocation2]  }
  0x56   : > { %p5848_p12 = scmp.ne.s32.totalorder %s6143_s6, %s5847_s14  ;;  %s5852_s27 = sshll.u32 %s5970_s20, 4  ;;  %s5853_s27 = int_to_ptr.vmem [resolvable:$false] %s5852_s27 }
  0x57   : > { %s5854_s29 = scalar_lea.vmem %s5853_s27, 13824  ;;  %p5855_p4 = scmp.lt.s32.totalorder %s6143_s6, %s5853_s27 }
  0x58   : > { %p5850_p2 = pnand %p5848_p12, %p5834_p0  ;;  %p5856_p13 = scmp.lt.s32.totalorder %s5854_s29, %s5847_s14 }
  0x5a   : > { %p5851_p5 = pneg %p5850_p2  ;;  %p5857_p6 = por %p5856_p13, %p5855_p4 }
  0x5c   : > { %p5858_p10 = pnand %p5857_p6, %p5851_p5 }
  0x5e   : > { %5861 = shalt.err (!%p5858_p10)
}
  0x5f   : > { %s5971_s5 = smov 128   ;;  %s5972_s7 = smov 8  }
  0x60   : > { %5721 = dma.hbm_to_vmem [thread:$0]  (!%p6134_p11), %s6141_s30, 6912, %s6143_s6, %s6145_s25, %s5971_s5, %s5971_s5, %s5972_s7  }
  0x61   : > { %210 = sbr.rel (%p6043_p8) target bundleno = 663 (0x297), region = 32 }
  0x68   : > { %s6176_s8 = sand.u32 1, %s5956_s16   ;;  %p7506_p4 = scmp.ne.s32.totalorder %s7499_s21, 0 }
  0x69   : > { %s5695_s9 = smul.u32 432, %s6176_s8  ;;  %s213_s26 = scalar_lea.sflag [#allocation3], %s6176_s8 }
  0x6b   : > { %s6182_s11 = scalar_lea.vmem [#allocation2], %s5695_s9 }
  0x6c   : > { %5935 = dma.done.wait (%p7506_p4), %s213_s26, 6912  }
  0x6d   : > { %5937 = vsyncadd (%p7506_p4), %s213_s26, 4294960384  ;;  %p7507_p5 = scmp.eq.s32.totalorder %s6024_s19, 0 }
  0x6f   : > { %5939 = dma.done.wait (%p7507_p5), [#allocation6], 592   ;;  %p7508_p8 = pmov %p7507_p5 }
  0x70   : > { %vm418_vm0 = vcmask 1043456   ;;  %vm321_vm1 = vcmask 31744   ;;  %v320_v0 = vld [vmem:[#allocation5 + $0x4] sm:$0xf]  ;;  %v6192_v1 = vld [vmem:[#allocation5 + $0x10] sm:$0xf] }
  0x71   : > { %5941 = vsyncadd (%p7508_p8), [#allocation6], 4294966704  ;;  %v287_v2 = vld [vmem:[%s6182_s11 + $0x1] sm:$0xff]  ;;  %4985 = vmatprep.subr.msk.mxu1 %vm418_vm0, %v320_v0  ;;  %5185 = vmatprep.subr.msk.mxu0 %vm418_vm0, %v6192_v1  ;;  %v4322_v3 = vld [vmem:[%s6182_s11 + $0x19] sm:$0xff]  ;;  %vm3811_vm2 = vcmask 24576   ;;  %vm3917_vm3 = vcmask 25600  }
  0x72   : > { %v288_v4 = vld [vmem:[%s6182_s11 + $0x9] sm:$0xff]  ;;  %4986 = vmatpush3.msk.msra.mxu1 %vm418_vm0, %v320_v0  ;;  %4987 = vmatprep.mubr.msk.f32.mxu1 %vm321_vm1, %v287_v2  ;;  %v4323_v6 = vld [vmem:[%s6182_s11 + $0x21] sm:$0xff]  ;;  %v6209_v8 = vld [vmem:[%s6182_s11 + $0x31] sm:$0xff]  ;;  %s7092_s21 = scalar_lea.vmem [#allocation8], %s5695_s9  ;;  %s5696_s23 = smul.u32 6912, %s6024_s19 }
  0x73   : > { %v286_v5 = vld [vmem:[#allocation5] sm:$0xf]  ;;  %v2175_v7 = vld [vmem:[#allocation5 + $0x14] sm:$0xf]  ;;  %5186 = vmatpush3.msk.msra.mxu0 %vm418_vm0, %v6192_v1  ;;  %5187 = vmatprep.mubr.msk.f32.mxu0 %vm321_vm1, %v4322_v3  ;;  %v2566_v11 = vld [vmem:[#allocation5 + $0x18] sm:$0xf] }
  0x74   : > { %4988 = vmatmul.mubr.msk.f32.vlgmr.msra.gmra.mrb[0].mxu1 %vm321_vm1, %v288_v4  ;;  %5035 = vmatprep.subr.msk.mxu1 %vm418_vm0, %v286_v5  ;;  %v6216_v9 = vld [vmem:[%s6182_s11 + $0x39] sm:$0xff]  ;;  %v6222_v10 = vld [vmem:[%s6182_s11 + $0x49] sm:$0xff]  ;;  %v6232_v12 = vld [vmem:[%s6182_s11 + $0x51] sm:$0xff]  ;;  %s4011_s24 = sshll.u32 %s7092_s21, 4  ;;  %s7354_s25 = scalar_lea.hbm %s7449_s3, %s5696_s23  ;;  %s7358_s24 = int_to_ptr.vmem [resolvable:$true] %s4011_s24 }
  0x75   : > { %5188 = vmatmul.mubr.msk.f32.vlgmr.msra.gmra.mrb[0].mxu0 %vm321_vm1, %v4323_v6  ;;  %5235 = vmatprep.subr.msk.mxu0 %vm418_vm0, %v2175_v7  ;;  %v6236_v13 = vld [vmem:[%s6182_s11 + $0x61] sm:$0xff]  ;;  %v6247_v14 = vld [vmem:[%s6182_s11 + $0x69] sm:$0xff]  ;;  %v6250_v15 = vld [vmem:[%s6182_s11 + $0x79] sm:$0xff]  ;;  %s3993_s28 = scalar_lea.sflag [#allocation4], %s6176_s8  ;;  %s5862_s14 = scalar_lea.vmem %s7358_s24, 6912 }
  0x76   : > { %5036 = vmatpush3.msk.msra.mxu1 %vm418_vm0, %v286_v5  ;;  %5236 = vmatpush3.msk.msra.mxu0 %vm418_vm0, %v2175_v7  ;;  %v6261_v16 = vld [vmem:[%s6182_s11 + $0x81] sm:$0xff]  ;;  %v6266_v18 = vld [vmem:[%s6182_s11 + $0x91] sm:$0xff]  ;;  %v6279_v19 = vld [vmem:[%s6182_s11 + $0x99] sm:$0xff]  ;;  %p5863_p11 = scmp.ne.s32.totalorder %s7358_s24, %s5862_s14  ;;  %p7573_p0 = scmp.ne.s32.totalorder %s7504_s12, 0 }
  0x77   : > { %4990 = vmatprep.mubr.msk.f32.mxu1 %vm321_vm1, %v4322_v3  ;;  %5190 = vmatprep.mubr.msk.f32.mxu0 %vm321_vm1, %v6209_v8  ;;  %v6263_v17 = vld [vmem:[#allocation5 + $0x8] sm:$0xf]  ;;  %v6331_v28 = vld [vmem:[#allocation5 + $0x1c] sm:$0xf]  ;;  %v254_v55 = vld [vmem:[%s6182_s11] sm:$0xff]  ;;  %s5974_s20 = smov [#allocation8]  }
  0x78   : > { %4991 = vmatmul.mubr.msk.f32.gmra.mrb[2].mxu1 %vm321_vm1, %v4323_v6  ;;  %5285 = vmatprep.subr.msk.mxu0 %vm418_vm0, %v2566_v11  ;;  %v6282_v20 = vld [vmem:[%s6182_s11 + $0xa9] sm:$0xff]  ;;  %v6293_v21 = vld [vmem:[%s6182_s11 + $0xb1] sm:$0xff]  ;;  %v6296_v22 = vld [vmem:[%s6182_s11 + $0xc1] sm:$0xff]  ;;  %p5864_p1 = pnand %p5863_p11, %p7573_p0  ;;  %s5866_s27 = sshll.u32 %s5974_s20, 4  ;;  %s5867_s27 = int_to_ptr.vmem [resolvable:$false] %s5866_s27 }
  0x79   : > { %5191 = vmatmul.mubr.msk.f32.gmra.mrb[2].mxu0 %vm321_vm1, %v6216_v9  ;;  %4993 = vmatprep.mubr.msk.f32.mxu1 %vm321_vm1, %v6209_v8  ;;  %v6307_v23 = vld [vmem:[%s6182_s11 + $0xc9] sm:$0xff]  ;;  %v6310_v24 = vld [vmem:[%s6182_s11 + $0x1a] sm:$0xff]  ;;  %v6327_v27 = vld [vmem:[%s6182_s11 + $0x32] sm:$0xff]  ;;  %s5868_s29 = scalar_lea.vmem %s5867_s27, 13824  ;;  %p5869_p7 = scmp.lt.s32.totalorder %s7358_s24, %s5867_s27 }
  0x7a   : > { %5193 = vmatprep.mubr.msk.f32.mxu0 %vm321_vm1, %v6222_v10  ;;  %5085 = vmatprep.subr.msk.mxu1 %vm418_vm0, %v6263_v17  ;;  %v6321_v25 = vld [vmem:[%s6182_s11 + $0x22] sm:$0xff]  ;;  %v6324_v26 = vld [vmem:[%s6182_s11 + $0xd9] sm:$0xff]  ;;  %v6347_v31 = vld [vmem:[%s6182_s11 + $0xf1] sm:$0xff]  ;;  %p5865_p3 = pneg %p5864_p1  ;;  %p5870_p9 = scmp.lt.s32.totalorder %s5868_s29, %s5862_s14 }
  0x7b   : > { %v6338_v29 = vld [vmem:[%s6182_s11 + $0xe1] sm:$0xff]  ;;  %7510 = vst [vmem:[#allocation16_spill] sm:$0xff] %v6347_v31  ;;  %v6350_v32 = vld [vmem:[%s6182_s11 + $0x4a] sm:$0xff]  ;;  %v6361_v33 = vld [vmem:[%s6182_s11 + $0xf9] sm:$0xff] }
  0x7c   : > { %4994 = vmatmul.mubr.msk.f32.gmra.mrb[4].mxu1 %vm321_vm1, %v6216_v9  ;;  %7509 = vst [vmem:[#allocation15_spill] sm:$0xff] %v6338_v29  ;;  %v6344_v30 = vld [vmem:[%s6182_s11 + $0x3a] sm:$0xff]  ;;  %7511 = vst [vmem:[#allocation17_spill] sm:$0xff] %v6361_v33  ;;  %v6366_v34 = vld [vmem:[%s6182_s11 + $0x52] sm:$0xff]  ;;  %p5871_p12 = por %p5870_p9, %p5869_p7 }
  0x7d   : > { %5194 = vmatmul.mubr.msk.f32.gmra.mrb[4].mxu0 %vm321_vm1, %v6232_v12  ;;  %4996 = vmatprep.mubr.msk.f32.mxu1 %vm321_vm1, %v6222_v10  ;;  %v6369_v35 = vld [vmem:[%s6182_s11 + $0x109] sm:$0xff]  ;;  %v6381_v37 = vld [vmem:[%s6182_s11 + $0x111] sm:$0xff]  ;;  %v6389_v39 = vld [vmem:[%s6182_s11 + $0x121] sm:$0xff] }
  0x7e   : > { %5196 = vmatprep.mubr.msk.f32.mxu0 %vm321_vm1, %v6236_v13  ;;  %7512 = vst [vmem:[#allocation18_spill] sm:$0xff] %v6369_v35  ;;  %v6372_v36 = vld [vmem:[%s6182_s11 + $0x62] sm:$0xff]  ;;  %7513 = vst [vmem:[#allocation19_spill] sm:$0xff] %v6381_v37  ;;  %v6386_v38 = vld [vmem:[%s6182_s11 + $0x6a] sm:$0xff]  ;;  %p5872_p2 = pnand %p5871_p12, %p5865_p3 }
  0x7f   : > { %7514 = vst [vmem:[#allocation20_spill] sm:$0xff] %v6389_v39  ;;  %v6392_v40 = vld [vmem:[%s6182_s11 + $0x7a] sm:$0xff]  ;;  %v6401_v41 = vld [vmem:[%s6182_s11 + $0x129] sm:$0xff]  ;;  %v6412_v44 = vld [vmem:[%s6182_s11 + $0x92] sm:$0xff] }
  0x80   : > { %4997 = vmatmul.mubr.msk.f32.gmra.mrb[6].mxu1 %vm321_vm1, %v6232_v12  ;;  %7515 = vst [vmem:[#allocation21_spill] sm:$0xff] %v6401_v41  ;;  %v6406_v42 = vld [vmem:[%s6182_s11 + $0x82] sm:$0xff]  ;;  %v6409_v43 = vld [vmem:[%s6182_s11 + $0x139] sm:$0xff]  ;;  %v6429_v47 = vld [vmem:[%s6182_s11 + $0x151] sm:$0xff] }
  0x81   : > { %5197 = vmatmul.mubr.msk.f32.gmra.mrb[6].mxu0 %vm321_vm1, %v6247_v14  ;;  %4999 = vmatprep.mubr.msk.f32.mxu1 %vm321_vm1, %v6236_v13  ;;  %7516 = vst [vmem:[#allocation22_spill] sm:$0xff] %v6409_v43  ;;  %v6421_v45 = vld [vmem:[%s6182_s11 + $0x141] sm:$0xff]  ;;  %7518 = vst [vmem:[#allocation24_spill] sm:$0xff] %v6429_v47  ;;  %v6432_v48 = vld [vmem:[%s6182_s11 + $0xaa] sm:$0xff] }
  0x82   : > { %5199 = vmatprep.mubr.msk.f32.mxu0 %vm321_vm1, %v6250_v15  ;;  %7517 = vst [vmem:[#allocation23_spill] sm:$0xff] %v6421_v45  ;;  %v6426_v46 = vld [vmem:[%s6182_s11 + $0x9a] sm:$0xff]  ;;  %v6446_v50 = vld [vmem:[%s6182_s11 + $0xb2] sm:$0xff]  ;;  %v6449_v51 = vld [vmem:[%s6182_s11 + $0x169] sm:$0xff] }
  0x83   : > { %v6441_v49 = vld [vmem:[%s6182_s11 + $0x159] sm:$0xff]  ;;  %7520 = vst [vmem:[#allocation26_spill] sm:$0xff] %v6449_v51  ;;  %v6452_v52 = vld [vmem:[%s6182_s11 + $0xc2] sm:$0xff]  ;;  %v6461_v53 = vld [vmem:[%s6182_s11 + $0x171] sm:$0xff] }
  0x84   : > { %5000 = vmatmul.mubr.msk.f32.gmra.mrb[8].mxu1 %vm321_vm1, %v6247_v14  ;;  %7519 = vst [vmem:[#allocation25_spill] sm:$0xff] %v6441_v49  ;;  %7521 = vst [vmem:[#allocation27_spill] sm:$0xff] %v6461_v53  ;;  %v6466_v54 = vld [vmem:[%s6182_s11 + $0xca] sm:$0xff]  ;;  %v6470_v56 = vld [vmem:[%s6182_s11 + $0xda] sm:$0xff] }
  0x85   : > { %5200 = vmatmul.mubr.msk.f32.gmra.mrb[8].mxu0 %vm321_vm1, %v6261_v16  ;;  %5002 = vmatprep.mubr.msk.f32.mxu1 %vm321_vm1, %v6250_v15  ;;  %v255_v57 = vld [vmem:[%s6182_s11 + $0x8] sm:$0xff]  ;;  %v6484_v59 = vld [vmem:[%s6182_s11 + $0x18] sm:$0xff]  ;;  %v6497_v62 = vld [vmem:[%s6182_s11 + $0x20] sm:$0xff] }
  0x86   : > { %5202 = vmatprep.mubr.msk.f32.mxu0 %vm321_vm1, %v6266_v18  ;;  %v6481_v58 = vld [vmem:[%s6182_s11 + $0xe2] sm:$0xff]  ;;  %7522 = vst [vmem:[#allocation28_spill] sm:$0xff] %v6484_v59  ;;  %v6487_v60 = vld [vmem:[%s6182_s11 + $0xf2] sm:$0xff]  ;;  %v6490_v61 = vld [vmem:[#allocation5 + $0xc] sm:$0xf] }
  0x87   : > { %7523 = vst [vmem:[#allocation29_spill] sm:$0xff] %v6497_v62  ;;  %v6504_v63 = vld [vmem:[%s6182_s11 + $0xfa] sm:$0xff]  ;;  %v6507_v0 = vld [vmem:[%s6182_s11 + $0x30] sm:$0xff]  ;;  %v6529_v5 = vld [vmem:[%s6182_s11 + $0x48] sm:$0xff] }
  0x88   : > { %5003 = vmatmul.mubr.msk.f32.gmra.mrb[10].mxu1 %vm321_vm1, %v6261_v16  ;;  %7524 = vst [vmem:[#allocation30_spill] sm:$0xff] %v6507_v0  ;;  %v6510_v2 = vld [vmem:[%s6182_s11 + $0x10a] sm:$0xff]  ;;  %v6521_v3 = vld [vmem:[%s6182_s11 + $0x38] sm:$0xff]  ;;  %7526 = vst [vmem:[#allocation32_spill] sm:$0xff] %v6529_v5 }
  0x89   : > { %5203 = vmatmul.mubr.msk.f32.gmra.mrb[10].mxu0 %vm321_vm1, %v6279_v19  ;;  %5005 = vmatprep.mubr.msk.f32.mxu1 %vm321_vm1, %v6266_v18  ;;  %7525 = vst [vmem:[#allocation31_spill] sm:$0xff] %v6521_v3  ;;  %v6526_v4 = vld [vmem:[%s6182_s11 + $0x112] sm:$0xff]  ;;  %v6532_v6 = vld [vmem:[%s6182_s11 + $0x122] sm:$0xff] }
  0x8a   : > { %5205 = vmatprep.mubr.msk.f32.mxu0 %vm321_vm1, %v6282_v20  ;;  %v6541_v7 = vld [vmem:[%s6182_s11 + $0x50] sm:$0xff] }
  0x8b   : > { %7527 = vst [vmem:[#allocation33_spill] sm:$0xff] %v6541_v7 }
  0x8c   : > { %5006 = vmatmul.mubr.msk.f32.gmra.mrb[12].mxu1 %vm321_vm1, %v6279_v19 }
  0x8d   : > { %5206 = vmatmul.mubr.msk.f32.gmra.mrb[12].mxu0 %vm321_vm1, %v6293_v21  ;;  %5008 = vmatprep.mubr.msk.f32.mxu1 %vm321_vm1, %v6282_v20 }
  0x8e   : > { %5208 = vmatprep.mubr.msk.f32.mxu0 %vm321_vm1, %v6296_v22 }
  0x90   : > { %5009 = vmatmul.mubr.msk.f32.gmra.mrb[14].mxu1 %vm321_vm1, %v6293_v21 }
  0x91   : > { %5209 = vmatmul.mubr.msk.f32.gmra.mrb[14].mxu0 %vm321_vm1, %v6307_v23  ;;  %5011 = vmatprep.mubr.msk.f32.mxu1 %vm321_vm1, %v6296_v22 }
  0x92   : > { %5237 = vmatprep.mubr.msk.f32.mxu0 %vm321_vm1, %v6310_v24 }
  0x94   : > { %5012 = vmatmul.mubr.msk.f32.gmra.mrb[16].mxu1 %vm321_vm1, %v6307_v23 }
  0x95   : > { %5238 = vmatmul.mubr.msk.f32.vlgmr.msra.gmra.mrb[0].mxu0 %vm321_vm1, %v6321_v25  ;;  %5014 = vmatprep.mubr.msk.f32.mxu1 %vm321_vm1, %v6324_v26 }
  0x96   : > { %5286 = vmatpush3.msk.msra.mxu0 %vm418_vm0, %v2566_v11  ;;  %5240 = vmatprep.mubr.msk.f32.mxu0 %vm321_vm1, %v6327_v27  ;;  %v6546_v11 = vld [vmem:[%s6182_s11 + $0x12a] sm:$0xff] }
  0x97   : > { %5335 = vmatprep.subr.msk.mxu0 %vm418_vm0, %v6331_v28 }
  0x98   : > { %5015 = vmatmul.mubr.msk.f32.gmra.mrb[18].mxu1 %vm321_vm1, %v6338_v29  ;;  %v6638_v29 = vld [vmem:[%s6182_s11 + $0xc8] sm:$0xff] }
  0x99   : > { %5241 = vmatmul.mubr.msk.f32.gmra.mrb[2].mxu0 %vm321_vm1, %v6344_v30  ;;  %5017 = vmatprep.mubr.msk.f32.mxu1 %vm321_vm1, %v6347_v31  ;;  %v6626_v31 = vld [vmem:[%s6182_s11 + $0x18a] sm:$0xff] }
  0x9a   : > { %5243 = vmatprep.mubr.msk.f32.mxu0 %vm321_vm1, %v6350_v32  ;;  %7538 = vst [vmem:[#allocation44_spill] sm:$0xff] %v6626_v31 }
  0x9c   : > { %5018 = vmatmul.mubr.msk.f32.gmra.mrb[20].mxu1 %vm321_vm1, %v6361_v33  ;;  %v6612_v33 = vld [vmem:[%s6182_s11 + $0x182] sm:$0xff] }
  0x9d   : > { %5244 = vmatmul.mubr.msk.f32.gmra.mrb[4].mxu0 %vm321_vm1, %v6366_v34  ;;  %5020 = vmatprep.mubr.msk.f32.mxu1 %vm321_vm1, %v6369_v35  ;;  %v6609_v35 = vld [vmem:[%s6182_s11 + $0xa8] sm:$0xff]  ;;  %7536 = vst [vmem:[#allocation42_spill] sm:$0xff] %v6612_v33 }
  0x9e   : > { %5246 = vmatprep.mubr.msk.f32.mxu0 %vm321_vm1, %v6372_v36  ;;  %7535 = vst [vmem:[#allocation41_spill] sm:$0xff] %v6609_v35 }
  0xa0   : > { %5021 = vmatmul.mubr.msk.f32.gmra.mrb[22].mxu1 %vm321_vm1, %v6381_v37  ;;  %v6606_v37 = vld [vmem:[%s6182_s11 + $0x172] sm:$0xff] }
  0xa1   : > { %5247 = vmatmul.mubr.msk.f32.gmra.mrb[6].mxu0 %vm321_vm1, %v6386_v38  ;;  %5023 = vmatprep.mubr.msk.f32.mxu1 %vm321_vm1, %v6389_v39  ;;  %v6601_v39 = vld [vmem:[%s6182_s11 + $0x98] sm:$0xff]  ;;  %7534 = vst [vmem:[#allocation40_spill] sm:$0xff] %v6606_v37 }
  0xa2   : > { %5249 = vmatprep.mubr.msk.f32.mxu0 %vm321_vm1, %v6392_v40  ;;  %7533 = vst [vmem:[#allocation39_spill] sm:$0xff] %v6601_v39 }
  0xa4   : > { %5024 = vmatmul.mubr.msk.f32.gmra.mrb[24].mxu1 %vm321_vm1, %v6401_v41  ;;  %v6592_v41 = vld [vmem:[%s6182_s11 + $0x16a] sm:$0xff] }
  0xa5   : > { %5250 = vmatmul.mubr.msk.f32.gmra.mrb[8].mxu0 %vm321_vm1, %v6406_v42  ;;  %5026 = vmatprep.mubr.msk.f32.mxu1 %vm321_vm1, %v6409_v43  ;;  %v6589_v43 = vld [vmem:[%s6182_s11 + $0x90] sm:$0xff] }
  0xa6   : > { %5252 = vmatprep.mubr.msk.f32.mxu0 %vm321_vm1, %v6412_v44  ;;  %7532 = vst [vmem:[#allocation38_spill] sm:$0xff] %v6589_v43 }
  0xa8   : > { %5027 = vmatmul.mubr.msk.f32.gmra.mrb[26].mxu1 %vm321_vm1, %v6421_v45  ;;  %v6586_v45 = vld [vmem:[%s6182_s11 + $0x15a] sm:$0xff] }
  0xa9   : > { %5253 = vmatmul.mubr.msk.f32.gmra.mrb[10].mxu0 %vm321_vm1, %v6426_v46  ;;  %5029 = vmatprep.mubr.msk.f32.mxu1 %vm321_vm1, %v6429_v47  ;;  %v6581_v47 = vld [vmem:[%s6182_s11 + $0x80] sm:$0xff] }
  0xaa   : > { %5255 = vmatprep.mubr.msk.f32.mxu0 %vm321_vm1, %v6432_v48  ;;  %7531 = vst [vmem:[#allocation37_spill] sm:$0xff] %v6581_v47 }
  0xac   : > { %5030 = vmatmul.mubr.msk.f32.gmra.mrb[28].mxu1 %vm321_vm1, %v6441_v49  ;;  %v6572_v49 = vld [vmem:[%s6182_s11 + $0x152] sm:$0xff] }
  0xad   : > { %5256 = vmatmul.mubr.msk.f32.gmra.mrb[12].mxu0 %vm321_vm1, %v6446_v50  ;;  %5032 = vmatprep.mubr.msk.f32.mxu1 %vm321_vm1, %v6449_v51  ;;  %v6569_v51 = vld [vmem:[%s6182_s11 + $0x78] sm:$0xff] }
  0xae   : > { %5258 = vmatprep.mubr.msk.f32.mxu0 %vm321_vm1, %v6452_v52  ;;  %7530 = vst [vmem:[#allocation36_spill] sm:$0xff] %v6569_v51 }
  0xb0   : > { %5033 = vmatmul.mubr.msk.f32.gmra.mrb[30].mxu1 %vm321_vm1, %v6461_v53  ;;  %v6566_v53 = vld [vmem:[%s6182_s11 + $0x142] sm:$0xff] }
  0xb1   : > { %5259 = vmatmul.mubr.msk.f32.gmra.mrb[14].mxu0 %vm321_vm1, %v6466_v54  ;;  %5037 = vmatprep.mubr.msk.f32.mxu1 %vm321_vm1, %v254_v55  ;;  %v6552_v55 = vld [vmem:[%s6182_s11 + $0x13a] sm:$0xff] }
  0xb2   : > { %5261 = vmatprep.mubr.msk.f32.mxu0 %vm321_vm1, %v6470_v56 }
  0xb4   : > { %5038 = vmatmul.mubr.msk.f32.vlgmr.msra.gmra.mrb[0].mxu1 %vm321_vm1, %v255_v57  ;;  %v6561_v57 = vld [vmem:[%s6182_s11 + $0x68] sm:$0xff] }
  0xb5   : > { %5262 = vmatmul.mubr.msk.f32.gmra.mrb[16].mxu0 %vm321_vm1, %v6481_v58  ;;  %5086 = vmatpush3.msk.msra.mxu1 %vm418_vm0, %v6263_v17  ;;  %v6549_v17 = vld [vmem:[%s6182_s11 + $0x60] sm:$0xff]  ;;  %7529 = vst [vmem:[#allocation35_spill] sm:$0xff] %v6561_v57 }
  0xb6   : > { %5040 = vmatprep.mubr.msk.f32.mxu1 %vm321_vm1, %v6484_v59  ;;  %5264 = vmatprep.mubr.msk.f32.mxu0 %vm321_vm1, %v6487_v60  ;;  %7528 = vst [vmem:[#allocation34_spill] sm:$0xff] %v6549_v17  ;;  %v6629_v59 = vld [vmem:[%s6182_s11 + $0xc0] sm:$0xff] }
  0xb7   : > { %5135 = vmatprep.subr.msk.mxu1 %vm418_vm0, %v6490_v61  ;;  %7539 = vst [vmem:[#allocation45_spill] sm:$0xff] %v6629_v59 }
  0xb8   : > { %5041 = vmatmul.mubr.msk.f32.gmra.mrb[2].mxu1 %vm321_vm1, %v6497_v62  ;;  %v6621_v62 = vld [vmem:[%s6182_s11 + $0xb0] sm:$0xff] }
  0xb9   : > { %5265 = vmatmul.mubr.msk.f32.gmra.mrb[18].mxu0 %vm321_vm1, %v6504_v63  ;;  %5043 = vmatprep.mubr.msk.f32.mxu1 %vm321_vm1, %v6507_v0  ;;  %7537 = vst [vmem:[#allocation43_spill] sm:$0xff] %v6621_v62 }
  0xba   : > { %5267 = vmatprep.mubr.msk.f32.mxu0 %vm321_vm1, %v6510_v2 }
  0xbc   : > { %5044 = vmatmul.mubr.msk.f32.gmra.mrb[4].mxu1 %vm321_vm1, %v6521_v3 }
  0xbd   : > { %5268 = vmatmul.mubr.msk.f32.gmra.mrb[20].mxu0 %vm321_vm1, %v6526_v4  ;;  %5046 = vmatprep.mubr.msk.f32.mxu1 %vm321_vm1, %v6529_v5 }
  0xbe   : > { %5270 = vmatprep.mubr.msk.f32.mxu0 %vm321_vm1, %v6532_v6 }
  0xc0   : > { %5047 = vmatmul.mubr.msk.f32.gmra.mrb[6].mxu1 %vm321_vm1, %v6541_v7 }
  0xc1   : > { %5271 = vmatmul.mubr.msk.f32.gmra.mrb[22].mxu0 %vm321_vm1, %v6546_v11  ;;  %5049 = vmatprep.mubr.msk.f32.mxu1 %vm321_vm1, %v6549_v17 }
  0xc2   : > { %5273 = vmatprep.mubr.msk.f32.mxu0 %vm321_vm1, %v6552_v55 }
  0xc4   : > { %5050 = vmatmul.mubr.msk.f32.gmra.mrb[8].mxu1 %vm321_vm1, %v6561_v57 }
  0xc5   : > { %5274 = vmatmul.mubr.msk.f32.gmra.mrb[24].mxu0 %vm321_vm1, %v6566_v53  ;;  %5052 = vmatprep.mubr.msk.f32.mxu1 %vm321_vm1, %v6569_v51 }
  0xc6   : > { %5276 = vmatprep.mubr.msk.f32.mxu0 %vm321_vm1, %v6572_v49 }
  0xc8   : > { %5053 = vmatmul.mubr.msk.f32.gmra.mrb[10].mxu1 %vm321_vm1, %v6581_v47 }
  0xc9   : > { %5277 = vmatmul.mubr.msk.f32.gmra.mrb[26].mxu0 %vm321_vm1, %v6586_v45  ;;  %5055 = vmatprep.mubr.msk.f32.mxu1 %vm321_vm1, %v6589_v43 }
  0xca   : > { %5279 = vmatprep.mubr.msk.f32.mxu0 %vm321_vm1, %v6592_v41 }
  0xcc   : > { %5056 = vmatmul.mubr.msk.f32.gmra.mrb[12].mxu1 %vm321_vm1, %v6601_v39 }
  0xcd   : > { %5280 = vmatmul.mubr.msk.f32.gmra.mrb[28].mxu0 %vm321_vm1, %v6606_v37  ;;  %5058 = vmatprep.mubr.msk.f32.mxu1 %vm321_vm1, %v6609_v35  ;;  %v6647_v37 = vld [vmem:[#allocation5 + $0x20] sm:$0xf] }
  0xce   : > { %5282 = vmatprep.mubr.msk.f32.mxu0 %vm321_vm1, %v6612_v33  ;;  %v6643_v33 = vld [vmem:[%s6182_s11 + $0xd8] sm:$0xff] }
  0xd0   : > { %5059 = vmatmul.mubr.msk.f32.gmra.mrb[14].mxu1 %vm321_vm1, %v6621_v62 }
  0xd1   : > { %5283 = vmatmul.mubr.msk.f32.gmra.mrb[30].mxu0 %vm321_vm1, %v6626_v31  ;;  %5061 = vmatprep.mubr.msk.f32.mxu1 %vm321_vm1, %v6629_v59  ;;  %v6654_v31 = vld [vmem:[%s6182_s11 + $0xe0] sm:$0xff] }
  0xd2   : > { %5287 = vmatprep.mubr.msk.f32.mxu0 %vm321_vm1, %v6507_v0  ;;  %v6661_v0 = vld [vmem:[%s6182_s11 + $0xf0] sm:$0xff] }
  0xd4   : > { %5062 = vmatmul.mubr.msk.f32.gmra.mrb[16].mxu1 %vm321_vm1, %v6638_v29 }
  0xd5   : > { %5288 = vmatmul.mubr.msk.f32.vlgmr.msra.gmra.mrb[0].mxu0 %vm321_vm1, %v6521_v3  ;;  %5064 = vmatprep.mubr.msk.f32.mxu1 %vm321_vm1, %v6643_v33  ;;  %v6691_v3 = vld [vmem:[%s6182_s11 + $0x120] sm:$0xff] }
  0xd6   : > { %5336 = vmatpush3.msk.msra.mxu0 %vm418_vm0, %v6331_v28  ;;  %5290 = vmatprep.mubr.msk.f32.mxu0 %vm321_vm1, %v6529_v5  ;;  %v6672_v28 = vld [vmem:[%s6182_s11 + $0xf8] sm:$0xff]  ;;  %v6677_v5 = vld [vmem:[%s6182_s11 + $0x108] sm:$0xff] }
  0xd7   : > { %5385 = vmatprep.subr.msk.mxu0 %vm418_vm0, %v6647_v37 }
  0xd8   : > { %5065 = vmatmul.mubr.msk.f32.gmra.mrb[18].mxu1 %vm321_vm1, %v6654_v31 }
  0xd9   : > { %5291 = vmatmul.mubr.msk.f32.gmra.mrb[2].mxu0 %vm321_vm1, %v6541_v7  ;;  %5067 = vmatprep.mubr.msk.f32.mxu1 %vm321_vm1, %v6661_v0  ;;  %v6686_v7 = vld [vmem:[%s6182_s11 + $0x110] sm:$0xff] }
  0xda   : > { %5293 = vmatprep.mubr.msk.f32.mxu0 %vm321_vm1, %v6549_v17  ;;  %v6705_v17 = vld [vmem:[%s6182_s11 + $0x138] sm:$0xff] }
  0xdc   : > { %5068 = vmatmul.mubr.msk.f32.gmra.mrb[20].mxu1 %vm321_vm1, %v6672_v28 }
  0xdd   : > { %5294 = vmatmul.mubr.msk.f32.gmra.mrb[4].mxu0 %vm321_vm1, %v6561_v57  ;;  %5070 = vmatprep.mubr.msk.f32.mxu1 %vm321_vm1, %v6677_v5  ;;  %v6700_v57 = vld [vmem:[%s6182_s11 + $0x128] sm:$0xff] }
  0xde   : > { %5296 = vmatprep.mubr.msk.f32.mxu0 %vm321_vm1, %v6569_v51  ;;  %v6719_v51 = vld [vmem:[%s6182_s11 + $0x150] sm:$0xff] }
  0xe0   : > { %5071 = vmatmul.mubr.msk.f32.gmra.mrb[22].mxu1 %vm321_vm1, %v6686_v7 }
  0xe1   : > { %5297 = vmatmul.mubr.msk.f32.gmra.mrb[6].mxu0 %vm321_vm1, %v6581_v47  ;;  %5073 = vmatprep.mubr.msk.f32.mxu1 %vm321_vm1, %v6691_v3  ;;  %v6714_v47 = vld [vmem:[%s6182_s11 + $0x140] sm:$0xff] }
  0xe2   : > { %5299 = vmatprep.mubr.msk.f32.mxu0 %vm321_vm1, %v6589_v43  ;;  %v6733_v43 = vld [vmem:[%s6182_s11 + $0x168] sm:$0xff] }
  0xe4   : > { %5074 = vmatmul.mubr.msk.f32.gmra.mrb[24].mxu1 %vm321_vm1, %v6700_v57 }
  0xe5   : > { %5300 = vmatmul.mubr.msk.f32.gmra.mrb[8].mxu0 %vm321_vm1, %v6601_v39  ;;  %5076 = vmatprep.mubr.msk.f32.mxu1 %vm321_vm1, %v6705_v17  ;;  %v6728_v39 = vld [vmem:[%s6182_s11 + $0x158] sm:$0xff] }
  0xe6   : > { %5302 = vmatprep.mubr.msk.f32.mxu0 %vm321_vm1, %v6609_v35  ;;  %v971_v35 = vld [vmem:[%s6182_s11 + $0x2] sm:$0xff] }
  0xe8   : > { %5077 = vmatmul.mubr.msk.f32.gmra.mrb[26].mxu1 %vm321_vm1, %v6714_v47 }
  0xe9   : > { %5303 = vmatmul.mubr.msk.f32.gmra.mrb[10].mxu0 %vm321_vm1, %v6621_v62  ;;  %5079 = vmatprep.mubr.msk.f32.mxu1 %vm321_vm1, %v6719_v51  ;;  %v6742_v62 = vld [vmem:[%s6182_s11 + $0x170] sm:$0xff] }
  0xea   : > { %5305 = vmatprep.mubr.msk.f32.mxu0 %vm321_vm1, %v6629_v59  ;;  %v972_v59 = vld [vmem:[%s6182_s11 + $0xa] sm:$0xff] }
  0xec   : > { %5080 = vmatmul.mubr.msk.f32.gmra.mrb[28].mxu1 %vm321_vm1, %v6728_v39 }
  0xed   : > { %5306 = vmatmul.mubr.msk.f32.gmra.mrb[12].mxu0 %vm321_vm1, %v6638_v29  ;;  %5082 = vmatprep.mubr.msk.f32.mxu1 %vm321_vm1, %v6733_v43 }
  0xee   : > { %5308 = vmatprep.mubr.msk.f32.mxu0 %vm321_vm1, %v6643_v33 }
  0xf0   : > { %5083 = vmatmul.mubr.msk.f32.gmra.mrb[30].mxu1 %vm321_vm1, %v6742_v62 }
  0xf1   : > { %5309 = vmatmul.mubr.msk.f32.gmra.mrb[14].mxu0 %vm321_vm1, %v6654_v31  ;;  %5087 = vmatprep.mubr.msk.f32.mxu1 %vm321_vm1, %v971_v35  ;;  %v4482_v35 = vld [vmem:[%s6182_s11 + $0x198] sm:$0xff] }
  0xf2   : > { %5311 = vmatprep.mubr.msk.f32.mxu0 %vm321_vm1, %v6661_v0 }
  0xf4   : > { %5088 = vmatmul.mubr.msk.f32.vlgmr.msra.gmra.mrb[0].mxu1 %vm321_vm1, %v972_v59  ;;  %v4483_v59 = vld [vmem:[%s6182_s11 + $0x1a0] sm:$0xff] }
  0xf5   : > { %5312 = vmatmul.mubr.msk.f32.gmra.mrb[16].mxu0 %vm321_vm1, %v6672_v28  ;;  %5136 = vmatpush3.msk.msra.mxu1 %vm418_vm0, %v6490_v61  ;;  %v7556_v61 = vld [vmem:[#allocation35_spill] sm:$0xff] }
  0xf6   : > { %5090 = vmatprep.mubr.msk.f32.mxu1 %vm321_vm1, %v6310_v24  ;;  %5314 = vmatprep.mubr.msk.f32.mxu0 %vm321_vm1, %v6677_v5  ;;  %v6799_v24 = vld [vmem:[%s6182_s11 + $0x180] sm:$0xff] }
  0xf7   : > { %5435 = vmatprep.subr.msk.mxu1 %vm418_vm0, %v6192_v1 }
  0xf8   : > { %5091 = vmatmul.mubr.msk.f32.gmra.mrb[2].mxu1 %vm321_vm1, %v6321_v25  ;;  %v6810_v25 = vld [vmem:[%s6182_s11 + $0x188] sm:$0xff] }
  0xf9   : > { %5315 = vmatmul.mubr.msk.f32.gmra.mrb[18].mxu0 %vm321_vm1, %v6686_v7  ;;  %5093 = vmatprep.mubr.msk.f32.mxu1 %vm321_vm1, %v6327_v27 }
  0xfa   : > { %5317 = vmatprep.mubr.msk.f32.mxu0 %vm321_vm1, %v6691_v3 }
  0xfc   : > { %5094 = vmatmul.mubr.msk.f32.gmra.mrb[4].mxu1 %vm321_vm1, %v6344_v30 }
  0xfd   : > { %5318 = vmatmul.mubr.msk.f32.gmra.mrb[20].mxu0 %vm321_vm1, %v6700_v57  ;;  %5096 = vmatprep.mubr.msk.f32.mxu1 %vm321_vm1, %v6350_v32 }
  0xfe   : > { %5320 = vmatprep.mubr.msk.f32.mxu0 %vm321_vm1, %v6705_v17 }
 0x100   : > { %5097 = vmatmul.mubr.msk.f32.gmra.mrb[6].mxu1 %vm321_vm1, %v6366_v34 }
 0x101   : > { %5321 = vmatmul.mubr.msk.f32.gmra.mrb[22].mxu0 %vm321_vm1, %v6714_v47  ;;  %5099 = vmatprep.mubr.msk.f32.mxu1 %vm321_vm1, %v6372_v36 }
 0x102   : > { %5323 = vmatprep.mubr.msk.f32.mxu0 %vm321_vm1, %v6719_v51 }
 0x104   : > { %5100 = vmatmul.mubr.msk.f32.gmra.mrb[8].mxu1 %vm321_vm1, %v6386_v38 }
 0x105   : > { %5324 = vmatmul.mubr.msk.f32.gmra.mrb[24].mxu0 %vm321_vm1, %v6728_v39  ;;  %5102 = vmatprep.mubr.msk.f32.mxu1 %vm321_vm1, %v6392_v40 }
 0x106   : > { %5326 = vmatprep.mubr.msk.f32.mxu0 %vm321_vm1, %v6733_v43 }
 0x108   : > { %5103 = vmatmul.mubr.msk.f32.gmra.mrb[10].mxu1 %vm321_vm1, %v6406_v42 }
 0x109   : > { %5327 = vmatmul.mubr.msk.f32.gmra.mrb[26].mxu0 %vm321_vm1, %v6742_v62  ;;  %5105 = vmatprep.mubr.msk.f32.mxu1 %vm321_vm1, %v6412_v44 }
 0x10a   : > { %5329 = vmatprep.mubr.msk.f32.mxu0 %vm321_vm1, %v6799_v24 }
 0x10c   : > { %5106 = vmatmul.mubr.msk.f32.gmra.mrb[12].mxu1 %vm321_vm1, %v6426_v46 }
 0x10d   : > { %5330 = vmatmul.mubr.msk.f32.gmra.mrb[28].mxu0 %vm321_vm1, %v6810_v25  ;;  %5108 = vmatprep.mubr.msk.f32.mxu1 %vm321_vm1, %v6432_v48 }
 0x10e   : > { %5332 = vmatprep.mubr.msk.f32.mxu0 %vm321_vm1, %v4482_v35  ;;  %v7557_v35 = vld [vmem:[#allocation23_spill] sm:$0xff] }
 0x110   : > { %5109 = vmatmul.mubr.msk.f32.gmra.mrb[14].mxu1 %vm321_vm1, %v6446_v50 }
 0x111   : > { %5333 = vmatmul.mubr.msk.f32.gmra.mrb[30].mxu0 %vm321_vm1, %v4483_v59  ;;  %5111 = vmatprep.mubr.msk.f32.mxu1 %vm321_vm1, %v6452_v52  ;;  %v7558_v59 = vld [vmem:[#allocation36_spill] sm:$0xff] }
 0x112   : > { %5337 = vmatprep.mubr.msk.f32.mxu0 %vm321_vm1, %v6209_v8  ;;  %v7540_v8 = vld [vmem:[#allocation40_spill] sm:$0xff] }
 0x114   : > { %5112 = vmatmul.mubr.msk.f32.gmra.mrb[16].mxu1 %vm321_vm1, %v6466_v54 }
 0x115   : > { %5338 = vmatmul.mubr.msk.f32.vlgmr.msra.gmra.mrb[0].mxu0 %vm321_vm1, %v6216_v9  ;;  %5114 = vmatprep.mubr.msk.f32.mxu1 %vm321_vm1, %v6470_v56  ;;  %v7541_v9 = vld [vmem:[#allocation15_spill] sm:$0xff] }
 0x116   : > { %5386 = vmatpush3.msk.msra.mxu0 %vm418_vm0, %v6647_v37  ;;  %5340 = vmatprep.mubr.msk.f32.mxu0 %vm321_vm1, %v6222_v10  ;;  %v7542_v10 = vld [vmem:[#allocation28_spill] sm:$0xff]  ;;  %v7555_v37 = vld [vmem:[#allocation22_spill] sm:$0xff] }
 0x118   : > { %5115 = vmatmul.mubr.msk.f32.gmra.mrb[18].mxu1 %vm321_vm1, %v6481_v58 }
 0x119   : > { %5341 = vmatmul.mubr.msk.f32.gmra.mrb[2].mxu0 %vm321_vm1, %v6232_v12  ;;  %5117 = vmatprep.mubr.msk.f32.mxu1 %vm321_vm1, %v6487_v60  ;;  %v7543_v12 = vld [vmem:[#allocation16_spill] sm:$0xff] }
 0x11a   : > { %5343 = vmatprep.mubr.msk.f32.mxu0 %vm321_vm1, %v6236_v13  ;;  %v7544_v13 = vld [vmem:[#allocation29_spill] sm:$0xff] }
 0x11c   : > { %5118 = vmatmul.mubr.msk.f32.gmra.mrb[20].mxu1 %vm321_vm1, %v6504_v63 }
 0x11d   : > { %5344 = vmatmul.mubr.msk.f32.gmra.mrb[4].mxu0 %vm321_vm1, %v6247_v14  ;;  %5120 = vmatprep.mubr.msk.f32.mxu1 %vm321_vm1, %v6510_v2  ;;  %v7545_v14 = vld [vmem:[#allocation17_spill] sm:$0xff] }
 0x11e   : > { %5346 = vmatprep.mubr.msk.f32.mxu0 %vm321_vm1, %v6250_v15  ;;  %v7546_v15 = vld [vmem:[#allocation30_spill] sm:$0xff] }
 0x120   : > { %5121 = vmatmul.mubr.msk.f32.gmra.mrb[22].mxu1 %vm321_vm1, %v6526_v4 }
 0x121   : > { %5347 = vmatmul.mubr.msk.f32.gmra.mrb[6].mxu0 %vm321_vm1, %v6261_v16  ;;  %5123 = vmatprep.mubr.msk.f32.mxu1 %vm321_vm1, %v6532_v6  ;;  %v7547_v16 = vld [vmem:[#allocation18_spill] sm:$0xff] }
 0x122   : > { %5349 = vmatprep.mubr.msk.f32.mxu0 %vm321_vm1, %v6266_v18  ;;  %v7548_v18 = vld [vmem:[#allocation31_spill] sm:$0xff] }
 0x124   : > { %5124 = vmatmul.mubr.msk.f32.gmra.mrb[24].mxu1 %vm321_vm1, %v6546_v11 }
 0x125   : > { %5350 = vmatmul.mubr.msk.f32.gmra.mrb[8].mxu0 %vm321_vm1, %v6279_v19  ;;  %5126 = vmatprep.mubr.msk.f32.mxu1 %vm321_vm1, %v6552_v55  ;;  %v7549_v19 = vld [vmem:[#allocation19_spill] sm:$0xff] }
 0x126   : > { %5352 = vmatprep.mubr.msk.f32.mxu0 %vm321_vm1, %v6282_v20  ;;  %v7550_v20 = vld [vmem:[#allocation32_spill] sm:$0xff] }
 0x128   : > { %5127 = vmatmul.mubr.msk.f32.gmra.mrb[26].mxu1 %vm321_vm1, %v6566_v53 }
 0x129   : > { %5353 = vmatmul.mubr.msk.f32.gmra.mrb[10].mxu0 %vm321_vm1, %v6293_v21  ;;  %5129 = vmatprep.mubr.msk.f32.mxu1 %vm321_vm1, %v6572_v49  ;;  %v7551_v21 = vld [vmem:[#allocation20_spill] sm:$0xff] }
 0x12a   : > { %5355 = vmatprep.mubr.msk.f32.mxu0 %vm321_vm1, %v6296_v22  ;;  %v7553_v22 = vld [vmem:[#allocation21_spill] sm:$0xff] }
 0x12c   : > { %5130 = vmatmul.mubr.msk.f32.gmra.mrb[28].mxu1 %vm321_vm1, %v6586_v45 }
 0x12d   : > { %5356 = vmatmul.mubr.msk.f32.gmra.mrb[12].mxu0 %vm321_vm1, %v6307_v23  ;;  %5132 = vmatprep.mubr.msk.f32.mxu1 %vm321_vm1, %v6592_v41  ;;  %v7554_v23 = vld [vmem:[#allocation34_spill] sm:$0xff] }
 0x12e   : > { %5358 = vmatprep.mubr.msk.f32.mxu0 %vm321_vm1, %v6324_v26 }
 0x130   : > { %5133 = vmatmul.mubr.msk.f32.gmra.mrb[30].mxu1 %vm321_vm1, %v7540_v8  ;;  %v7567_v8 = vld [vmem:[#allocation43_spill] sm:$0xff] }
 0x131   : > { %5359 = vmatmul.mubr.msk.f32.gmra.mrb[14].mxu0 %vm321_vm1, %v7541_v9  ;;  %5137 = vmatprep.mubr.msk.f32.mxu1 %vm321_vm1, %v7542_v10  ;;  %v7559_v10 = vld [vmem:[#allocation24_spill] sm:$0xff] }
 0x132   : > { %5361 = vmatprep.mubr.msk.f32.mxu0 %vm321_vm1, %v7543_v12 }
 0x134   : > { %5138 = vmatmul.mubr.msk.f32.vlgmr.msra.gmra.mrb[0].mxu1 %vm321_vm1, %v7544_v13  ;;  %v7560_v13 = vld [vmem:[#allocation37_spill] sm:$0xff] }
 0x135   : > { %5362 = vmatmul.mubr.msk.f32.gmra.mrb[16].mxu0 %vm321_vm1, %v7545_v14  ;;  %5436 = vmatpush3.msk.msra.mxu1 %vm418_vm0, %v6192_v1  ;;  %v7552_v1 = vld [vmem:[#allocation33_spill] sm:$0xff] }
 0x136   : > { %5140 = vmatprep.mubr.msk.f32.mxu1 %vm321_vm1, %v7546_v15  ;;  %5364 = vmatprep.mubr.msk.f32.mxu0 %vm321_vm1, %v7547_v16  ;;  %v7561_v15 = vld [vmem:[#allocation25_spill] sm:$0xff] }
 0x138   : > { %5141 = vmatmul.mubr.msk.f32.gmra.mrb[2].mxu1 %vm321_vm1, %v7548_v18  ;;  %v7562_v18 = vld [vmem:[#allocation38_spill] sm:$0xff] }
 0x139   : > { %5365 = vmatmul.mubr.msk.f32.gmra.mrb[18].mxu0 %vm321_vm1, %v7549_v19  ;;  %5143 = vmatprep.mubr.msk.f32.mxu1 %vm321_vm1, %v7550_v20  ;;  %v7563_v20 = vld [vmem:[#allocation26_spill] sm:$0xff] }
 0x13a   : > { %5367 = vmatprep.mubr.msk.f32.mxu0 %vm321_vm1, %v7551_v21 }
 0x13c   : > { %5144 = vmatmul.mubr.msk.f32.gmra.mrb[4].mxu1 %vm321_vm1, %v7552_v1  ;;  %v6937_v1 = vld [vmem:[%s6182_s11 + $0x181] sm:$0xff] }
 0x13d   : > { %5368 = vmatmul.mubr.msk.f32.gmra.mrb[20].mxu0 %vm321_vm1, %v7553_v22  ;;  %5146 = vmatprep.mubr.msk.f32.mxu1 %vm321_vm1, %v7554_v23  ;;  %v7564_v23 = vld [vmem:[#allocation39_spill] sm:$0xff] }
 0x13e   : > { %5370 = vmatprep.mubr.msk.f32.mxu0 %vm321_vm1, %v7555_v37 }
 0x140   : > { %5147 = vmatmul.mubr.msk.f32.gmra.mrb[6].mxu1 %vm321_vm1, %v7556_v61  ;;  %v7565_v61 = vld [vmem:[#allocation27_spill] sm:$0xff] }
 0x141   : > { %5371 = vmatmul.mubr.msk.f32.gmra.mrb[22].mxu0 %vm321_vm1, %v7557_v35  ;;  %5149 = vmatprep.mubr.msk.f32.mxu1 %vm321_vm1, %v7558_v59  ;;  %v7566_v59 = vld [vmem:[#allocation41_spill] sm:$0xff] }
 0x142   : > { %5373 = vmatprep.mubr.msk.f32.mxu0 %vm321_vm1, %v7559_v10 }
 0x144   : > { %5150 = vmatmul.mubr.msk.f32.gmra.mrb[8].mxu1 %vm321_vm1, %v7560_v13  ;;  %v6948_v13 = vld [vmem:[%s6182_s11 + $0x189] sm:$0xff] }
 0x145   : > { %5374 = vmatmul.mubr.msk.f32.gmra.mrb[24].mxu0 %vm321_vm1, %v7561_v15  ;;  %5152 = vmatprep.mubr.msk.f32.mxu1 %vm321_vm1, %v7562_v18  ;;  %v4547_v18 = vld [vmem:[%s6182_s11 + $0x199] sm:$0xff] }
 0x146   : > { %5376 = vmatprep.mubr.msk.f32.mxu0 %vm321_vm1, %v7563_v20  ;;  %v7568_v20 = vld [vmem:[#allocation45_spill] sm:$0xff] }
 0x148   : > { %5153 = vmatmul.mubr.msk.f32.gmra.mrb[10].mxu1 %vm321_vm1, %v7564_v23  ;;  %v4548_v23 = vld [vmem:[%s6182_s11 + $0x1a1] sm:$0xff] }
 0x149   : > { %5377 = vmatmul.mubr.msk.f32.gmra.mrb[26].mxu0 %vm321_vm1, %v7565_v61  ;;  %5155 = vmatprep.mubr.msk.f32.mxu1 %vm321_vm1, %v7566_v59 }
 0x14a   : > { %5379 = vmatprep.mubr.msk.f32.mxu0 %vm321_vm1, %v6937_v1 }
 0x14c   : > { %5156 = vmatmul.mubr.msk.f32.gmra.mrb[12].mxu1 %vm321_vm1, %v7567_v8 }
 0x14d   : > { %5380 = vmatmul.mubr.msk.f32.gmra.mrb[28].mxu0 %vm321_vm1, %v6948_v13  ;;  %5158 = vmatprep.mubr.msk.f32.mxu1 %vm321_vm1, %v7568_v20 }
 0x14e   : > { %5382 = vmatprep.mubr.msk.f32.mxu0 %vm321_vm1, %v4547_v18 }
 0x150   : > { %5159 = vmatmul.mubr.msk.f32.gmra.mrb[14].mxu1 %vm321_vm1, %v6638_v29  ;;  %v7571_v29 = vld [vmem:[#allocation42_spill] sm:$0xff] }
 0x151   : > { %5383 = vmatmul.mubr.msk.f32.gmra.mrb[30].mxu0 %vm321_vm1, %v4548_v23  ;;  %5161 = vmatprep.mubr.msk.f32.mxu1 %vm321_vm1, %v6643_v33  ;;  %v5973_v33 = vmov 0.0  }
 0x152   : > { %5387 = vmatprep.mubr.msk.f32.mxu0 %vm321_vm1, %v6327_v27  ;;  %v7570_v27 = vld [vmem:[#allocation26_spill] sm:$0xff]  ;;  %3915 = vst.msk [vmem:[%s7092_s21] sm:$0xff] %vm321_vm1, %v5973_v33  ;;  %3916 = vst.msk [vmem:[%s7092_s21 + $0x8] sm:$0xff] %vm321_vm1, %v5973_v33 }
 0x153   : > { %3918 = vst.msk [vmem:[%s7092_s21 + $0x10] sm:$0x3] %vm3917_vm3, %v5973_v33  ;;  %4650 = vst.msk [vmem:[%s7092_s21 + $0x1a8] sm:$0x3] %vm3917_vm3, %v5973_v33 }
 0x154   : > { %5162 = vmatmul.mubr.msk.f32.gmra.mrb[16].mxu1 %vm321_vm1, %v6654_v31  ;;  %v7572_v31 = vld [vmem:[#allocation44_spill] sm:$0xff]  ;;  %4648 = vst.msk [vmem:[%s7092_s21 + $0x198] sm:$0xff] %vm321_vm1, %v5973_v33  ;;  %4649 = vst.msk [vmem:[%s7092_s21 + $0x1a0] sm:$0xff] %vm321_vm1, %v5973_v33 }
 0x155   : > { %5388 = vmatmul.mubr.msk.f32.vlgmr.msra.gmra.mrb[0].mxu0 %vm321_vm1, %v6344_v30  ;;  %5164 = vmatprep.mubr.msk.f32.mxu1 %vm321_vm1, %v6661_v0  ;;  %v4612_v30 = vld [vmem:[%s6182_s11 + $0x19a] sm:$0xff]  ;;  %3924 = vst.msk [vmem:[%s7092_s21 + $0x18] sm:$0x1] %vm3811_vm2, %v5973_v33  ;;  %3925 = vst.msk [vmem:[%s7092_s21 + $0x30] sm:$0x1] %vm3811_vm2, %v5973_v33 }
 0x156   : > { %5390 = vmatprep.mubr.msk.f32.mxu0 %vm321_vm1, %v6350_v32  ;;  %v4613_v32 = vld [vmem:[%s6182_s11 + $0x1a2] sm:$0xff]  ;;  %3926 = vst.msk [vmem:[%s7092_s21 + $0x48] sm:$0x1] %vm3811_vm2, %v5973_v33  ;;  %3927 = vst.msk [vmem:[%s7092_s21 + $0x60] sm:$0x1] %vm3811_vm2, %v5973_v33 }
 0x157   : > { %3928 = vst.msk [vmem:[%s7092_s21 + $0x78] sm:$0x1] %vm3811_vm2, %v5973_v33  ;;  %3929 = vst.msk [vmem:[%s7092_s21 + $0x90] sm:$0x1] %vm3811_vm2, %v5973_v33 }
 0x158   : > { %5165 = vmatmul.mubr.msk.f32.gmra.mrb[18].mxu1 %vm321_vm1, %v6672_v28  ;;  %3930 = vst.msk [vmem:[%s7092_s21 + $0xa8] sm:$0x1] %vm3811_vm2, %v5973_v33  ;;  %3931 = vst.msk [vmem:[%s7092_s21 + $0xc0] sm:$0x1] %vm3811_vm2, %v5973_v33 }
 0x159   : > { %5391 = vmatmul.mubr.msk.f32.gmra.mrb[2].mxu0 %vm321_vm1, %v6366_v34  ;;  %5167 = vmatprep.mubr.msk.f32.mxu1 %vm321_vm1, %v6677_v5  ;;  %3932 = vst.msk [vmem:[%s7092_s21 + $0xd8] sm:$0x1] %vm3811_vm2, %v5973_v33  ;;  %3933 = vst.msk [vmem:[%s7092_s21 + $0xf0] sm:$0x1] %vm3811_vm2, %v5973_v33 }
 0x15a   : > { %5393 = vmatprep.mubr.msk.f32.mxu0 %vm321_vm1, %v6372_v36  ;;  %3934 = vst.msk [vmem:[%s7092_s21 + $0x108] sm:$0x1] %vm3811_vm2, %v5973_v33  ;;  %3935 = vst.msk [vmem:[%s7092_s21 + $0x120] sm:$0x1] %vm3811_vm2, %v5973_v33 }
 0x15b   : > { %3936 = vst.msk [vmem:[%s7092_s21 + $0x138] sm:$0x1] %vm3811_vm2, %v5973_v33  ;;  %3937 = vst.msk [vmem:[%s7092_s21 + $0x150] sm:$0x1] %vm3811_vm2, %v5973_v33 }
 0x15c   : > { %5168 = vmatmul.mubr.msk.f32.gmra.mrb[20].mxu1 %vm321_vm1, %v6686_v7  ;;  %3938 = vst.msk [vmem:[%s7092_s21 + $0x168] sm:$0x1] %vm3811_vm2, %v5973_v33  ;;  %3939 = vst.msk [vmem:[%s7092_s21 + $0x180] sm:$0x1] %vm3811_vm2, %v5973_v33 }
 0x15d   : > { %5394 = vmatmul.mubr.msk.f32.gmra.mrb[4].mxu0 %vm321_vm1, %v6386_v38  ;;  %5170 = vmatprep.mubr.msk.f32.mxu1 %vm321_vm1, %v6691_v3  ;;  %3942 = vst.msk [vmem:[%s7092_s21 + $0x29] sm:$0x1] %vm3811_vm2, %v5973_v33  ;;  %3943 = vst.msk [vmem:[%s7092_s21 + $0x41] sm:$0x1] %vm3811_vm2, %v5973_v33 }
 0x15e   : > { %5396 = vmatprep.mubr.msk.f32.mxu0 %vm321_vm1, %v6392_v40  ;;  %3944 = vst.msk [vmem:[%s7092_s21 + $0x59] sm:$0x1] %vm3811_vm2, %v5973_v33  ;;  %3945 = vst.msk [vmem:[%s7092_s21 + $0x71] sm:$0x1] %vm3811_vm2, %v5973_v33 }
 0x15f   : > { %3946 = vst.msk [vmem:[%s7092_s21 + $0x89] sm:$0x1] %vm3811_vm2, %v5973_v33  ;;  %3947 = vst.msk [vmem:[%s7092_s21 + $0xa1] sm:$0x1] %vm3811_vm2, %v5973_v33 }
 0x160   : > { %5171 = vmatmul.mubr.msk.f32.gmra.mrb[22].mxu1 %vm321_vm1, %v6700_v57  ;;  %3948 = vst.msk [vmem:[%s7092_s21 + $0xb9] sm:$0x1] %vm3811_vm2, %v5973_v33  ;;  %3949 = vst.msk [vmem:[%s7092_s21 + $0xd1] sm:$0x1] %vm3811_vm2, %v5973_v33 }
 0x161   : > { %5397 = vmatmul.mubr.msk.f32.gmra.mrb[6].mxu0 %vm321_vm1, %v6406_v42  ;;  %5173 = vmatprep.mubr.msk.f32.mxu1 %vm321_vm1, %v6705_v17  ;;  %3950 = vst.msk [vmem:[%s7092_s21 + $0xe9] sm:$0x1] %vm3811_vm2, %v5973_v33  ;;  %3951 = vst.msk [vmem:[%s7092_s21 + $0x101] sm:$0x1] %vm3811_vm2, %v5973_v33 }
 0x162   : > { %5399 = vmatprep.mubr.msk.f32.mxu0 %vm321_vm1, %v6412_v44  ;;  %3952 = vst.msk [vmem:[%s7092_s21 + $0x119] sm:$0x1] %vm3811_vm2, %v5973_v33  ;;  %3953 = vst.msk [vmem:[%s7092_s21 + $0x131] sm:$0x1] %vm3811_vm2, %v5973_v33 }
 0x163   : > { %3954 = vst.msk [vmem:[%s7092_s21 + $0x149] sm:$0x1] %vm3811_vm2, %v5973_v33  ;;  %3955 = vst.msk [vmem:[%s7092_s21 + $0x161] sm:$0x1] %vm3811_vm2, %v5973_v33 }
 0x164   : > { %5174 = vmatmul.mubr.msk.f32.gmra.mrb[24].mxu1 %vm321_vm1, %v6714_v47  ;;  %3956 = vst.msk [vmem:[%s7092_s21 + $0x179] sm:$0x1] %vm3811_vm2, %v5973_v33  ;;  %3957 = vst.msk [vmem:[%s7092_s21 + $0x191] sm:$0x1] %vm3811_vm2, %v5973_v33 }
 0x165   : > { %5400 = vmatmul.mubr.msk.f32.gmra.mrb[8].mxu0 %vm321_vm1, %v6426_v46  ;;  %5176 = vmatprep.mubr.msk.f32.mxu1 %vm321_vm1, %v6719_v51  ;;  %3923 = vst.msk [vmem:[%s7092_s21] sm:$0x1] %vm3811_vm2, %v5973_v33  ;;  %3940 = vst.msk [vmem:[%s7092_s21 + $0x198] sm:$0x1] %vm3811_vm2, %v5973_v33 }
 0x166   : > { %5402 = vmatprep.mubr.msk.f32.mxu0 %vm321_vm1, %v6432_v48  ;;  %3941 = vst.msk [vmem:[%s7092_s21 + $0x11] sm:$0x1] %vm3811_vm2, %v5973_v33  ;;  %3958 = vst.msk [vmem:[%s7092_s21 + $0x1a9] sm:$0x1] %vm3811_vm2, %v5973_v33 }
 0x168   : > { %5177 = vmatmul.mubr.msk.f32.gmra.mrb[26].mxu1 %vm321_vm1, %v6728_v39 }
 0x169   : > { %5403 = vmatmul.mubr.msk.f32.gmra.mrb[10].mxu0 %vm321_vm1, %v6446_v50  ;;  %5179 = vmatprep.mubr.msk.f32.mxu1 %vm321_vm1, %v6733_v43 }
 0x16a   : > { %5405 = vmatprep.mubr.msk.f32.mxu0 %vm321_vm1, %v6452_v52 }
 0x16c   : > { %5180 = vmatmul.mubr.msk.f32.gmra.mrb[28].mxu1 %vm321_vm1, %v6742_v62 }
 0x16d   : > { %5406 = vmatmul.mubr.msk.f32.gmra.mrb[12].mxu0 %vm321_vm1, %v6466_v54  ;;  %5182 = vmatprep.mubr.msk.f32.mxu1 %vm321_vm1, %v6799_v24 }
 0x16e   : > { %5408 = vmatprep.mubr.msk.f32.mxu0 %vm321_vm1, %v6470_v56 }
 0x170   : > { %5183 = vmatmul.mubr.msk.f32.gmra.mrb[30].mxu1 %vm321_vm1, %v6810_v25 }
 0x171   : > { %5409 = vmatmul.mubr.msk.f32.gmra.mrb[14].mxu0 %vm321_vm1, %v6481_v58  ;;  %5211 = vmatprep.mubr.msk.f32.mxu1 %vm321_vm1, %v6324_v26  ;;  %v7569_v26 = vld [vmem:[#allocation40_spill] sm:$0xff] }
 0x172   : > { %5411 = vmatprep.mubr.msk.f32.mxu0 %vm321_vm1, %v6487_v60 }
 0x174   : > { %5212 = vmatmul.mubr.msk.f32.vlgmr.msra.gmra.mrb[16].mxu1 %vm321_vm1, %v7541_v9 }
 0x175   : > { %5412 = vmatmul.mubr.msk.f32.gmra.mrb[16].mxu0 %vm321_vm1, %v6504_v63  ;;  %5214 = vmatprep.mubr.msk.f32.mxu1 %vm321_vm1, %v7543_v12 }
 0x176   : > { %5414 = vmatprep.mubr.msk.f32.mxu0 %vm321_vm1, %v6510_v2 }
 0x178   : > { %5215 = vmatmul.mubr.msk.f32.gmra.mrb[18].mxu1 %vm321_vm1, %v7545_v14 }
 0x179   : > { %5415 = vmatmul.mubr.msk.f32.gmra.mrb[18].mxu0 %vm321_vm1, %v6526_v4  ;;  %5217 = vmatprep.mubr.msk.f32.mxu1 %vm321_vm1, %v7547_v16 }
 0x17a   : > { %5417 = vmatprep.mubr.msk.f32.mxu0 %vm321_vm1, %v6532_v6 }
 0x17c   : > { %5218 = vmatmul.mubr.msk.f32.gmra.mrb[20].mxu1 %vm321_vm1, %v7549_v19 }
 0x17d   : > { %5418 = vmatmul.mubr.msk.f32.gmra.mrb[20].mxu0 %vm321_vm1, %v6546_v11  ;;  %5220 = vmatprep.mubr.msk.f32.mxu1 %vm321_vm1, %v7551_v21 }
 0x17e   : > { %5420 = vmatprep.mubr.msk.f32.mxu0 %vm321_vm1, %v6552_v55 }
 0x180   : > { %5221 = vmatmul.mubr.msk.f32.gmra.mrb[22].mxu1 %vm321_vm1, %v7553_v22 }
 0x181   : > { %5421 = vmatmul.mubr.msk.f32.gmra.mrb[22].mxu0 %vm321_vm1, %v6566_v53  ;;  %5223 = vmatprep.mubr.msk.f32.mxu1 %vm321_vm1, %v7555_v37  ;;  %v7192_v53 = vld [vmem:[#allocation7] ss:$0 sm:$0xff] }
 0x182   : > { %5423 = vmatprep.mubr.msk.f32.mxu0 %vm321_vm1, %v6572_v49 }
 0x184   : > { %5224 = vmatmul.mubr.msk.f32.gmra.mrb[24].mxu1 %vm321_vm1, %v7557_v35 }
 0x185   : > { %5424 = vmatmul.mubr.msk.f32.gmra.mrb[24].mxu0 %vm321_vm1, %v6586_v45  ;;  %5226 = vmatprep.mubr.msk.f32.mxu1 %vm321_vm1, %v7559_v10 }
 0x186   : > { %5426 = vmatprep.mubr.msk.f32.mxu0 %vm321_vm1, %v6592_v41 }
 0x188   : > { %5227 = vmatmul.mubr.msk.f32.gmra.mrb[26].mxu1 %vm321_vm1, %v7561_v15 }
 0x189   : > { %5427 = vmatmul.mubr.msk.f32.gmra.mrb[26].mxu0 %vm321_vm1, %v7569_v26  ;;  %5229 = vmatprep.mubr.msk.f32.mxu1 %vm321_vm1, %v7570_v27 }
 0x18a   : > { %5429 = vmatprep.mubr.msk.f32.mxu0 %vm321_vm1, %v7571_v29 }
 0x18c   : > { %5230 = vmatmul.mubr.msk.f32.gmra.mrb[28].mxu1 %vm321_vm1, %v7565_v61 }
 0x18d   : > { %5430 = vmatmul.mubr.msk.f32.gmra.mrb[28].mxu0 %vm321_vm1, %v7572_v31  ;;  %5232 = vmatprep.mubr.msk.f32.mxu1 %vm321_vm1, %v6937_v1 }
 0x18e   : > { %5432 = vmatprep.mubr.msk.f32.mxu0 %vm321_vm1, %v4612_v30 }
 0x190   : > { %5233 = vmatmul.mubr.msk.f32.gmra.mrb[30].mxu1 %vm321_vm1, %v6948_v13 }
 0x191   : > { %5433 = vmatmul.mubr.msk.f32.gmra.mrb[30].mxu0 %vm321_vm1, %v4613_v32 }
 0x207   : > { %v5139_v34 = vpop.f32.mrb[0].mxu1 }
 0x208   : > { %v1561_v36 = vpop.f32.mrb[1].mxu1 }
 0x20b   : > { %v5142_v38 = vpop.f32.mrb[2].mxu1 }
 0x20c   : > { %v1571_v39 = vpop.f32.mrb[3].mxu1 }
 0x20f   : > { %v5145_v40 = vpop.f32.mrb[4].mxu1 }
 0x210   : > { %v1581_v41 = vpop.f32.mrb[5].mxu1 }
 0x213   : > { %v5148_v42 = vpop.f32.mrb[6].mxu1 }
 0x214   : > { %v1591_v43 = vpop.f32.mrb[7].mxu1 }
 0x217   : > { %v7176_v44 = vpop.f32.mrb[8].mxu1 }
 0x218   : > { %v7178_v45 = vpop.f32.mrb[9].mxu1 }
 0x21b   : > { %v7180_v46 = vpop.f32.mrb[10].mxu1 }
 0x21c   : > { %v7182_v47 = vpop.f32.mrb[11].mxu1 }
 0x21f   : > { %v7184_v48 = vpop.f32.mrb[12].mxu1 }
 0x220   : > { %v7186_v49 = vpop.f32.mrb[13].mxu1 }
 0x223   : > { %v7188_v50 = vpop.f32.mrb[14].mxu1 }
 0x224   : > { %v7190_v51 = vpop.f32.mrb[15].mxu1 }
 0x228   : > { %v5389_v52 = vpop.f32.mrb[0].mxu0 }
 0x229   : > { %v5437_v54 = vadd.f32 %v5389_v52, %v5139_v34  ;;  %v3512_v56 = vpop.f32.mrb[1].mxu0 }
 0x22a   : > { %v5438_v58 = vadd.f32 %v3512_v56, %v1561_v36 }
 0x22b   : > { %v3711_v60 = vadd.f32 %v5437_v54, %v7192_v53 }
 0x22c   : > { %v3710_v62 = vadd.f32 %v5438_v58, %v7192_v53  ;;  %v5392_v63 = vpop.f32.mrb[2].mxu0 }
 0x22d   : > { %v3743_v0 = vsel %vm321_vm1, %v3711_v60, 0.0  ;;  %v3814_v2 = vmul.f32 %v3711_v60, %v3711_v60  ;;  %4652 = vst.msk [vmem:[%s7092_s21 + $0x21] sm:$0xff] %vm321_vm1, %v3711_v60  ;;  %v5439_v3 = vadd.f32 %v5392_v63, %v5142_v38  ;;  %v3522_v4 = vpop.f32.mrb[3].mxu0 }
 0x22e   : > { %v3742_v5 = vsel %vm321_vm1, %v3710_v62, 0.0  ;;  %v3813_v6 = vmul.f32 %v3710_v62, %v3710_v62  ;;  %4651 = vst.msk [vmem:[%s7092_s21 + $0x19] sm:$0xff] %vm321_vm1, %v3710_v62  ;;  %v5440_v7 = vadd.f32 %v3522_v4, %v1571_v39 }
 0x22f   : > { %v3846_v11 = vsel %vm321_vm1, %v3814_v2, 0.0  ;;  %v3744_v17 = vadd.f32 %v3743_v0, %v3742_v5  ;;  %v3713_v55 = vadd.f32 %v5439_v3, %v7192_v53 }
 0x230   : > { %v3845_v57 = vsel %vm321_vm1, %v3813_v6, 0.0  ;;  %v3712_v28 = vadd.f32 %v5440_v7, %v7192_v53  ;;  %v5395_v24 = vpop.f32.mrb[4].mxu0 }
 0x231   : > { %v3847_v25 = vadd.f32 %v3846_v11, %v3845_v57  ;;  %v3816_v8 = vmul.f32 %v3713_v55, %v3713_v55  ;;  %4654 = vst.msk [vmem:[%s7092_s21 + $0x39] sm:$0xff] %vm321_vm1, %v3713_v55  ;;  %v5441_v9 = vadd.f32 %v5395_v24, %v5145_v40  ;;  %v3532_v12 = vpop.f32.mrb[5].mxu0  ;;  %v3747_v37 = vsel %vm321_vm1, %v3713_v55, 0.0 }
 0x232   : > { %v3745_v14 = vsel %vm321_vm1, %v3712_v28, 0.0  ;;  %v3815_v16 = vmul.f32 %v3712_v28, %v3712_v28  ;;  %4653 = vst.msk [vmem:[%s7092_s21 + $0x31] sm:$0xff] %vm321_vm1, %v3712_v28  ;;  %v5442_v19 = vadd.f32 %v3532_v12, %v1581_v41 }
 0x233   : > { %v3746_v21 = vadd.f32 %v3745_v14, %v3744_v17  ;;  %v3715_v22 = vadd.f32 %v5441_v9, %v7192_v53  ;;  %v3850_v20 = vsel %vm321_vm1, %v3816_v8, 0.0 }
 0x234   : > { %v3848_v35 = vsel %vm321_vm1, %v3815_v16, 0.0  ;;  %v3714_v10 = vadd.f32 %v5442_v19, %v7192_v53  ;;  %v5398_v15 = vpop.f32.mrb[6].mxu0 }
 0x235   : > { %v3849_v1 = vadd.f32 %v3848_v35, %v3847_v25  ;;  %v3818_v61 = vmul.f32 %v3715_v22, %v3715_v22  ;;  %4656 = vst.msk [vmem:[%s7092_s21 + $0x51] sm:$0xff] %vm321_vm1, %v3715_v22  ;;  %v3748_v59 = vadd.f32 %v3747_v37, %v3746_v21  ;;  %v3542_v13 = vpop.f32.mrb[7].mxu0  ;;  %v5443_v26 = vadd.f32 %v5398_v15, %v5148_v42 }
 0x236   : > { %v3749_v18 = vsel %vm321_vm1, %v3714_v10, 0.0  ;;  %v3817_v23 = vmul.f32 %v3714_v10, %v3714_v10  ;;  %4655 = vst.msk [vmem:[%s7092_s21 + $0x49] sm:$0xff] %vm321_vm1, %v3714_v10  ;;  %v5444_v27 = vadd.f32 %v3542_v13, %v1591_v43  ;;  %v3751_v31 = vsel %vm321_vm1, %v3715_v22, 0.0 }
 0x237   : > { %v3750_v29 = vadd.f32 %v3749_v18, %v3748_v59  ;;  %v3851_v30 = vadd.f32 %v3850_v20, %v3849_v1  ;;  %v3717_v33 = vadd.f32 %v5443_v26, %v7192_v53  ;;  %v3854_v42 = vsel %vm321_vm1, %v3818_v61, 0.0 }
 0x238   : > { %v3852_v32 = vsel %vm321_vm1, %v3817_v23, 0.0  ;;  %v3716_v34 = vadd.f32 %v5444_v27, %v7192_v53  ;;  %v5401_v36 = vpop.f32.mrb[8].mxu0 }
 0x239   : > { %v3853_v38 = vadd.f32 %v3852_v32, %v3851_v30  ;;  %v3752_v39 = vadd.f32 %v3751_v31, %v3750_v29  ;;  %v5445_v40 = vadd.f32 %v5401_v36, %v7176_v44  ;;  %v3552_v41 = vpop.f32.mrb[9].mxu0  ;;  %v3820_v43 = vmul.f32 %v3717_v33, %v3717_v33  ;;  %4658 = vst.msk [vmem:[%s7092_s21 + $0x69] sm:$0xff] %vm321_vm1, %v3717_v33 }
 0x23a   : > { %v3753_v52 = vsel %vm321_vm1, %v3716_v34, 0.0  ;;  %v3819_v54 = vmul.f32 %v3716_v34, %v3716_v34  ;;  %4657 = vst.msk [vmem:[%s7092_s21 + $0x61] sm:$0xff] %vm321_vm1, %v3716_v34  ;;  %v5446_v62 = vadd.f32 %v3552_v41, %v7178_v45  ;;  %v3755_v0 = vsel %vm321_vm1, %v3717_v33, 0.0 }
 0x23b   : > { %v3754_v56 = vadd.f32 %v3753_v52, %v3752_v39  ;;  %v3855_v58 = vadd.f32 %v3854_v42, %v3853_v38  ;;  %v3719_v60 = vadd.f32 %v5445_v40, %v7192_v53  ;;  %v3858_v2 = vsel %vm321_vm1, %v3820_v43, 0.0 }
 0x23c   : > { %v3856_v44 = vsel %vm321_vm1, %v3819_v54, 0.0  ;;  %v5404_v63 = vpop.f32.mrb[10].mxu0  ;;  %v3718_v4 = vadd.f32 %v5446_v62, %v7192_v53 }
 0x23d   : > { %v3857_v3 = vadd.f32 %v3856_v44, %v3855_v58  ;;  %4660 = vst.msk [vmem:[%s7092_s21 + $0x81] sm:$0xff] %vm321_vm1, %v3719_v60  ;;  %v3562_v5 = vpop.f32.mrb[11].mxu0  ;;  %v3822_v6 = vmul.f32 %v3719_v60, %v3719_v60  ;;  %v3756_v7 = vadd.f32 %v3755_v0, %v3754_v56  ;;  %v5447_v11 = vadd.f32 %v5404_v63, %v7180_v46 }
 0x23e   : > { %v5448_v45 = vadd.f32 %v3562_v5, %v7182_v47  ;;  %v3757_v17 = vsel %vm321_vm1, %v3718_v4, 0.0  ;;  %v3821_v55 = vmul.f32 %v3718_v4, %v3718_v4  ;;  %4659 = vst.msk [vmem:[%s7092_s21 + $0x79] sm:$0xff] %vm321_vm1, %v3718_v4  ;;  %v3759_v9 = vsel %vm321_vm1, %v3719_v60, 0.0 }
 0x23f   : > { %v3859_v57 = vadd.f32 %v3858_v2, %v3857_v3  ;;  %v3758_v28 = vadd.f32 %v3757_v17, %v3756_v7  ;;  %v3721_v24 = vadd.f32 %v5447_v11, %v7192_v53  ;;  %v3862_v14 = vsel %vm321_vm1, %v3822_v6, 0.0 }
 0x240   : > { %v3720_v25 = vadd.f32 %v5448_v45, %v7192_v53  ;;  %v5407_v8 = vpop.f32.mrb[12].mxu0  ;;  %v3860_v46 = vsel %vm321_vm1, %v3821_v55, 0.0 }
 0x241   : > { %v5449_v47 = vadd.f32 %v5407_v8, %v7184_v48  ;;  %v3572_v12 = vpop.f32.mrb[13].mxu0  ;;  %v3861_v16 = vadd.f32 %v3860_v46, %v3859_v57  ;;  %v3824_v19 = vmul.f32 %v3721_v24, %v3721_v24  ;;  %4662 = vst.msk [vmem:[%s7092_s21 + $0x99] sm:$0xff] %vm321_vm1, %v3721_v24  ;;  %v3760_v21 = vadd.f32 %v3759_v9, %v3758_v28 }
 0x242   : > { %4661 = vst.msk [vmem:[%s7092_s21 + $0x91] sm:$0xff] %vm321_vm1, %v3720_v25  ;;  %v3761_v22 = vsel %vm321_vm1, %v3720_v25, 0.0  ;;  %v3823_v37 = vmul.f32 %v3720_v25, %v3720_v25  ;;  %v5450_v10 = vadd.f32 %v3572_v12, %v7186_v49  ;;  %v3763_v1 = vsel %vm321_vm1, %v3721_v24, 0.0 }
 0x243   : > { %v3723_v35 = vadd.f32 %v5449_v47, %v7192_v53  ;;  %v3762_v15 = vadd.f32 %v3761_v22, %v3760_v21  ;;  %v3863_v48 = vadd.f32 %v3862_v14, %v3861_v16  ;;  %v3866_v29 = vsel %vm321_vm1, %v3824_v19, 0.0 }
 0x244   : > { %v5410_v20 = vpop.f32.mrb[14].mxu0  ;;  %v3864_v61 = vsel %vm321_vm1, %v3823_v37, 0.0  ;;  %v3722_v13 = vadd.f32 %v5450_v10, %v7192_v53 }
 0x245   : > { %v3826_v59 = vmul.f32 %v3723_v35, %v3723_v35  ;;  %4664 = vst.msk [vmem:[%s7092_s21 + $0xb1] sm:$0xff] %vm321_vm1, %v3723_v35  ;;  %v3582_v18 = vpop.f32.mrb[15].mxu0  ;;  %v3865_v23 = vadd.f32 %v3864_v61, %v3863_v48  ;;  %v3764_v26 = vadd.f32 %v3763_v1, %v3762_v15  ;;  %v5451_v27 = vadd.f32 %v5410_v20, %v7188_v50 }
 0x246   : > { %v5452_v49 = vadd.f32 %v3582_v18, %v7190_v51  ;;  %v3765_v30 = vsel %vm321_vm1, %v3722_v13, 0.0  ;;  %v3825_v31 = vmul.f32 %v3722_v13, %v3722_v13  ;;  %4663 = vst.msk [vmem:[%s7092_s21 + $0xa9] sm:$0xff] %vm321_vm1, %v3722_v13  ;;  %v3767_v51 = vsel %vm321_vm1, %v3723_v35, 0.0 }
 0x247   : > { %v5213_v32 = vpop.f32.mrb[16].mxu1  ;;  %v3766_v33 = vadd.f32 %v3765_v30, %v3764_v26  ;;  %v3867_v34 = vadd.f32 %v3866_v29, %v3865_v23  ;;  %v3725_v36 = vadd.f32 %v5451_v27, %v7192_v53  ;;  %v3870_v43 = vsel %vm321_vm1, %v3826_v59, 0.0 }
 0x248   : > { %v3724_v38 = vadd.f32 %v5452_v49, %v7192_v53  ;;  %v5413_v39 = vpop.f32.mrb[16].mxu0  ;;  %v2031_v50 = vpop.f32.mrb[17].mxu1  ;;  %v3868_v40 = vsel %vm321_vm1, %v3825_v31, 0.0 }
 0x249   : > { %v5453_v41 = vadd.f32 %v5413_v39, %v5213_v32  ;;  %v3592_v42 = vpop.f32.mrb[17].mxu0  ;;  %v3869_v52 = vadd.f32 %v3868_v40, %v3867_v34  ;;  %v3828_v54 = vmul.f32 %v3725_v36, %v3725_v36  ;;  %4666 = vst.msk [vmem:[%s7092_s21 + $0xc9] sm:$0xff] %vm321_vm1, %v3725_v36  ;;  %v3768_v56 = vadd.f32 %v3767_v51, %v3766_v33 }
 0x24a   : > { %4665 = vst.msk [vmem:[%s7092_s21 + $0xc1] sm:$0xff] %vm321_vm1, %v3724_v38  ;;  %v3769_v58 = vsel %vm321_vm1, %v3724_v38, 0.0  ;;  %v3827_v60 = vmul.f32 %v3724_v38, %v3724_v38  ;;  %v5454_v44 = vadd.f32 %v3592_v42, %v2031_v50  ;;  %v3771_v5 = vsel %vm321_vm1, %v3725_v36, 0.0 }
 0x24b   : > { %v3727_v62 = vadd.f32 %v5453_v41, %v7192_v53  ;;  %v5216_v63 = vpop.f32.mrb[18].mxu1  ;;  %v3770_v0 = vadd.f32 %v3769_v58, %v3768_v56  ;;  %v3871_v2 = vadd.f32 %v3870_v43, %v3869_v52  ;;  %v3874_v24 = vsel %vm321_vm1, %v3828_v54, 0.0 }
 0x24c   : > { %v5416_v3 = vpop.f32.mrb[18].mxu0  ;;  %v2041_v4 = vpop.f32.mrb[19].mxu1  ;;  %v3872_v6 = vsel %vm321_vm1, %v3827_v60, 0.0  ;;  %v3726_v11 = vadd.f32 %v5454_v44, %v7192_v53 }
 0x24d   : > { %v3830_v7 = vmul.f32 %v3727_v62, %v3727_v62  ;;  %4668 = vst.msk [vmem:[%s7092_s21 + $0xe1] sm:$0xff] %vm321_vm1, %v3727_v62  ;;  %v3602_v45 = vpop.f32.mrb[19].mxu0  ;;  %v3873_v17 = vadd.f32 %v3872_v6, %v3871_v2  ;;  %v3772_v55 = vadd.f32 %v3771_v5, %v3770_v0  ;;  %v5455_v57 = vadd.f32 %v5416_v3, %v5216_v63 }
 0x24e   : > { %v5456_v28 = vadd.f32 %v3602_v45, %v2041_v4  ;;  %v3773_v25 = vsel %vm321_vm1, %v3726_v11, 0.0  ;;  %v3829_v8 = vmul.f32 %v3726_v11, %v3726_v11  ;;  %4667 = vst.msk [vmem:[%s7092_s21 + $0xd9] sm:$0xff] %vm321_vm1, %v3726_v11  ;;  %v3775_v21 = vsel %vm321_vm1, %v3727_v62, 0.0 }
 0x24f   : > { %v5219_v9 = vpop.f32.mrb[20].mxu1  ;;  %v3774_v46 = vadd.f32 %v3773_v25, %v3772_v55  ;;  %v3875_v47 = vadd.f32 %v3874_v24, %v3873_v17  ;;  %v3729_v12 = vadd.f32 %v5455_v57, %v7192_v53  ;;  %v3878_v10 = vsel %vm321_vm1, %v3830_v7, 0.0 }
 0x250   : > { %v3728_v14 = vadd.f32 %v5456_v28, %v7192_v53  ;;  %v5419_v16 = vpop.f32.mrb[20].mxu0  ;;  %v2051_v19 = vpop.f32.mrb[21].mxu1  ;;  %v3876_v22 = vsel %vm321_vm1, %v3829_v8, 0.0 }
 0x251   : > { %v5457_v37 = vadd.f32 %v5419_v16, %v5219_v9  ;;  %v3612_v35 = vpop.f32.mrb[21].mxu0  ;;  %v3877_v15 = vadd.f32 %v3876_v22, %v3875_v47  ;;  %v3832_v48 = vmul.f32 %v3729_v12, %v3729_v12  ;;  %4670 = vst.msk [vmem:[%s7092_s21 + $0xf9] sm:$0xff] %vm321_vm1, %v3729_v12  ;;  %v3776_v20 = vadd.f32 %v3775_v21, %v3774_v46 }
 0x252   : > { %4669 = vst.msk [vmem:[%s7092_s21 + $0xf1] sm:$0xff] %vm321_vm1, %v3728_v14  ;;  %v3777_v1 = vsel %vm321_vm1, %v3728_v14, 0.0  ;;  %v3831_v61 = vmul.f32 %v3728_v14, %v3728_v14  ;;  %v5458_v13 = vadd.f32 %v3612_v35, %v2051_v19  ;;  %v3779_v29 = vsel %vm321_vm1, %v3729_v12, 0.0 }
 0x253   : > { %v3731_v59 = vadd.f32 %v5457_v37, %v7192_v53  ;;  %v5222_v18 = vpop.f32.mrb[22].mxu1  ;;  %v3778_v23 = vadd.f32 %v3777_v1, %v3776_v20  ;;  %v3879_v26 = vadd.f32 %v3878_v10, %v3877_v15  ;;  %v3882_v50 = vsel %vm321_vm1, %v3832_v48, 0.0 }
 0x254   : > { %v5422_v27 = vpop.f32.mrb[22].mxu0  ;;  %v2061_v49 = vpop.f32.mrb[23].mxu1  ;;  %v3880_v30 = vsel %vm321_vm1, %v3831_v61, 0.0  ;;  %v3730_v32 = vadd.f32 %v5458_v13, %v7192_v53 }
 0x255   : > { %v3834_v31 = vmul.f32 %v3731_v59, %v3731_v59  ;;  %4672 = vst.msk [vmem:[%s7092_s21 + $0x111] sm:$0xff] %vm321_vm1, %v3731_v59  ;;  %v3622_v33 = vpop.f32.mrb[23].mxu0  ;;  %v3881_v34 = vadd.f32 %v3880_v30, %v3879_v26  ;;  %v3780_v36 = vadd.f32 %v3779_v29, %v3778_v23  ;;  %v5459_v38 = vadd.f32 %v5422_v27, %v5222_v18 }
 0x256   : > { %v5460_v39 = vadd.f32 %v3622_v33, %v2061_v49  ;;  %v3781_v51 = vsel %vm321_vm1, %v3730_v32, 0.0  ;;  %v3833_v40 = vmul.f32 %v3730_v32, %v3730_v32  ;;  %4671 = vst.msk [vmem:[%s7092_s21 + $0x109] sm:$0xff] %vm321_vm1, %v3730_v32  ;;  %v3783_v60 = vsel %vm321_vm1, %v3731_v59, 0.0 }
 0x257   : > { %v5225_v41 = vpop.f32.mrb[24].mxu1  ;;  %v3782_v42 = vadd.f32 %v3781_v51, %v3780_v36  ;;  %v3883_v43 = vadd.f32 %v3882_v50, %v3881_v34  ;;  %v3733_v52 = vadd.f32 %v5459_v38, %v7192_v53  ;;  %v3886_v0 = vsel %vm321_vm1, %v3834_v31, 0.0 }
 0x258   : > { %v3732_v54 = vadd.f32 %v5460_v39, %v7192_v53  ;;  %v5425_v56 = vpop.f32.mrb[24].mxu0  ;;  %v2071_v58 = vpop.f32.mrb[25].mxu1  ;;  %v3884_v62 = vsel %vm321_vm1, %v3833_v40, 0.0 }
 0x259   : > { %v5461_v44 = vadd.f32 %v5425_v56, %v5225_v41  ;;  %v3632_v63 = vpop.f32.mrb[25].mxu0  ;;  %v3885_v2 = vadd.f32 %v3884_v62, %v3883_v43  ;;  %v3836_v3 = vmul.f32 %v3733_v52, %v3733_v52  ;;  %4674 = vst.msk [vmem:[%s7092_s21 + $0x129] sm:$0xff] %vm321_vm1, %v3733_v52  ;;  %v3784_v4 = vadd.f32 %v3783_v60, %v3782_v42 }
 0x25a   : > { %4673 = vst.msk [vmem:[%s7092_s21 + $0x121] sm:$0xff] %vm321_vm1, %v3732_v54  ;;  %v3785_v5 = vsel %vm321_vm1, %v3732_v54, 0.0  ;;  %v3835_v6 = vmul.f32 %v3732_v54, %v3732_v54  ;;  %v5462_v11 = vadd.f32 %v3632_v63, %v2071_v58  ;;  %v3787_v24 = vsel %vm321_vm1, %v3733_v52, 0.0 }
 0x25b   : > { %v3735_v7 = vadd.f32 %v5461_v44, %v7192_v53  ;;  %v5228_v45 = vpop.f32.mrb[26].mxu1  ;;  %v3786_v17 = vadd.f32 %v3785_v5, %v3784_v4  ;;  %v3887_v55 = vadd.f32 %v3886_v0, %v3885_v2  ;;  %v3890_v19 = vsel %vm321_vm1, %v3836_v3, 0.0 }
 0x25c   : > { %v5428_v57 = vpop.f32.mrb[26].mxu0  ;;  %v2081_v28 = vpop.f32.mrb[27].mxu1  ;;  %v3888_v25 = vsel %vm321_vm1, %v3835_v6, 0.0  ;;  %v3734_v9 = vadd.f32 %v5462_v11, %v7192_v53 }
 0x25d   : > { %v3838_v8 = vmul.f32 %v3735_v7, %v3735_v7  ;;  %4676 = vst.msk [vmem:[%s7092_s21 + $0x141] sm:$0xff] %vm321_vm1, %v3735_v7  ;;  %v3642_v46 = vpop.f32.mrb[27].mxu0  ;;  %v3889_v47 = vadd.f32 %v3888_v25, %v3887_v55  ;;  %v3788_v12 = vadd.f32 %v3787_v24, %v3786_v17  ;;  %v5463_v14 = vadd.f32 %v5428_v57, %v5228_v45 }
 0x25e   : > { %v5464_v16 = vadd.f32 %v3642_v46, %v2081_v28  ;;  %v3789_v21 = vsel %vm321_vm1, %v3734_v9, 0.0  ;;  %v3837_v22 = vmul.f32 %v3734_v9, %v3734_v9  ;;  %4675 = vst.msk [vmem:[%s7092_s21 + $0x139] sm:$0xff] %vm321_vm1, %v3734_v9  ;;  %v3791_v61 = vsel %vm321_vm1, %v3735_v7, 0.0 }
 0x25f   : > { %v5231_v37 = vpop.f32.mrb[28].mxu1  ;;  %v3790_v35 = vadd.f32 %v3789_v21, %v3788_v12  ;;  %v3891_v10 = vadd.f32 %v3890_v19, %v3889_v47  ;;  %v3737_v15 = vadd.f32 %v5463_v14, %v7192_v53  ;;  %v3894_v23 = vsel %vm321_vm1, %v3838_v8, 0.0 }
 0x260   : > { %v3736_v48 = vadd.f32 %v5464_v16, %v7192_v53  ;;  %v5431_v20 = vpop.f32.mrb[28].mxu0  ;;  %v2091_v1 = vpop.f32.mrb[29].mxu1  ;;  %v3892_v59 = vsel %vm321_vm1, %v3837_v22, 0.0 }
 0x261   : > { %v5465_v13 = vadd.f32 %v5431_v20, %v5231_v37  ;;  %v3652_v18 = vpop.f32.mrb[29].mxu0  ;;  %v3893_v26 = vadd.f32 %v3892_v59, %v3891_v10  ;;  %v3840_v27 = vmul.f32 %v3737_v15, %v3737_v15  ;;  %4678 = vst.msk [vmem:[%s7092_s21 + $0x159] sm:$0xff] %vm321_vm1, %v3737_v15  ;;  %v3792_v49 = vadd.f32 %v3791_v61, %v3790_v35 }
 0x262   : > { %4677 = vst.msk [vmem:[%s7092_s21 + $0x151] sm:$0xff] %vm321_vm1, %v3736_v48  ;;  %v3793_v29 = vsel %vm321_vm1, %v3736_v48, 0.0  ;;  %v3839_v30 = vmul.f32 %v3736_v48, %v3736_v48  ;;  %v5466_v32 = vadd.f32 %v3652_v18, %v2091_v1  ;;  %v3795_v50 = vsel %vm321_vm1, %v3737_v15, 0.0 }
 0x263   : > { %v3739_v31 = vadd.f32 %v5465_v13, %v7192_v53  ;;  %v5234_v33 = vpop.f32.mrb[30].mxu1  ;;  %v3794_v34 = vadd.f32 %v3793_v29, %v3792_v49  ;;  %v3895_v36 = vadd.f32 %v3894_v23, %v3893_v26  ;;  %v3898_v56 = vsel %vm321_vm1, %v3840_v27, 0.0 }
 0x264   : > { %v5434_v38 = vpop.f32.mrb[30].mxu0  ;;  %v2101_v39 = vpop.f32.mrb[31].mxu1  ;;  %v3896_v51 = vsel %vm321_vm1, %v3839_v30, 0.0  ;;  %v3738_v40 = vadd.f32 %v5466_v32, %v7192_v53 }
 0x265   : > { %4680 = vst.msk [vmem:[%s7092_s21 + $0x171] sm:$0xff] %vm321_vm1, %v3739_v31  ;;  %v3662_v41 = vpop.f32.mrb[31].mxu0  ;;  %v3897_v42 = vadd.f32 %v3896_v51, %v3895_v36  ;;  %v3796_v43 = vadd.f32 %v3795_v50, %v3794_v34  ;;  %v5467_v52 = vadd.f32 %v5434_v38, %v5234_v33  ;;  %v3842_v58 = vmul.f32 %v3739_v31, %v3739_v31 }
 0x266   : > { %v5468_v54 = vadd.f32 %v3662_v41, %v2101_v39  ;;  %v3797_v60 = vsel %vm321_vm1, %v3738_v40, 0.0  ;;  %v3841_v62 = vmul.f32 %v3738_v40, %v3738_v40  ;;  %4679 = vst.msk [vmem:[%s7092_s21 + $0x169] sm:$0xff] %vm321_vm1, %v3738_v40  ;;  %v3799_v3 = vsel %vm321_vm1, %v3739_v31, 0.0 }
 0x267   : > { %v3798_v44 = vadd.f32 %v3797_v60, %v3796_v43  ;;  %v3899_v63 = vadd.f32 %v3898_v56, %v3897_v42  ;;  %v3741_v0 = vadd.f32 %v5467_v52, %v7192_v53  ;;  %v3902_v7 = vsel %vm321_vm1, %v3842_v58, 0.0 }
 0x268   : > { %v3740_v2 = vadd.f32 %v5468_v54, %v7192_v53  ;;  %v3900_v4 = vsel %vm321_vm1, %v3841_v62, 0.0 }
 0x269   : > { %v3901_v5 = vadd.f32 %v3900_v4, %v3899_v63  ;;  %4682 = vst.msk [vmem:[%s7092_s21 + $0x189] sm:$0xff] %vm321_vm1, %v3741_v0  ;;  %v3800_v6 = vadd.f32 %v3799_v3, %v3798_v44  ;;  %v3844_v11 = vmul.f32 %v3741_v0, %v3741_v0 }
 0x26a   : > { %4681 = vst.msk [vmem:[%s7092_s21 + $0x181] sm:$0xff] %vm321_vm1, %v3740_v2  ;;  %v3801_v53 = vsel %vm321_vm1, %v3740_v2, 0.0  ;;  %v3843_v45 = vmul.f32 %v3740_v2, %v3740_v2 }
 0x26b   : > { %5875 = shalt.err (!%p5872_p2)
}
 0x26c   : > { %s5876_s5 = scalar_lea.hbm %s7354_s25, 6912  ;;  %s5880_s26 = scalar_lea.hbm %s7449_s3, 13824 }
 0x26d   : > { %p5877_p13 = scmp.ne.s32.totalorder %s7354_s25, %s5876_s5  ;;  %p5881_p4 = scmp.lt.u32.totalorder %s7354_s25, %s7449_s3 }
 0x26e   : > { %p5882_p5 = scmp.lt.u32.totalorder %s5880_s26, %s5876_s5  ;;  %p5884_p11 = scmp.lt.u32.totalorder %s5876_s5, %s7354_s25 }
 0x26f   : > { %p5878_p6 = pnand %p5877_p13, %p7573_p0 }
 0x270   : > { %p5883_p8 = por %p5882_p5, %p5881_p4 }
 0x271   : > { %p5879_p10 = pneg %p5878_p6 }
 0x272   : > { %p5885_p1 = por %p5884_p11, %p5883_p8 }
 0x274   : > { %p5886_p3 = pnand %p5885_p1, %p5879_p10 }
 0x276   : > { %5889 = shalt.err (!%p5886_p3)
}
 0x277   : > { %s5975_s23 = smov 128   ;;  %s5976_s30 = smov 8   ;;  %v3802_v17 = vadd.f32 %v3801_v53, %v3800_v6  ;;  %v3903_v55 = vadd.f32 %v3902_v7, %v3901_v5  ;;  %v3803_v57 = vsel %vm321_vm1, %v3741_v0, 0.0  ;;  %v3904_v28 = vsel %vm321_vm1, %v3843_v45, 0.0 }
 0x278   : > { %5707 = dma.vmem_to_hbm [thread:$0]  (%p7573_p0), %s7358_s24, 6912, %s7354_s25, %s3993_s28, %s5975_s23, %s5975_s23, %s5976_s30   ;;  %v3906_v8 = vsel %vm321_vm1, %v3844_v11, 0.0 }
 0x279   : > { %v3804_v24 = vadd.f32 %v3803_v57, %v3802_v17  ;;  %v3905_v25 = vadd.f32 %v3904_v28, %v3903_v55  ;;  %s4157_s6 = sshll.u32 %s6176_s8, 1  ;;  %s4685_s24 = sshll.u32 %s6024_s19, 5 }
 0x27a   : > { %s253_s25 = scalar_lea.vmem [#allocation9], %s4157_s6  ;;  %s7401_s27 = scalar_lea.hbm %s7450_s4, %s4685_s24 }
 0x27b   : > { %v3805_v9 = vrot.slane %v3804_v24, 4  ;;  %v3907_v46 = vadd.f32 %v3906_v8, %v3905_v25  ;;  %s4027_s28 = sshll.u32 %s253_s25, 4  ;;  %s3998_s19 = scalar_lea.sflag [#allocation10], %s6176_s8  ;;  %s7403_s28 = int_to_ptr.vmem [resolvable:$true] %s4027_s28 }
 0x27c   : > { %s5890_s29 = scalar_lea.vmem %s7403_s28, 32  ;;  %s5977_s5 = smov [#allocation9]  }
 0x27d   : > { %v3806_v47 = vadd.f32 %v3805_v9, %v3804_v24  ;;  %v3908_v12 = vrot.slane %v3907_v46, 4  ;;  %p5891_p7 = scmp.ne.s32.totalorder %s7403_s28, %s5890_s29  ;;  %s5894_s7 = sshll.u32 %s5977_s5, 4  ;;  %s5895_s7 = int_to_ptr.vmem [resolvable:$false] %s5894_s7 }
 0x27e   : > { %s5896_s9 = scalar_lea.vmem %s5895_s7, 64  ;;  %p5897_p2 = scmp.lt.s32.totalorder %s7403_s28, %s5895_s7 }
 0x27f   : > { %v3807_v14 = vrot.slane %v3806_v47, 2  ;;  %v3909_v16 = vadd.f32 %v3908_v12, %v3907_v46  ;;  %p5892_p9 = pnand %p5891_p7, %p7573_p0  ;;  %p5898_p13 = scmp.lt.s32.totalorder %s5896_s9, %s5890_s29 }
 0x281   : > { %v3808_v19 = vadd.f32 %v3807_v14, %v3806_v47  ;;  %v3910_v21 = vrot.slane %v3909_v16, 2  ;;  %p5893_p12 = pneg %p5892_p9  ;;  %p5899_p6 = por %p5898_p13, %p5897_p2 }
 0x283   : > { %v3809_v22 = vrot.slane %v3808_v19, 1  ;;  %v3911_v37 = vadd.f32 %v3910_v21, %v3909_v16  ;;  %p5900_p10 = pnand %p5899_p6, %p5893_p12 }
 0x285   : > { %v3810_v35 = vadd.f32 %v3809_v22, %v3808_v19  ;;  %v3912_v10 = vrot.slane %v3911_v37, 1 }
 0x287   : > { %3812 = vst.msk [vmem:[%s253_s25] sm:$0x1] %vm3811_vm2, %v3810_v35  ;;  %v3913_v15 = vadd.f32 %v3912_v10, %v3911_v37 }
 0x289   : > { %3914 = vst.msk [vmem:[%s253_s25 + $0x1] sm:$0x1] %vm3811_vm2, %v3913_v15 }
 0x28a   : > { %5903 = shalt.err (!%p5900_p10)
}
 0x28b   : > { %s5904_s8 = scalar_lea.hbm %s7401_s27, 32  ;;  %s5908_s21 = scalar_lea.hbm %s7450_s4, 64 }
 0x28c   : > { %p5905_p4 = scmp.ne.s32.totalorder %s7401_s27, %s5904_s8  ;;  %p5909_p11 = scmp.lt.u32.totalorder %s7401_s27, %s7450_s4 }
 0x28d   : > { %p5910_p1 = scmp.lt.u32.totalorder %s5908_s21, %s5904_s8  ;;  %p5912_p7 = scmp.lt.u32.totalorder %s5904_s8, %s7401_s27 }
 0x28e   : > { %p5906_p5 = pnand %p5905_p4, %p7573_p0 }
 0x28f   : > { %p5911_p3 = por %p5910_p1, %p5909_p11 }
 0x290   : > { %p5907_p8 = pneg %p5906_p5 }
 0x291   : > { %p5913_p9 = por %p5912_p7, %p5911_p3 }
 0x293   : > { %p5914_p12 = pnand %p5913_p9, %p5907_p8 }
 0x295   : > { %5917 = shalt.err (!%p5914_p12)
}
 0x296   : > { %5708 = dma.vmem_to_hbm [thread:$0]  (%p7573_p0), %s7403_s28, 32, %s7401_s27, %s3998_s19  }
 0x297 PF: > { %s4039_s6 = sand.u32 1, %s5952_s15   ;;  %p7574_p2 = scmp.ne.s32.totalorder %s7500_s22, 0 }
 0x298   : > { %p7575_p13 = scmp.ge.s32.totalorder %s5964_s18, 2  ;;  %s4040_s24 = scalar_lea.sflag [#allocation4], %s4039_s6 }
 0x29a   : > { %p5723_p6 = pnand %p7575_p13, %p7574_p2 }
 0x29c   : > { %5943 = dma.done.wait (!%p5723_p6), %s4040_s24, 6912  }
 0x29d   : > { %5945 = vsyncadd (!%p5723_p6), %s4040_s24, 4294960384  ;;  %s4049_s25 = scalar_lea.sflag [#allocation10], %s4039_s6 }
 0x29e   : > { %5947 = dma.done.wait (!%p5723_p6), %s4049_s25, 32  }
 0x29f   : > { %5949 = vsyncadd (!%p5723_p6), %s4049_s25, 4294967264  ;;  %p22_p0 = scmp.ge.s32.totalorder %s6114_s10, 4   ;;  %s7576_s15 = smov %s5956_s16 }
 0x2a0   : > { %s7577_s16 = smov %s5960_s17  ;;  %s7578_s17 = smov %s6130_s13 }
 0x2a1   : > { %s7579_s18 = smov %s6114_s10  ;;  %24 = sbr.rel (!%p22_p0) target bundleno = 8 (0x8), region = 114 }
 0x2a8   :  { %4054 = vsyncpa [#allocation3], 1 }
 0x2a9   :  { %4056 = vsyncpa [#allocation3 + $0x1], 1 }
 0x2aa   :  { %4057 = vsyncpa [#allocation6], 1 }
 0x2ab   :  { %4058 = vsyncpa [#allocation4], 1 }
 0x2ac   :  { %4060 = vsyncpa [#allocation4 + $0x1], 1 }
 0x2ad   :  { %4061 = vsyncpa [#allocation10], 1 }
 0x2ae   :  { %4063 = vsyncpa [#allocation10 + $0x1], 1 }

</bundles_post_ra>
